<compile_context>
chip_gen: v6e
topology: v6e:2x2x1
jax: 0.10.0
libtpu: 0.0.40
codegen_flags: <defaults>
</compile_context>

<pallas_src>
import math
import numpy as np

import jax
import jax.numpy as jnp
from jax.experimental import pallas as pl
from jax.experimental.pallas import tpu as pltpu


def _mxdot(x, w):
    """Matmul with bf16 MXU operands and f32 accumulation (single MXU pass)."""
    return jnp.dot(x.astype(jnp.bfloat16), w.astype(jnp.bfloat16),
                   preferred_element_type=jnp.float32)


def flow_model_kernel(
    s0_ref,        # (B, S)        f32   s[:, 0]
    gia_ref,       # (T, B, 3H)    f32   a_t @ [Wih_a r|z|n] + b_ih   (precomputed)
    trz_ref,       # (T*L, B, 2H)  f32   t*[wrt|wzt] + [br|bz]        (precomputed)
    tu_ref,        # (T*L, B, H)   f32   t*wut + bu                   (precomputed)
    phi_ref,       # (T*L, B, H)   f32   tanh(t*wtime)                (precomputed)
    w_enc_ref, b_enc_ref,          # (S, H) f32, (1, H) f32
    wrz_ref,       # (L, H, 2H)    bf16  [wr | wz]
    wu_ref,        # (L, H, H)     bf16
    wih_s_ref,     # (S, 3H)       bf16  GRU input weights (state part), gates r|z|n
    whh_ref,       # (H, 3H)       bf16  GRU hidden weights,            gates r|z|n
    bhh_ref,       # (1, 3H)       f32
    wdec_ref, bdec_ref,            # (H, S) bf16, (1, S) f32
    out_ref,       # (T, B, S)     f32
):
    T, B, S = out_ref.shape
    L, H, _ = wu_ref.shape

    # Encoder applied once to s0 -> initial hidden state (f32, off the loop).
    s0 = s0_ref[...]
    h = jnp.dot(s0, w_enc_ref[...], preferred_element_type=jnp.float32) + b_enc_ref[...]
    last = s0                                       # mode='auto' seed

    # Pre-broadcast loop-invariant biases / weights once (no per-iter broadcast_in_dim).
    bhh = jnp.broadcast_to(bhh_ref[...], (B, 3 * H))
    bdec = jnp.broadcast_to(bdec_ref[...], (B, S))
    wih_s = wih_s_ref[...]
    whh = whh_ref[...]
    wdec = wdec_ref[...]

    # T and L are tiny compile-time constants: fully unrolled straight-line
    # code, h / last stay in vregs across the whole recurrence.
    for i in range(T):
        # ---- GRUFlow: L residual GRU-flow blocks (fused r|z matmul) ----
        for l in range(L):
            il = i * L + l
            rz = jax.nn.sigmoid(_mxdot(h, wrz_ref[l]) + trz_ref[il])   # (B, 2H)
            r = 0.8 * rz[:, :H]
            z = 0.4 * rz[:, H:]
            u = jnp.tanh(_mxdot(r * h, wu_ref[l]) + tu_ref[il])        # (B, H)
            h = h + phi_ref[il] * (z * (u - h))

        # ---- nn.GRU single step; gates (r, z, n) fused into 3H-wide matmuls ----
        gi = _mxdot(last, wih_s) + gia_ref[i]       # (B, 3H); action part precomputed
        gh = _mxdot(h, whh) + bhh                   # (B, 3H)
        r_g = jax.nn.sigmoid(gi[:, :H] + gh[:, :H])
        z_g = jax.nn.sigmoid(gi[:, H:2 * H] + gh[:, H:2 * H])
        n_g = jnp.tanh(gi[:, 2 * H:] + r_g * gh[:, 2 * H:])
        h = (1.0 - z_g) * n_g + z_g * h             # (B, H)

        # ---- decoder ----
        o = _mxdot(h, wdec) + bdec                  # (B, S)
        out_ref[i] = o                              # static-index store (off the chain)
        last = o


def flow_model_forward(params, s, a, t):
    """s: (B, T, state_dim), a: (B, T, action_dim), t: (B, T) -> (B, T, state_dim)."""
    B, T, S = s.shape
    H = params["w_enc"].shape[-1]
    L = params["wr"].shape[0]

    f32, bf16 = jnp.float32, jnp.bfloat16
    s = s.astype(f32)
    a = a.astype(f32)
    t = t.astype(f32)

    # ---- recurrence-independent precompute (hoisted out of the kernel loop) ----
    # Fused GRU weights, gate order (r, z, n).
    wih_s_f = jnp.concatenate([params["wih_s"][g] for g in range(3)], axis=-1)  # (S, 3H)
    wih_a_f = jnp.concatenate([params["wih_a"][g] for g in range(3)], axis=-1)  # (A, 3H)
    bih_f = jnp.concatenate([params["bih"][g] for g in range(3)], axis=-1)      # (1, 3H)
    whh_f = jnp.concatenate([params["whh"][g] for g in range(3)], axis=-1)      # (H, 3H)
    bhh_f = jnp.concatenate([params["bhh"][g] for g in range(3)], axis=-1)      # (1, 3H)

    a_tm = jnp.transpose(a, (1, 0, 2))                                          # (T, B, A)
    gia = jnp.einsum("tba,ah->tbh", a_tm, wih_a_f,
                     precision=jax.lax.Precision.HIGHEST) + bih_f               # (T, B, 3H)

    t_tm = jnp.transpose(t, (1, 0))[:, None, :, None]                           # (T, 1, B, 1)
    wrzt = jnp.concatenate([params["wrt"], params["wzt"]], axis=-1)             # (L, 1, 2H)
    brz = jnp.concatenate([params["br"], params["bz"]], axis=-1)                # (L, 1, 2H)
    trz = (t_tm * wrzt[None] + brz[None]).reshape(T * L, B, 2 * H)
    tu = (t_tm * params["wut"][None] + params["bu"][None]).reshape(T * L, B, H)
    phi = jnp.tanh(t_tm * params["wtime"][None]).reshape(T * L, B, H)

    wrz = jnp.concatenate([params["wr"], params["wz"]], axis=-1)                # (L, H, 2H)

    ins = [
        s[:, 0, :],                       # only s0 is needed inside the kernel
        gia, trz, tu, phi,
        params["w_enc"], params["b_enc"],
        wrz.astype(bf16), params["wu"].astype(bf16),
        wih_s_f.astype(bf16), whh_f.astype(bf16), bhh_f,
        params["wdec"].astype(bf16), params["bdec"],
    ]

    mm = lambda m, k, n: 2 * m * k * n
    flops_step = (L * (mm(B, H, 2 * H) + mm(B, H, H))
                  + mm(B, S, 3 * H) + mm(B, H, 3 * H) + mm(B, H, S))
    cost = pl.CostEstimate(
        flops=T * flops_step + mm(B, S, H),
        transcendentals=T * B * H * (3 * L + 3),
        bytes_accessed=int(sum(x.size * x.dtype.itemsize for x in ins) + T * B * S * 4),
    )

    # TODO(synk): for v7x with B >= 16, add a leading "parallel" grid axis that
    #             splits the batch across the two TensorCores; at B=8 half-batch
    #             blocks break the (8,128) sublane tiling and the win is nil.
    # TODO(synk): if T/B ever grow, switch the sequence tensors + output to
    #             grid-pipelined BlockSpecs over T instead of full VMEM residency.
    vmem = pl.BlockSpec(memory_space=pltpu.MemorySpace.VMEM)
    out_tm = pl.pallas_call(
        flow_model_kernel,
        out_shape=jax.ShapeDtypeStruct((T, B, S), jnp.float32),
        in_specs=[vmem] * len(ins),
        out_specs=vmem,
        cost_estimate=cost,
    )(*ins)
    return jnp.transpose(out_tm, (1, 0, 2))


def init_params(key, S, A, H, L):
    """Deterministic synthetic parameters (PyTorch-style uniform fan-in init)."""
    def uni(k, shape, fan_in):
        b = 1.0 / math.sqrt(fan_in)
        return jax.random.uniform(k, shape, jnp.float32, -b, b)

    keys = iter(jax.random.split(key, 24))
    p = {}
    # FlowModel.encoder: Linear(state_dim, latent_dim)
    p["w_enc"] = uni(next(keys), (S, H), S)
    p["b_enc"] = uni(next(keys), (1, H), S)
    # GRUFlow blocks: lin_hr/lin_hz/lin_hh are Linear(H+1, H); split into the
    # H-column matmul weight, the time column and the bias.
    for w_name, wt_name, b_name in (("wr", "wrt", "br"),
                                    ("wz", "wzt", "bz"),
                                    ("wu", "wut", "bu")):
        p[w_name] = uni(next(keys), (L, H, H), H + 1)
        p[wt_name] = uni(next(keys), (L, 1, H), H + 1)
        p[b_name] = uni(next(keys), (L, 1, H), H + 1)
    p["wtime"] = uni(next(keys), (L, 1, H), H)          # TimeTanh weight
    # nn.GRU(S + A, H, 1): gate order (r, z, n); input weight split by s / a.
    p["wih_s"] = uni(next(keys), (3, S, H), S + A)
    p["wih_a"] = uni(next(keys), (3, A, H), S + A)
    p["bih"] = uni(next(keys), (3, 1, H), H)
    p["whh"] = uni(next(keys), (3, H, H), H)
    p["bhh"] = uni(next(keys), (3, 1, H), H)
    # ODERNN.decoder: Linear(H, S)
    p["wdec"] = uni(next(keys), (H, S), H)
    p["bdec"] = uni(next(keys), (1, S), H)
    return p


def reference_forward(params, s, a, t):
    """Pure-JAX reference mirroring FlowModel.forward (mode='auto', gru flow)."""
    hp = lambda x, w: jnp.dot(x, w, precision=jax.lax.Precision.HIGHEST)
    B, T, S = s.shape
    L = params["wr"].shape[0]

    s0 = s[:, 0, :]
    h = hp(s0, params["w_enc"]) + params["b_enc"]
    last = s0
    outs = []
    for i in range(T):
        ti = t[:, i:i + 1]
        for l in range(L):
            r = 0.8 * jax.nn.sigmoid(hp(h, params["wr"][l]) + ti * params["wrt"][l] + params["br"][l])
            z = 0.4 * jax.nn.sigmoid(hp(h, params["wz"][l]) + ti * params["wzt"][l] + params["bz"][l])
            u = jnp.tanh(hp(r * h, params["wu"][l]) + ti * params["wut"][l] + params["bu"][l])
            phi = jnp.tanh(ti * params["wtime"][l])
            h = h + phi * (z * (u - h))
        x_s, x_a = last, a[:, i, :]
        gi_r = hp(x_s, params["wih_s"][0]) + hp(x_a, params["wih_a"][0]) + params["bih"][0]
        gi_z = hp(x_s, params["wih_s"][1]) + hp(x_a, params["wih_a"][1]) + params["bih"][1]
        gi_n = hp(x_s, params["wih_s"][2]) + hp(x_a, params["wih_a"][2]) + params["bih"][2]
        gh_r = hp(h, params["whh"][0]) + params["bhh"][0]
        gh_z = hp(h, params["whh"][1]) + params["bhh"][1]
        gh_n = hp(h, params["whh"][2]) + params["bhh"][2]
        r_g = jax.nn.sigmoid(gi_r + gh_r)
        z_g = jax.nn.sigmoid(gi_z + gh_z)
        n_g = jnp.tanh(gi_n + r_g * gh_n)
        h = (1.0 - z_g) * n_g + z_g * h
        o = hp(h, params["wdec"]) + params["bdec"]
        outs.append(o)
        last = o
    return jnp.stack(outs, axis=1)


if __name__ == "__main__":
    # Shapes consistent with the module's forward:
    #   state_dim=4, action_dim=4 (no action embedding), latent_dim=32,
    #   flow_layers=2, num_layers=1, time_net='TimeTanh', mode='auto'.
    # TODO(synk): CouplingFlow branch (flow_model='coupling') and other stribor
    #             time nets are not implemented; only GRUFlow + TimeTanh.
    B, T, S, A, H, L = 8, 6, 4, 4, 32, 2

    key = jax.random.PRNGKey(0)
    k_s, k_a, k_t, k_p = jax.random.split(key, 4)
    s = jax.random.normal(k_s, (B, T, S), jnp.float32)
    a = jax.random.normal(k_a, (B, T, A), jnp.float32)
    t = jax.random.uniform(k_t, (B, T), jnp.float32)
    params = init_params(k_p, S, A, H, L)

    fwd = jax.jit(flow_model_forward)
    out = jax.block_until_ready(fwd(params, s, a, t))
    assert out.shape == (B, T, S)

    ref = reference_forward(params, s, a, t)
    # Kernel uses bf16 MXU operands (f32 accumulate) inside the recurrent loop;
    # reference is f32 at Precision.HIGHEST, so tolerance is sized for ~2^-9
    # operand rounding compounded over the T-step recurrence.
    np.testing.assert_allclose(np.asarray(out), np.asarray(ref),
                               rtol=5e-2, atol=5e-2)
    print("KERNEL_OK")
</pallas_src>

<mosaic_0001>
module attributes {stable_mosaic.version = 11 : i64} {
  func.func @flow_model_kernel(%arg0: memref<8x4xf32, #tpu.memory_space<vmem>>, %arg1: memref<6x8x96xf32, #tpu.memory_space<vmem>>, %arg2: memref<12x8x64xf32, #tpu.memory_space<vmem>>, %arg3: memref<12x8x32xf32, #tpu.memory_space<vmem>>, %arg4: memref<12x8x32xf32, #tpu.memory_space<vmem>>, %arg5: memref<4x32xf32, #tpu.memory_space<vmem>>, %arg6: memref<1x32xf32, #tpu.memory_space<vmem>>, %arg7: memref<2x32x64xbf16, #tpu.memory_space<vmem>>, %arg8: memref<2x32x32xbf16, #tpu.memory_space<vmem>>, %arg9: memref<4x96xbf16, #tpu.memory_space<vmem>>, %arg10: memref<32x96xbf16, #tpu.memory_space<vmem>>, %arg11: memref<1x96xf32, #tpu.memory_space<vmem>>, %arg12: memref<32x4xbf16, #tpu.memory_space<vmem>>, %arg13: memref<1x4xf32, #tpu.memory_space<vmem>>, %arg14: memref<6x8x4xf32, #tpu.memory_space<vmem>>) attributes {dimension_semantics = [], scalar_prefetch = 0 : i64, scratch_operands = 0 : i64, tpu.core_type = #tpu.core_type<tc>} {
    %c0 = arith.constant 0 : index
    %c0_0 = arith.constant 0 : index
    %0 = vector.load %arg0[%c0, %c0_0] : memref<8x4xf32, #tpu.memory_space<vmem>>, vector<8x4xf32>
    %c0_1 = arith.constant 0 : index
    %c0_2 = arith.constant 0 : index
    %1 = vector.load %arg5[%c0_1, %c0_2] : memref<4x32xf32, #tpu.memory_space<vmem>>, vector<4x32xf32>
    %cst = arith.constant dense<0.000000e+00> : vector<8x32xf32>
    %2 = tpu.matmul %0, %1, %cst {dimension_numbers = #tpu.dot_dimension_numbers<[1], [0], [0], [1], [0, 0, 1, 1], [], []>} : vector<8x4xf32>, vector<4x32xf32>, vector<8x32xf32> -> vector<8x32xf32>
    %c0_3 = arith.constant 0 : index
    %c0_4 = arith.constant 0 : index
    %3 = vector.load %arg6[%c0_3, %c0_4] : memref<1x32xf32, #tpu.memory_space<vmem>>, vector<1x32xf32>
    %4 = vector.broadcast %3 : vector<1x32xf32> to vector<8x32xf32>
    %5 = arith.addf %2, %4 : vector<8x32xf32>
    %c0_5 = arith.constant 0 : index
    %c0_6 = arith.constant 0 : index
    %6 = vector.load %arg11[%c0_5, %c0_6] : memref<1x96xf32, #tpu.memory_space<vmem>>, vector<1x96xf32>
    %7 = vector.shape_cast %6 : vector<1x96xf32> to vector<1x96xf32>
    %8 = vector.broadcast %7 : vector<1x96xf32> to vector<8x96xf32>
    %c0_7 = arith.constant 0 : index
    %c0_8 = arith.constant 0 : index
    %9 = vector.load %arg13[%c0_7, %c0_8] : memref<1x4xf32, #tpu.memory_space<vmem>>, vector<1x4xf32>
    %10 = vector.shape_cast %9 : vector<1x4xf32> to vector<1x4xf32>
    %11 = vector.broadcast %10 : vector<1x4xf32> to vector<8x4xf32>
    %c0_9 = arith.constant 0 : index
    %c0_10 = arith.constant 0 : index
    %12 = vector.load %arg9[%c0_9, %c0_10] : memref<4x96xbf16, #tpu.memory_space<vmem>>, vector<4x96xbf16>
    %c0_11 = arith.constant 0 : index
    %c0_12 = arith.constant 0 : index
    %13 = vector.load %arg10[%c0_11, %c0_12] : memref<32x96xbf16, #tpu.memory_space<vmem>>, vector<32x96xbf16>
    %c0_13 = arith.constant 0 : index
    %c0_14 = arith.constant 0 : index
    %14 = vector.load %arg12[%c0_13, %c0_14] : memref<32x4xbf16, #tpu.memory_space<vmem>>, vector<32x4xbf16>
    %c0_15 = arith.constant 0 : index
    %c0_16 = arith.constant 0 : index
    %c0_17 = arith.constant 0 : index
    %15 = vector.load %arg7[%c0_15, %c0_16, %c0_17] : memref<2x32x64xbf16, #tpu.memory_space<vmem>>, vector<1x32x64xbf16>
    %16 = vector.shape_cast %15 : vector<1x32x64xbf16> to vector<32x64xbf16>
    %17 = arith.truncf %5 : vector<8x32xf32> to vector<8x32xbf16>
    %cst_18 = arith.constant dense<0.000000e+00> : vector<8x64xf32>
    %18 = tpu.matmul %17, %16, %cst_18 {dimension_numbers = #tpu.dot_dimension_numbers<[1], [0], [0], [1], [0, 0, 1, 1], [], []>} : vector<8x32xbf16>, vector<32x64xbf16>, vector<8x64xf32> -> vector<8x64xf32>
    %c0_19 = arith.constant 0 : index
    %c0_20 = arith.constant 0 : index
    %c0_21 = arith.constant 0 : index
    %19 = vector.load %arg2[%c0_19, %c0_20, %c0_21] : memref<12x8x64xf32, #tpu.memory_space<vmem>>, vector<1x8x64xf32>
    %20 = vector.shape_cast %19 : vector<1x8x64xf32> to vector<8x64xf32>
    %21 = arith.addf %18, %20 : vector<8x64xf32>
    %22 = arith.negf %21 : vector<8x64xf32>
    %23 = math.exp %22 : vector<8x64xf32>
    %cst_22 = arith.constant 1.000000e+00 : f32
    %24 = vector.broadcast %cst_22 : f32 to vector<8x64xf32>
    %25 = arith.addf %24, %23 : vector<8x64xf32>
    %26 = arith.divf %24, %25 : vector<8x64xf32>
    %27 = vector.extract_strided_slice %26 {offsets = [0, 0], sizes = [8, 32], strides = [1, 1]} : vector<8x64xf32> to vector<8x32xf32>
    %cst_23 = arith.constant 8.000000e-01 : f32
    %28 = vector.broadcast %cst_23 : f32 to vector<8x32xf32>
    %29 = arith.mulf %28, %27 : vector<8x32xf32>
    %30 = vector.extract_strided_slice %26 {offsets = [0, 32], sizes = [8, 32], strides = [1, 1]} : vector<8x64xf32> to vector<8x32xf32>
    %cst_24 = arith.constant 4.000000e-01 : f32
    %31 = vector.broadcast %cst_24 : f32 to vector<8x32xf32>
    %32 = arith.mulf %31, %30 : vector<8x32xf32>
    %33 = arith.mulf %29, %5 : vector<8x32xf32>
    %c0_25 = arith.constant 0 : index
    %c0_26 = arith.constant 0 : index
    %c0_27 = arith.constant 0 : index
    %34 = vector.load %arg8[%c0_25, %c0_26, %c0_27] : memref<2x32x32xbf16, #tpu.memory_space<vmem>>, vector<1x32x32xbf16>
    %35 = vector.shape_cast %34 : vector<1x32x32xbf16> to vector<32x32xbf16>
    %36 = arith.truncf %33 : vector<8x32xf32> to vector<8x32xbf16>
    %cst_28 = arith.constant dense<0.000000e+00> : vector<8x32xf32>
    %37 = tpu.matmul %36, %35, %cst_28 {dimension_numbers = #tpu.dot_dimension_numbers<[1], [0], [0], [1], [0, 0, 1, 1], [], []>} : vector<8x32xbf16>, vector<32x32xbf16>, vector<8x32xf32> -> vector<8x32xf32>
    %c0_29 = arith.constant 0 : index
    %c0_30 = arith.constant 0 : index
    %c0_31 = arith.constant 0 : index
    %38 = vector.load %arg3[%c0_29, %c0_30, %c0_31] : memref<12x8x32xf32, #tpu.memory_space<vmem>>, vector<1x8x32xf32>
    %39 = vector.shape_cast %38 : vector<1x8x32xf32> to vector<8x32xf32>
    %40 = arith.addf %37, %39 : vector<8x32xf32>
    %41 = math.tanh %40 : vector<8x32xf32>
    %c0_32 = arith.constant 0 : index
    %c0_33 = arith.constant 0 : index
    %c0_34 = arith.constant 0 : index
    %42 = vector.load %arg4[%c0_32, %c0_33, %c0_34] : memref<12x8x32xf32, #tpu.memory_space<vmem>>, vector<1x8x32xf32>
    %43 = vector.shape_cast %42 : vector<1x8x32xf32> to vector<8x32xf32>
    %44 = arith.subf %41, %5 : vector<8x32xf32>
    %45 = arith.mulf %32, %44 : vector<8x32xf32>
    %46 = arith.mulf %43, %45 : vector<8x32xf32>
    %47 = arith.addf %5, %46 : vector<8x32xf32>
    %c1 = arith.constant 1 : index
    %c0_35 = arith.constant 0 : index
    %c0_36 = arith.constant 0 : index
    %48 = vector.load %arg7[%c1, %c0_35, %c0_36] : memref<2x32x64xbf16, #tpu.memory_space<vmem>>, vector<1x32x64xbf16>
    %49 = vector.shape_cast %48 : vector<1x32x64xbf16> to vector<32x64xbf16>
    %50 = arith.truncf %47 : vector<8x32xf32> to vector<8x32xbf16>
    %cst_37 = arith.constant dense<0.000000e+00> : vector<8x64xf32>
    %51 = tpu.matmul %50, %49, %cst_37 {dimension_numbers = #tpu.dot_dimension_numbers<[1], [0], [0], [1], [0, 0, 1, 1], [], []>} : vector<8x32xbf16>, vector<32x64xbf16>, vector<8x64xf32> -> vector<8x64xf32>
    %c1_38 = arith.constant 1 : index
    %c0_39 = arith.constant 0 : index
    %c0_40 = arith.constant 0 : index
    %52 = vector.load %arg2[%c1_38, %c0_39, %c0_40] : memref<12x8x64xf32, #tpu.memory_space<vmem>>, vector<1x8x64xf32>
    %53 = vector.shape_cast %52 : vector<1x8x64xf32> to vector<8x64xf32>
    %54 = arith.addf %51, %53 : vector<8x64xf32>
    %55 = arith.negf %54 : vector<8x64xf32>
    %56 = math.exp %55 : vector<8x64xf32>
    %cst_41 = arith.constant 1.000000e+00 : f32
    %57 = vector.broadcast %cst_41 : f32 to vector<8x64xf32>
    %58 = arith.addf %57, %56 : vector<8x64xf32>
    %59 = arith.divf %57, %58 : vector<8x64xf32>
    %60 = vector.extract_strided_slice %59 {offsets = [0, 0], sizes = [8, 32], strides = [1, 1]} : vector<8x64xf32> to vector<8x32xf32>
    %cst_42 = arith.constant 8.000000e-01 : f32
    %61 = vector.broadcast %cst_42 : f32 to vector<8x32xf32>
    %62 = arith.mulf %61, %60 : vector<8x32xf32>
    %63 = vector.extract_strided_slice %59 {offsets = [0, 32], sizes = [8, 32], strides = [1, 1]} : vector<8x64xf32> to vector<8x32xf32>
    %cst_43 = arith.constant 4.000000e-01 : f32
    %64 = vector.broadcast %cst_43 : f32 to vector<8x32xf32>
    %65 = arith.mulf %64, %63 : vector<8x32xf32>
    %66 = arith.mulf %62, %47 : vector<8x32xf32>
    %c1_44 = arith.constant 1 : index
    %c0_45 = arith.constant 0 : index
    %c0_46 = arith.constant 0 : index
    %67 = vector.load %arg8[%c1_44, %c0_45, %c0_46] : memref<2x32x32xbf16, #tpu.memory_space<vmem>>, vector<1x32x32xbf16>
    %68 = vector.shape_cast %67 : vector<1x32x32xbf16> to vector<32x32xbf16>
    %69 = arith.truncf %66 : vector<8x32xf32> to vector<8x32xbf16>
    %cst_47 = arith.constant dense<0.000000e+00> : vector<8x32xf32>
    %70 = tpu.matmul %69, %68, %cst_47 {dimension_numbers = #tpu.dot_dimension_numbers<[1], [0], [0], [1], [0, 0, 1, 1], [], []>} : vector<8x32xbf16>, vector<32x32xbf16>, vector<8x32xf32> -> vector<8x32xf32>
    %c1_48 = arith.constant 1 : index
    %c0_49 = arith.constant 0 : index
    %c0_50 = arith.constant 0 : index
    %71 = vector.load %arg3[%c1_48, %c0_49, %c0_50] : memref<12x8x32xf32, #tpu.memory_space<vmem>>, vector<1x8x32xf32>
    %72 = vector.shape_cast %71 : vector<1x8x32xf32> to vector<8x32xf32>
    %73 = arith.addf %70, %72 : vector<8x32xf32>
    %74 = math.tanh %73 : vector<8x32xf32>
    %c1_51 = arith.constant 1 : index
    %c0_52 = arith.constant 0 : index
    %c0_53 = arith.constant 0 : index
    %75 = vector.load %arg4[%c1_51, %c0_52, %c0_53] : memref<12x8x32xf32, #tpu.memory_space<vmem>>, vector<1x8x32xf32>
    %76 = vector.shape_cast %75 : vector<1x8x32xf32> to vector<8x32xf32>
    %77 = arith.subf %74, %47 : vector<8x32xf32>
    %78 = arith.mulf %65, %77 : vector<8x32xf32>
    %79 = arith.mulf %76, %78 : vector<8x32xf32>
    %80 = arith.addf %47, %79 : vector<8x32xf32>
    %81 = arith.truncf %0 : vector<8x4xf32> to vector<8x4xbf16>
    %cst_54 = arith.constant dense<0.000000e+00> : vector<8x96xf32>
    %82 = tpu.matmul %81, %12, %cst_54 {dimension_numbers = #tpu.dot_dimension_numbers<[1], [0], [0], [1], [0, 0, 1, 1], [], []>} : vector<8x4xbf16>, vector<4x96xbf16>, vector<8x96xf32> -> vector<8x96xf32>
    %c0_55 = arith.constant 0 : index
    %c0_56 = arith.constant 0 : index
    %c0_57 = arith.constant 0 : index
    %83 = vector.load %arg1[%c0_55, %c0_56, %c0_57] : memref<6x8x96xf32, #tpu.memory_space<vmem>>, vector<1x8x96xf32>
    %84 = vector.shape_cast %83 : vector<1x8x96xf32> to vector<8x96xf32>
    %85 = arith.addf %82, %84 : vector<8x96xf32>
    %86 = arith.truncf %80 : vector<8x32xf32> to vector<8x32xbf16>
    %cst_58 = arith.constant dense<0.000000e+00> : vector<8x96xf32>
    %87 = tpu.matmul %86, %13, %cst_58 {dimension_numbers = #tpu.dot_dimension_numbers<[1], [0], [0], [1], [0, 0, 1, 1], [], []>} : vector<8x32xbf16>, vector<32x96xbf16>, vector<8x96xf32> -> vector<8x96xf32>
    %88 = arith.addf %87, %8 : vector<8x96xf32>
    %89 = vector.extract_strided_slice %85 {offsets = [0, 0], sizes = [8, 32], strides = [1, 1]} : vector<8x96xf32> to vector<8x32xf32>
    %90 = vector.extract_strided_slice %88 {offsets = [0, 0], sizes = [8, 32], strides = [1, 1]} : vector<8x96xf32> to vector<8x32xf32>
    %91 = arith.addf %89, %90 : vector<8x32xf32>
    %92 = arith.negf %91 : vector<8x32xf32>
    %93 = math.exp %92 : vector<8x32xf32>
    %cst_59 = arith.constant 1.000000e+00 : f32
    %94 = vector.broadcast %cst_59 : f32 to vector<8x32xf32>
    %95 = arith.addf %94, %93 : vector<8x32xf32>
    %96 = arith.divf %94, %95 : vector<8x32xf32>
    %97 = vector.extract_strided_slice %85 {offsets = [0, 32], sizes = [8, 32], strides = [1, 1]} : vector<8x96xf32> to vector<8x32xf32>
    %98 = vector.extract_strided_slice %88 {offsets = [0, 32], sizes = [8, 32], strides = [1, 1]} : vector<8x96xf32> to vector<8x32xf32>
    %99 = arith.addf %97, %98 : vector<8x32xf32>
    %100 = arith.negf %99 : vector<8x32xf32>
    %101 = math.exp %100 : vector<8x32xf32>
    %cst_60 = arith.constant 1.000000e+00 : f32
    %102 = vector.broadcast %cst_60 : f32 to vector<8x32xf32>
    %103 = arith.addf %102, %101 : vector<8x32xf32>
    %104 = arith.divf %102, %103 : vector<8x32xf32>
    %105 = vector.extract_strided_slice %85 {offsets = [0, 64], sizes = [8, 32], strides = [1, 1]} : vector<8x96xf32> to vector<8x32xf32>
    %106 = vector.extract_strided_slice %88 {offsets = [0, 64], sizes = [8, 32], strides = [1, 1]} : vector<8x96xf32> to vector<8x32xf32>
    %107 = arith.mulf %96, %106 : vector<8x32xf32>
    %108 = arith.addf %105, %107 : vector<8x32xf32>
    %109 = math.tanh %108 : vector<8x32xf32>
    %cst_61 = arith.constant 1.000000e+00 : f32
    %110 = vector.broadcast %cst_61 : f32 to vector<8x32xf32>
    %111 = arith.subf %110, %104 : vector<8x32xf32>
    %112 = arith.mulf %111, %109 : vector<8x32xf32>
    %113 = arith.mulf %104, %80 : vector<8x32xf32>
    %114 = arith.addf %112, %113 : vector<8x32xf32>
    %115 = arith.truncf %114 : vector<8x32xf32> to vector<8x32xbf16>
    %cst_62 = arith.constant dense<0.000000e+00> : vector<8x4xf32>
    %116 = tpu.matmul %115, %14, %cst_62 {dimension_numbers = #tpu.dot_dimension_numbers<[1], [0], [0], [1], [0, 0, 1, 1], [], []>} : vector<8x32xbf16>, vector<32x4xbf16>, vector<8x4xf32> -> vector<8x4xf32>
    %117 = arith.addf %116, %11 : vector<8x4xf32>
    %c0_63 = arith.constant 0 : index
    %c0_64 = arith.constant 0 : index
    %c0_65 = arith.constant 0 : index
    %118 = vector.load %arg14[%c0_63, %c0_64, %c0_65] : memref<6x8x4xf32, #tpu.memory_space<vmem>>, vector<1x8x4xf32>
    %119 = vector.shape_cast %118 : vector<1x8x4xf32> to vector<8x4xf32>
    %120 = vector.shape_cast %117 : vector<8x4xf32> to vector<1x8x4xf32>
    tpu.vector_store %arg14[%c0_63, %c0_64, %c0_65], %120 {strides = array<i32>} : memref<6x8x4xf32, #tpu.memory_space<vmem>>, vector<1x8x4xf32>,
    %c0_66 = arith.constant 0 : index
    %c0_67 = arith.constant 0 : index
    %c0_68 = arith.constant 0 : index
    %121 = vector.load %arg7[%c0_66, %c0_67, %c0_68] : memref<2x32x64xbf16, #tpu.memory_space<vmem>>, vector<1x32x64xbf16>
    %122 = vector.shape_cast %121 : vector<1x32x64xbf16> to vector<32x64xbf16>
    %123 = arith.truncf %114 : vector<8x32xf32> to vector<8x32xbf16>
    %cst_69 = arith.constant dense<0.000000e+00> : vector<8x64xf32>
    %124 = tpu.matmul %123, %122, %cst_69 {dimension_numbers = #tpu.dot_dimension_numbers<[1], [0], [0], [1], [0, 0, 1, 1], [], []>} : vector<8x32xbf16>, vector<32x64xbf16>, vector<8x64xf32> -> vector<8x64xf32>
    %c2 = arith.constant 2 : index
    %c0_70 = arith.constant 0 : index
    %c0_71 = arith.constant 0 : index
    %125 = vector.load %arg2[%c2, %c0_70, %c0_71] : memref<12x8x64xf32, #tpu.memory_space<vmem>>, vector<1x8x64xf32>
    %126 = vector.shape_cast %125 : vector<1x8x64xf32> to vector<8x64xf32>
    %127 = arith.addf %124, %126 : vector<8x64xf32>
    %128 = arith.negf %127 : vector<8x64xf32>
    %129 = math.exp %128 : vector<8x64xf32>
    %cst_72 = arith.constant 1.000000e+00 : f32
    %130 = vector.broadcast %cst_72 : f32 to vector<8x64xf32>
    %131 = arith.addf %130, %129 : vector<8x64xf32>
    %132 = arith.divf %130, %131 : vector<8x64xf32>
    %133 = vector.extract_strided_slice %132 {offsets = [0, 0], sizes = [8, 32], strides = [1, 1]} : vector<8x64xf32> to vector<8x32xf32>
    %cst_73 = arith.constant 8.000000e-01 : f32
    %134 = vector.broadcast %cst_73 : f32 to vector<8x32xf32>
    %135 = arith.mulf %134, %133 : vector<8x32xf32>
    %136 = vector.extract_strided_slice %132 {offsets = [0, 32], sizes = [8, 32], strides = [1, 1]} : vector<8x64xf32> to vector<8x32xf32>
    %cst_74 = arith.constant 4.000000e-01 : f32
    %137 = vector.broadcast %cst_74 : f32 to vector<8x32xf32>
    %138 = arith.mulf %137, %136 : vector<8x32xf32>
    %139 = arith.mulf %135, %114 : vector<8x32xf32>
    %c0_75 = arith.constant 0 : index
    %c0_76 = arith.constant 0 : index
    %c0_77 = arith.constant 0 : index
    %140 = vector.load %arg8[%c0_75, %c0_76, %c0_77] : memref<2x32x32xbf16, #tpu.memory_space<vmem>>, vector<1x32x32xbf16>
    %141 = vector.shape_cast %140 : vector<1x32x32xbf16> to vector<32x32xbf16>
    %142 = arith.truncf %139 : vector<8x32xf32> to vector<8x32xbf16>
    %cst_78 = arith.constant dense<0.000000e+00> : vector<8x32xf32>
    %143 = tpu.matmul %142, %141, %cst_78 {dimension_numbers = #tpu.dot_dimension_numbers<[1], [0], [0], [1], [0, 0, 1, 1], [], []>} : vector<8x32xbf16>, vector<32x32xbf16>, vector<8x32xf32> -> vector<8x32xf32>
    %c2_79 = arith.constant 2 : index
    %c0_80 = arith.constant 0 : index
    %c0_81 = arith.constant 0 : index
    %144 = vector.load %arg3[%c2_79, %c0_80, %c0_81] : memref<12x8x32xf32, #tpu.memory_space<vmem>>, vector<1x8x32xf32>
    %145 = vector.shape_cast %144 : vector<1x8x32xf32> to vector<8x32xf32>
    %146 = arith.addf %143, %145 : vector<8x32xf32>
    %147 = math.tanh %146 : vector<8x32xf32>
    %c2_82 = arith.constant 2 : index
    %c0_83 = arith.constant 0 : index
    %c0_84 = arith.constant 0 : index
    %148 = vector.load %arg4[%c2_82, %c0_83, %c0_84] : memref<12x8x32xf32, #tpu.memory_space<vmem>>, vector<1x8x32xf32>
    %149 = vector.shape_cast %148 : vector<1x8x32xf32> to vector<8x32xf32>
    %150 = arith.subf %147, %114 : vector<8x32xf32>
    %151 = arith.mulf %138, %150 : vector<8x32xf32>
    %152 = arith.mulf %149, %151 : vector<8x32xf32>
    %153 = arith.addf %114, %152 : vector<8x32xf32>
    %c1_85 = arith.constant 1 : index
    %c0_86 = arith.constant 0 : index
    %c0_87 = arith.constant 0 : index
    %154 = vector.load %arg7[%c1_85, %c0_86, %c0_87] : memref<2x32x64xbf16, #tpu.memory_space<vmem>>, vector<1x32x64xbf16>
    %155 = vector.shape_cast %154 : vector<1x32x64xbf16> to vector<32x64xbf16>
    %156 = arith.truncf %153 : vector<8x32xf32> to vector<8x32xbf16>
    %cst_88 = arith.constant dense<0.000000e+00> : vector<8x64xf32>
    %157 = tpu.matmul %156, %155, %cst_88 {dimension_numbers = #tpu.dot_dimension_numbers<[1], [0], [0], [1], [0, 0, 1, 1], [], []>} : vector<8x32xbf16>, vector<32x64xbf16>, vector<8x64xf32> -> vector<8x64xf32>
    %c3 = arith.constant 3 : index
    %c0_89 = arith.constant 0 : index
    %c0_90 = arith.constant 0 : index
    %158 = vector.load %arg2[%c3, %c0_89, %c0_90] : memref<12x8x64xf32, #tpu.memory_space<vmem>>, vector<1x8x64xf32>
    %159 = vector.shape_cast %158 : vector<1x8x64xf32> to vector<8x64xf32>
    %160 = arith.addf %157, %159 : vector<8x64xf32>
    %161 = arith.negf %160 : vector<8x64xf32>
    %162 = math.exp %161 : vector<8x64xf32>
    %cst_91 = arith.constant 1.000000e+00 : f32
    %163 = vector.broadcast %cst_91 : f32 to vector<8x64xf32>
    %164 = arith.addf %163, %162 : vector<8x64xf32>
    %165 = arith.divf %163, %164 : vector<8x64xf32>
    %166 = vector.extract_strided_slice %165 {offsets = [0, 0], sizes = [8, 32], strides = [1, 1]} : vector<8x64xf32> to vector<8x32xf32>
    %cst_92 = arith.constant 8.000000e-01 : f32
    %167 = vector.broadcast %cst_92 : f32 to vector<8x32xf32>
    %168 = arith.mulf %167, %166 : vector<8x32xf32>
    %169 = vector.extract_strided_slice %165 {offsets = [0, 32], sizes = [8, 32], strides = [1, 1]} : vector<8x64xf32> to vector<8x32xf32>
    %cst_93 = arith.constant 4.000000e-01 : f32
    %170 = vector.broadcast %cst_93 : f32 to vector<8x32xf32>
    %171 = arith.mulf %170, %169 : vector<8x32xf32>
    %172 = arith.mulf %168, %153 : vector<8x32xf32>
    %c1_94 = arith.constant 1 : index
    %c0_95 = arith.constant 0 : index
    %c0_96 = arith.constant 0 : index
    %173 = vector.load %arg8[%c1_94, %c0_95, %c0_96] : memref<2x32x32xbf16, #tpu.memory_space<vmem>>, vector<1x32x32xbf16>
    %174 = vector.shape_cast %173 : vector<1x32x32xbf16> to vector<32x32xbf16>
    %175 = arith.truncf %172 : vector<8x32xf32> to vector<8x32xbf16>
    %cst_97 = arith.constant dense<0.000000e+00> : vector<8x32xf32>
    %176 = tpu.matmul %175, %174, %cst_97 {dimension_numbers = #tpu.dot_dimension_numbers<[1], [0], [0], [1], [0, 0, 1, 1], [], []>} : vector<8x32xbf16>, vector<32x32xbf16>, vector<8x32xf32> -> vector<8x32xf32>
    %c3_98 = arith.constant 3 : index
    %c0_99 = arith.constant 0 : index
    %c0_100 = arith.constant 0 : index
    %177 = vector.load %arg3[%c3_98, %c0_99, %c0_100] : memref<12x8x32xf32, #tpu.memory_space<vmem>>, vector<1x8x32xf32>
    %178 = vector.shape_cast %177 : vector<1x8x32xf32> to vector<8x32xf32>
    %179 = arith.addf %176, %178 : vector<8x32xf32>
    %180 = math.tanh %179 : vector<8x32xf32>
    %c3_101 = arith.constant 3 : index
    %c0_102 = arith.constant 0 : index
    %c0_103 = arith.constant 0 : index
    %181 = vector.load %arg4[%c3_101, %c0_102, %c0_103] : memref<12x8x32xf32, #tpu.memory_space<vmem>>, vector<1x8x32xf32>
    %182 = vector.shape_cast %181 : vector<1x8x32xf32> to vector<8x32xf32>
    %183 = arith.subf %180, %153 : vector<8x32xf32>
    %184 = arith.mulf %171, %183 : vector<8x32xf32>
    %185 = arith.mulf %182, %184 : vector<8x32xf32>
    %186 = arith.addf %153, %185 : vector<8x32xf32>
    %187 = arith.truncf %117 : vector<8x4xf32> to vector<8x4xbf16>
    %cst_104 = arith.constant dense<0.000000e+00> : vector<8x96xf32>
    %188 = tpu.matmul %187, %12, %cst_104 {dimension_numbers = #tpu.dot_dimension_numbers<[1], [0], [0], [1], [0, 0, 1, 1], [], []>} : vector<8x4xbf16>, vector<4x96xbf16>, vector<8x96xf32> -> vector<8x96xf32>
    %c1_105 = arith.constant 1 : index
    %c0_106 = arith.constant 0 : index
    %c0_107 = arith.constant 0 : index
    %189 = vector.load %arg1[%c1_105, %c0_106, %c0_107] : memref<6x8x96xf32, #tpu.memory_space<vmem>>, vector<1x8x96xf32>
    %190 = vector.shape_cast %189 : vector<1x8x96xf32> to vector<8x96xf32>
    %191 = arith.addf %188, %190 : vector<8x96xf32>
    %192 = arith.truncf %186 : vector<8x32xf32> to vector<8x32xbf16>
    %cst_108 = arith.constant dense<0.000000e+00> : vector<8x96xf32>
    %193 = tpu.matmul %192, %13, %cst_108 {dimension_numbers = #tpu.dot_dimension_numbers<[1], [0], [0], [1], [0, 0, 1, 1], [], []>} : vector<8x32xbf16>, vector<32x96xbf16>, vector<8x96xf32> -> vector<8x96xf32>
    %194 = arith.addf %193, %8 : vector<8x96xf32>
    %195 = vector.extract_strided_slice %191 {offsets = [0, 0], sizes = [8, 32], strides = [1, 1]} : vector<8x96xf32> to vector<8x32xf32>
    %196 = vector.extract_strided_slice %194 {offsets = [0, 0], sizes = [8, 32], strides = [1, 1]} : vector<8x96xf32> to vector<8x32xf32>
    %197 = arith.addf %195, %196 : vector<8x32xf32>
    %198 = arith.negf %197 : vector<8x32xf32>
    %199 = math.exp %198 : vector<8x32xf32>
    %cst_109 = arith.constant 1.000000e+00 : f32
    %200 = vector.broadcast %cst_109 : f32 to vector<8x32xf32>
    %201 = arith.addf %200, %199 : vector<8x32xf32>
    %202 = arith.divf %200, %201 : vector<8x32xf32>
    %203 = vector.extract_strided_slice %191 {offsets = [0, 32], sizes = [8, 32], strides = [1, 1]} : vector<8x96xf32> to vector<8x32xf32>
    %204 = vector.extract_strided_slice %194 {offsets = [0, 32], sizes = [8, 32], strides = [1, 1]} : vector<8x96xf32> to vector<8x32xf32>
    %205 = arith.addf %203, %204 : vector<8x32xf32>
    %206 = arith.negf %205 : vector<8x32xf32>
    %207 = math.exp %206 : vector<8x32xf32>
    %cst_110 = arith.constant 1.000000e+00 : f32
    %208 = vector.broadcast %cst_110 : f32 to vector<8x32xf32>
    %209 = arith.addf %208, %207 : vector<8x32xf32>
    %210 = arith.divf %208, %209 : vector<8x32xf32>
    %211 = vector.extract_strided_slice %191 {offsets = [0, 64], sizes = [8, 32], strides = [1, 1]} : vector<8x96xf32> to vector<8x32xf32>
    %212 = vector.extract_strided_slice %194 {offsets = [0, 64], sizes = [8, 32], strides = [1, 1]} : vector<8x96xf32> to vector<8x32xf32>
    %213 = arith.mulf %202, %212 : vector<8x32xf32>
    %214 = arith.addf %211, %213 : vector<8x32xf32>
    %215 = math.tanh %214 : vector<8x32xf32>
    %cst_111 = arith.constant 1.000000e+00 : f32
    %216 = vector.broadcast %cst_111 : f32 to vector<8x32xf32>
    %217 = arith.subf %216, %210 : vector<8x32xf32>
    %218 = arith.mulf %217, %215 : vector<8x32xf32>
    %219 = arith.mulf %210, %186 : vector<8x32xf32>
    %220 = arith.addf %218, %219 : vector<8x32xf32>
    %221 = arith.truncf %220 : vector<8x32xf32> to vector<8x32xbf16>
    %cst_112 = arith.constant dense<0.000000e+00> : vector<8x4xf32>
    %222 = tpu.matmul %221, %14, %cst_112 {dimension_numbers = #tpu.dot_dimension_numbers<[1], [0], [0], [1], [0, 0, 1, 1], [], []>} : vector<8x32xbf16>, vector<32x4xbf16>, vector<8x4xf32> -> vector<8x4xf32>
    %223 = arith.addf %222, %11 : vector<8x4xf32>
    %c1_113 = arith.constant 1 : index
    %c0_114 = arith.constant 0 : index
    %c0_115 = arith.constant 0 : index
    %224 = vector.load %arg14[%c1_113, %c0_114, %c0_115] : memref<6x8x4xf32, #tpu.memory_space<vmem>>, vector<1x8x4xf32>
    %225 = vector.shape_cast %224 : vector<1x8x4xf32> to vector<8x4xf32>
    %226 = vector.shape_cast %223 : vector<8x4xf32> to vector<1x8x4xf32>
    tpu.vector_store %arg14[%c1_113, %c0_114, %c0_115], %226 {strides = array<i32>} : memref<6x8x4xf32, #tpu.memory_space<vmem>>, vector<1x8x4xf32>,
    %c0_116 = arith.constant 0 : index
    %c0_117 = arith.constant 0 : index
    %c0_118 = arith.constant 0 : index
    %227 = vector.load %arg7[%c0_116, %c0_117, %c0_118] : memref<2x32x64xbf16, #tpu.memory_space<vmem>>, vector<1x32x64xbf16>
    %228 = vector.shape_cast %227 : vector<1x32x64xbf16> to vector<32x64xbf16>
    %229 = arith.truncf %220 : vector<8x32xf32> to vector<8x32xbf16>
    %cst_119 = arith.constant dense<0.000000e+00> : vector<8x64xf32>
    %230 = tpu.matmul %229, %228, %cst_119 {dimension_numbers = #tpu.dot_dimension_numbers<[1], [0], [0], [1], [0, 0, 1, 1], [], []>} : vector<8x32xbf16>, vector<32x64xbf16>, vector<8x64xf32> -> vector<8x64xf32>
    %c4 = arith.constant 4 : index
    %c0_120 = arith.constant 0 : index
    %c0_121 = arith.constant 0 : index
    %231 = vector.load %arg2[%c4, %c0_120, %c0_121] : memref<12x8x64xf32, #tpu.memory_space<vmem>>, vector<1x8x64xf32>
    %232 = vector.shape_cast %231 : vector<1x8x64xf32> to vector<8x64xf32>
    %233 = arith.addf %230, %232 : vector<8x64xf32>
    %234 = arith.negf %233 : vector<8x64xf32>
    %235 = math.exp %234 : vector<8x64xf32>
    %cst_122 = arith.constant 1.000000e+00 : f32
    %236 = vector.broadcast %cst_122 : f32 to vector<8x64xf32>
    %237 = arith.addf %236, %235 : vector<8x64xf32>
    %238 = arith.divf %236, %237 : vector<8x64xf32>
    %239 = vector.extract_strided_slice %238 {offsets = [0, 0], sizes = [8, 32], strides = [1, 1]} : vector<8x64xf32> to vector<8x32xf32>
    %cst_123 = arith.constant 8.000000e-01 : f32
    %240 = vector.broadcast %cst_123 : f32 to vector<8x32xf32>
    %241 = arith.mulf %240, %239 : vector<8x32xf32>
    %242 = vector.extract_strided_slice %238 {offsets = [0, 32], sizes = [8, 32], strides = [1, 1]} : vector<8x64xf32> to vector<8x32xf32>
    %cst_124 = arith.constant 4.000000e-01 : f32
    %243 = vector.broadcast %cst_124 : f32 to vector<8x32xf32>
    %244 = arith.mulf %243, %242 : vector<8x32xf32>
    %245 = arith.mulf %241, %220 : vector<8x32xf32>
    %c0_125 = arith.constant 0 : index
    %c0_126 = arith.constant 0 : index
    %c0_127 = arith.constant 0 : index
    %246 = vector.load %arg8[%c0_125, %c0_126, %c0_127] : memref<2x32x32xbf16, #tpu.memory_space<vmem>>, vector<1x32x32xbf16>
    %247 = vector.shape_cast %246 : vector<1x32x32xbf16> to vector<32x32xbf16>
    %248 = arith.truncf %245 : vector<8x32xf32> to vector<8x32xbf16>
    %cst_128 = arith.constant dense<0.000000e+00> : vector<8x32xf32>
    %249 = tpu.matmul %248, %247, %cst_128 {dimension_numbers = #tpu.dot_dimension_numbers<[1], [0], [0], [1], [0, 0, 1, 1], [], []>} : vector<8x32xbf16>, vector<32x32xbf16>, vector<8x32xf32> -> vector<8x32xf32>
    %c4_129 = arith.constant 4 : index
    %c0_130 = arith.constant 0 : index
    %c0_131 = arith.constant 0 : index
    %250 = vector.load %arg3[%c4_129, %c0_130, %c0_131] : memref<12x8x32xf32, #tpu.memory_space<vmem>>, vector<1x8x32xf32>
    %251 = vector.shape_cast %250 : vector<1x8x32xf32> to vector<8x32xf32>
    %252 = arith.addf %249, %251 : vector<8x32xf32>
    %253 = math.tanh %252 : vector<8x32xf32>
    %c4_132 = arith.constant 4 : index
    %c0_133 = arith.constant 0 : index
    %c0_134 = arith.constant 0 : index
    %254 = vector.load %arg4[%c4_132, %c0_133, %c0_134] : memref<12x8x32xf32, #tpu.memory_space<vmem>>, vector<1x8x32xf32>
    %255 = vector.shape_cast %254 : vector<1x8x32xf32> to vector<8x32xf32>
    %256 = arith.subf %253, %220 : vector<8x32xf32>
    %257 = arith.mulf %244, %256 : vector<8x32xf32>
    %258 = arith.mulf %255, %257 : vector<8x32xf32>
    %259 = arith.addf %220, %258 : vector<8x32xf32>
    %c1_135 = arith.constant 1 : index
    %c0_136 = arith.constant 0 : index
    %c0_137 = arith.constant 0 : index
    %260 = vector.load %arg7[%c1_135, %c0_136, %c0_137] : memref<2x32x64xbf16, #tpu.memory_space<vmem>>, vector<1x32x64xbf16>
    %261 = vector.shape_cast %260 : vector<1x32x64xbf16> to vector<32x64xbf16>
    %262 = arith.truncf %259 : vector<8x32xf32> to vector<8x32xbf16>
    %cst_138 = arith.constant dense<0.000000e+00> : vector<8x64xf32>
    %263 = tpu.matmul %262, %261, %cst_138 {dimension_numbers = #tpu.dot_dimension_numbers<[1], [0], [0], [1], [0, 0, 1, 1], [], []>} : vector<8x32xbf16>, vector<32x64xbf16>, vector<8x64xf32> -> vector<8x64xf32>
    %c5 = arith.constant 5 : index
    %c0_139 = arith.constant 0 : index
    %c0_140 = arith.constant 0 : index
    %264 = vector.load %arg2[%c5, %c0_139, %c0_140] : memref<12x8x64xf32, #tpu.memory_space<vmem>>, vector<1x8x64xf32>
    %265 = vector.shape_cast %264 : vector<1x8x64xf32> to vector<8x64xf32>
    %266 = arith.addf %263, %265 : vector<8x64xf32>
    %267 = arith.negf %266 : vector<8x64xf32>
    %268 = math.exp %267 : vector<8x64xf32>
    %cst_141 = arith.constant 1.000000e+00 : f32
    %269 = vector.broadcast %cst_141 : f32 to vector<8x64xf32>
    %270 = arith.addf %269, %268 : vector<8x64xf32>
    %271 = arith.divf %269, %270 : vector<8x64xf32>
    %272 = vector.extract_strided_slice %271 {offsets = [0, 0], sizes = [8, 32], strides = [1, 1]} : vector<8x64xf32> to vector<8x32xf32>
    %cst_142 = arith.constant 8.000000e-01 : f32
    %273 = vector.broadcast %cst_142 : f32 to vector<8x32xf32>
    %274 = arith.mulf %273, %272 : vector<8x32xf32>
    %275 = vector.extract_strided_slice %271 {offsets = [0, 32], sizes = [8, 32], strides = [1, 1]} : vector<8x64xf32> to vector<8x32xf32>
    %cst_143 = arith.constant 4.000000e-01 : f32
    %276 = vector.broadcast %cst_143 : f32 to vector<8x32xf32>
    %277 = arith.mulf %276, %275 : vector<8x32xf32>
    %278 = arith.mulf %274, %259 : vector<8x32xf32>
    %c1_144 = arith.constant 1 : index
    %c0_145 = arith.constant 0 : index
    %c0_146 = arith.constant 0 : index
    %279 = vector.load %arg8[%c1_144, %c0_145, %c0_146] : memref<2x32x32xbf16, #tpu.memory_space<vmem>>, vector<1x32x32xbf16>
    %280 = vector.shape_cast %279 : vector<1x32x32xbf16> to vector<32x32xbf16>
    %281 = arith.truncf %278 : vector<8x32xf32> to vector<8x32xbf16>
    %cst_147 = arith.constant dense<0.000000e+00> : vector<8x32xf32>
    %282 = tpu.matmul %281, %280, %cst_147 {dimension_numbers = #tpu.dot_dimension_numbers<[1], [0], [0], [1], [0, 0, 1, 1], [], []>} : vector<8x32xbf16>, vector<32x32xbf16>, vector<8x32xf32> -> vector<8x32xf32>
    %c5_148 = arith.constant 5 : index
    %c0_149 = arith.constant 0 : index
    %c0_150 = arith.constant 0 : index
    %283 = vector.load %arg3[%c5_148, %c0_149, %c0_150] : memref<12x8x32xf32, #tpu.memory_space<vmem>>, vector<1x8x32xf32>
    %284 = vector.shape_cast %283 : vector<1x8x32xf32> to vector<8x32xf32>
    %285 = arith.addf %282, %284 : vector<8x32xf32>
    %286 = math.tanh %285 : vector<8x32xf32>
    %c5_151 = arith.constant 5 : index
    %c0_152 = arith.constant 0 : index
    %c0_153 = arith.constant 0 : index
    %287 = vector.load %arg4[%c5_151, %c0_152, %c0_153] : memref<12x8x32xf32, #tpu.memory_space<vmem>>, vector<1x8x32xf32>
    %288 = vector.shape_cast %287 : vector<1x8x32xf32> to vector<8x32xf32>
    %289 = arith.subf %286, %259 : vector<8x32xf32>
    %290 = arith.mulf %277, %289 : vector<8x32xf32>
    %291 = arith.mulf %288, %290 : vector<8x32xf32>
    %292 = arith.addf %259, %291 : vector<8x32xf32>
    %293 = arith.truncf %223 : vector<8x4xf32> to vector<8x4xbf16>
    %cst_154 = arith.constant dense<0.000000e+00> : vector<8x96xf32>
    %294 = tpu.matmul %293, %12, %cst_154 {dimension_numbers = #tpu.dot_dimension_numbers<[1], [0], [0], [1], [0, 0, 1, 1], [], []>} : vector<8x4xbf16>, vector<4x96xbf16>, vector<8x96xf32> -> vector<8x96xf32>
    %c2_155 = arith.constant 2 : index
    %c0_156 = arith.constant 0 : index
    %c0_157 = arith.constant 0 : index
    %295 = vector.load %arg1[%c2_155, %c0_156, %c0_157] : memref<6x8x96xf32, #tpu.memory_space<vmem>>, vector<1x8x96xf32>
    %296 = vector.shape_cast %295 : vector<1x8x96xf32> to vector<8x96xf32>
    %297 = arith.addf %294, %296 : vector<8x96xf32>
    %298 = arith.truncf %292 : vector<8x32xf32> to vector<8x32xbf16>
    %cst_158 = arith.constant dense<0.000000e+00> : vector<8x96xf32>
    %299 = tpu.matmul %298, %13, %cst_158 {dimension_numbers = #tpu.dot_dimension_numbers<[1], [0], [0], [1], [0, 0, 1, 1], [], []>} : vector<8x32xbf16>, vector<32x96xbf16>, vector<8x96xf32> -> vector<8x96xf32>
    %300 = arith.addf %299, %8 : vector<8x96xf32>
    %301 = vector.extract_strided_slice %297 {offsets = [0, 0], sizes = [8, 32], strides = [1, 1]} : vector<8x96xf32> to vector<8x32xf32>
    %302 = vector.extract_strided_slice %300 {offsets = [0, 0], sizes = [8, 32], strides = [1, 1]} : vector<8x96xf32> to vector<8x32xf32>
    %303 = arith.addf %301, %302 : vector<8x32xf32>
    %304 = arith.negf %303 : vector<8x32xf32>
    %305 = math.exp %304 : vector<8x32xf32>
    %cst_159 = arith.constant 1.000000e+00 : f32
    %306 = vector.broadcast %cst_159 : f32 to vector<8x32xf32>
    %307 = arith.addf %306, %305 : vector<8x32xf32>
    %308 = arith.divf %306, %307 : vector<8x32xf32>
    %309 = vector.extract_strided_slice %297 {offsets = [0, 32], sizes = [8, 32], strides = [1, 1]} : vector<8x96xf32> to vector<8x32xf32>
    %310 = vector.extract_strided_slice %300 {offsets = [0, 32], sizes = [8, 32], strides = [1, 1]} : vector<8x96xf32> to vector<8x32xf32>
    %311 = arith.addf %309, %310 : vector<8x32xf32>
    %312 = arith.negf %311 : vector<8x32xf32>
    %313 = math.exp %312 : vector<8x32xf32>
    %cst_160 = arith.constant 1.000000e+00 : f32
    %314 = vector.broadcast %cst_160 : f32 to vector<8x32xf32>
    %315 = arith.addf %314, %313 : vector<8x32xf32>
    %316 = arith.divf %314, %315 : vector<8x32xf32>
    %317 = vector.extract_strided_slice %297 {offsets = [0, 64], sizes = [8, 32], strides = [1, 1]} : vector<8x96xf32> to vector<8x32xf32>
    %318 = vector.extract_strided_slice %300 {offsets = [0, 64], sizes = [8, 32], strides = [1, 1]} : vector<8x96xf32> to vector<8x32xf32>
    %319 = arith.mulf %308, %318 : vector<8x32xf32>
    %320 = arith.addf %317, %319 : vector<8x32xf32>
    %321 = math.tanh %320 : vector<8x32xf32>
    %cst_161 = arith.constant 1.000000e+00 : f32
    %322 = vector.broadcast %cst_161 : f32 to vector<8x32xf32>
    %323 = arith.subf %322, %316 : vector<8x32xf32>
    %324 = arith.mulf %323, %321 : vector<8x32xf32>
    %325 = arith.mulf %316, %292 : vector<8x32xf32>
    %326 = arith.addf %324, %325 : vector<8x32xf32>
    %327 = arith.truncf %326 : vector<8x32xf32> to vector<8x32xbf16>
    %cst_162 = arith.constant dense<0.000000e+00> : vector<8x4xf32>
    %328 = tpu.matmul %327, %14, %cst_162 {dimension_numbers = #tpu.dot_dimension_numbers<[1], [0], [0], [1], [0, 0, 1, 1], [], []>} : vector<8x32xbf16>, vector<32x4xbf16>, vector<8x4xf32> -> vector<8x4xf32>
    %329 = arith.addf %328, %11 : vector<8x4xf32>
    %c2_163 = arith.constant 2 : index
    %c0_164 = arith.constant 0 : index
    %c0_165 = arith.constant 0 : index
    %330 = vector.load %arg14[%c2_163, %c0_164, %c0_165] : memref<6x8x4xf32, #tpu.memory_space<vmem>>, vector<1x8x4xf32>
    %331 = vector.shape_cast %330 : vector<1x8x4xf32> to vector<8x4xf32>
    %332 = vector.shape_cast %329 : vector<8x4xf32> to vector<1x8x4xf32>
    tpu.vector_store %arg14[%c2_163, %c0_164, %c0_165], %332 {strides = array<i32>} : memref<6x8x4xf32, #tpu.memory_space<vmem>>, vector<1x8x4xf32>,
    %c0_166 = arith.constant 0 : index
    %c0_167 = arith.constant 0 : index
    %c0_168 = arith.constant 0 : index
    %333 = vector.load %arg7[%c0_166, %c0_167, %c0_168] : memref<2x32x64xbf16, #tpu.memory_space<vmem>>, vector<1x32x64xbf16>
    %334 = vector.shape_cast %333 : vector<1x32x64xbf16> to vector<32x64xbf16>
    %335 = arith.truncf %326 : vector<8x32xf32> to vector<8x32xbf16>
    %cst_169 = arith.constant dense<0.000000e+00> : vector<8x64xf32>
    %336 = tpu.matmul %335, %334, %cst_169 {dimension_numbers = #tpu.dot_dimension_numbers<[1], [0], [0], [1], [0, 0, 1, 1], [], []>} : vector<8x32xbf16>, vector<32x64xbf16>, vector<8x64xf32> -> vector<8x64xf32>
    %c6 = arith.constant 6 : index
    %c0_170 = arith.constant 0 : index
    %c0_171 = arith.constant 0 : index
    %337 = vector.load %arg2[%c6, %c0_170, %c0_171] : memref<12x8x64xf32, #tpu.memory_space<vmem>>, vector<1x8x64xf32>
    %338 = vector.shape_cast %337 : vector<1x8x64xf32> to vector<8x64xf32>
    %339 = arith.addf %336, %338 : vector<8x64xf32>
    %340 = arith.negf %339 : vector<8x64xf32>
    %341 = math.exp %340 : vector<8x64xf32>
    %cst_172 = arith.constant 1.000000e+00 : f32
    %342 = vector.broadcast %cst_172 : f32 to vector<8x64xf32>
    %343 = arith.addf %342, %341 : vector<8x64xf32>
    %344 = arith.divf %342, %343 : vector<8x64xf32>
    %345 = vector.extract_strided_slice %344 {offsets = [0, 0], sizes = [8, 32], strides = [1, 1]} : vector<8x64xf32> to vector<8x32xf32>
    %cst_173 = arith.constant 8.000000e-01 : f32
    %346 = vector.broadcast %cst_173 : f32 to vector<8x32xf32>
    %347 = arith.mulf %346, %345 : vector<8x32xf32>
    %348 = vector.extract_strided_slice %344 {offsets = [0, 32], sizes = [8, 32], strides = [1, 1]} : vector<8x64xf32> to vector<8x32xf32>
    %cst_174 = arith.constant 4.000000e-01 : f32
    %349 = vector.broadcast %cst_174 : f32 to vector<8x32xf32>
    %350 = arith.mulf %349, %348 : vector<8x32xf32>
    %351 = arith.mulf %347, %326 : vector<8x32xf32>
    %c0_175 = arith.constant 0 : index
    %c0_176 = arith.constant 0 : index
    %c0_177 = arith.constant 0 : index
    %352 = vector.load %arg8[%c0_175, %c0_176, %c0_177] : memref<2x32x32xbf16, #tpu.memory_space<vmem>>, vector<1x32x32xbf16>
    %353 = vector.shape_cast %352 : vector<1x32x32xbf16> to vector<32x32xbf16>
    %354 = arith.truncf %351 : vector<8x32xf32> to vector<8x32xbf16>
    %cst_178 = arith.constant dense<0.000000e+00> : vector<8x32xf32>
    %355 = tpu.matmul %354, %353, %cst_178 {dimension_numbers = #tpu.dot_dimension_numbers<[1], [0], [0], [1], [0, 0, 1, 1], [], []>} : vector<8x32xbf16>, vector<32x32xbf16>, vector<8x32xf32> -> vector<8x32xf32>
    %c6_179 = arith.constant 6 : index
    %c0_180 = arith.constant 0 : index
    %c0_181 = arith.constant 0 : index
    %356 = vector.load %arg3[%c6_179, %c0_180, %c0_181] : memref<12x8x32xf32, #tpu.memory_space<vmem>>, vector<1x8x32xf32>
    %357 = vector.shape_cast %356 : vector<1x8x32xf32> to vector<8x32xf32>
    %358 = arith.addf %355, %357 : vector<8x32xf32>
    %359 = math.tanh %358 : vector<8x32xf32>
    %c6_182 = arith.constant 6 : index
    %c0_183 = arith.constant 0 : index
    %c0_184 = arith.constant 0 : index
    %360 = vector.load %arg4[%c6_182, %c0_183, %c0_184] : memref<12x8x32xf32, #tpu.memory_space<vmem>>, vector<1x8x32xf32>
    %361 = vector.shape_cast %360 : vector<1x8x32xf32> to vector<8x32xf32>
    %362 = arith.subf %359, %326 : vector<8x32xf32>
    %363 = arith.mulf %350, %362 : vector<8x32xf32>
    %364 = arith.mulf %361, %363 : vector<8x32xf32>
    %365 = arith.addf %326, %364 : vector<8x32xf32>
    %c1_185 = arith.constant 1 : index
    %c0_186 = arith.constant 0 : index
    %c0_187 = arith.constant 0 : index
    %366 = vector.load %arg7[%c1_185, %c0_186, %c0_187] : memref<2x32x64xbf16, #tpu.memory_space<vmem>>, vector<1x32x64xbf16>
    %367 = vector.shape_cast %366 : vector<1x32x64xbf16> to vector<32x64xbf16>
    %368 = arith.truncf %365 : vector<8x32xf32> to vector<8x32xbf16>
    %cst_188 = arith.constant dense<0.000000e+00> : vector<8x64xf32>
    %369 = tpu.matmul %368, %367, %cst_188 {dimension_numbers = #tpu.dot_dimension_numbers<[1], [0], [0], [1], [0, 0, 1, 1], [], []>} : vector<8x32xbf16>, vector<32x64xbf16>, vector<8x64xf32> -> vector<8x64xf32>
    %c7 = arith.constant 7 : index
    %c0_189 = arith.constant 0 : index
    %c0_190 = arith.constant 0 : index
    %370 = vector.load %arg2[%c7, %c0_189, %c0_190] : memref<12x8x64xf32, #tpu.memory_space<vmem>>, vector<1x8x64xf32>
    %371 = vector.shape_cast %370 : vector<1x8x64xf32> to vector<8x64xf32>
    %372 = arith.addf %369, %371 : vector<8x64xf32>
    %373 = arith.negf %372 : vector<8x64xf32>
    %374 = math.exp %373 : vector<8x64xf32>
    %cst_191 = arith.constant 1.000000e+00 : f32
    %375 = vector.broadcast %cst_191 : f32 to vector<8x64xf32>
    %376 = arith.addf %375, %374 : vector<8x64xf32>
    %377 = arith.divf %375, %376 : vector<8x64xf32>
    %378 = vector.extract_strided_slice %377 {offsets = [0, 0], sizes = [8, 32], strides = [1, 1]} : vector<8x64xf32> to vector<8x32xf32>
    %cst_192 = arith.constant 8.000000e-01 : f32
    %379 = vector.broadcast %cst_192 : f32 to vector<8x32xf32>
    %380 = arith.mulf %379, %378 : vector<8x32xf32>
    %381 = vector.extract_strided_slice %377 {offsets = [0, 32], sizes = [8, 32], strides = [1, 1]} : vector<8x64xf32> to vector<8x32xf32>
    %cst_193 = arith.constant 4.000000e-01 : f32
    %382 = vector.broadcast %cst_193 : f32 to vector<8x32xf32>
    %383 = arith.mulf %382, %381 : vector<8x32xf32>
    %384 = arith.mulf %380, %365 : vector<8x32xf32>
    %c1_194 = arith.constant 1 : index
    %c0_195 = arith.constant 0 : index
    %c0_196 = arith.constant 0 : index
    %385 = vector.load %arg8[%c1_194, %c0_195, %c0_196] : memref<2x32x32xbf16, #tpu.memory_space<vmem>>, vector<1x32x32xbf16>
    %386 = vector.shape_cast %385 : vector<1x32x32xbf16> to vector<32x32xbf16>
    %387 = arith.truncf %384 : vector<8x32xf32> to vector<8x32xbf16>
    %cst_197 = arith.constant dense<0.000000e+00> : vector<8x32xf32>
    %388 = tpu.matmul %387, %386, %cst_197 {dimension_numbers = #tpu.dot_dimension_numbers<[1], [0], [0], [1], [0, 0, 1, 1], [], []>} : vector<8x32xbf16>, vector<32x32xbf16>, vector<8x32xf32> -> vector<8x32xf32>
    %c7_198 = arith.constant 7 : index
    %c0_199 = arith.constant 0 : index
    %c0_200 = arith.constant 0 : index
    %389 = vector.load %arg3[%c7_198, %c0_199, %c0_200] : memref<12x8x32xf32, #tpu.memory_space<vmem>>, vector<1x8x32xf32>
    %390 = vector.shape_cast %389 : vector<1x8x32xf32> to vector<8x32xf32>
    %391 = arith.addf %388, %390 : vector<8x32xf32>
    %392 = math.tanh %391 : vector<8x32xf32>
    %c7_201 = arith.constant 7 : index
    %c0_202 = arith.constant 0 : index
    %c0_203 = arith.constant 0 : index
    %393 = vector.load %arg4[%c7_201, %c0_202, %c0_203] : memref<12x8x32xf32, #tpu.memory_space<vmem>>, vector<1x8x32xf32>
    %394 = vector.shape_cast %393 : vector<1x8x32xf32> to vector<8x32xf32>
    %395 = arith.subf %392, %365 : vector<8x32xf32>
    %396 = arith.mulf %383, %395 : vector<8x32xf32>
    %397 = arith.mulf %394, %396 : vector<8x32xf32>
    %398 = arith.addf %365, %397 : vector<8x32xf32>
    %399 = arith.truncf %329 : vector<8x4xf32> to vector<8x4xbf16>
    %cst_204 = arith.constant dense<0.000000e+00> : vector<8x96xf32>
    %400 = tpu.matmul %399, %12, %cst_204 {dimension_numbers = #tpu.dot_dimension_numbers<[1], [0], [0], [1], [0, 0, 1, 1], [], []>} : vector<8x4xbf16>, vector<4x96xbf16>, vector<8x96xf32> -> vector<8x96xf32>
    %c3_205 = arith.constant 3 : index
    %c0_206 = arith.constant 0 : index
    %c0_207 = arith.constant 0 : index
    %401 = vector.load %arg1[%c3_205, %c0_206, %c0_207] : memref<6x8x96xf32, #tpu.memory_space<vmem>>, vector<1x8x96xf32>
    %402 = vector.shape_cast %401 : vector<1x8x96xf32> to vector<8x96xf32>
    %403 = arith.addf %400, %402 : vector<8x96xf32>
    %404 = arith.truncf %398 : vector<8x32xf32> to vector<8x32xbf16>
    %cst_208 = arith.constant dense<0.000000e+00> : vector<8x96xf32>
    %405 = tpu.matmul %404, %13, %cst_208 {dimension_numbers = #tpu.dot_dimension_numbers<[1], [0], [0], [1], [0, 0, 1, 1], [], []>} : vector<8x32xbf16>, vector<32x96xbf16>, vector<8x96xf32> -> vector<8x96xf32>
    %406 = arith.addf %405, %8 : vector<8x96xf32>
    %407 = vector.extract_strided_slice %403 {offsets = [0, 0], sizes = [8, 32], strides = [1, 1]} : vector<8x96xf32> to vector<8x32xf32>
    %408 = vector.extract_strided_slice %406 {offsets = [0, 0], sizes = [8, 32], strides = [1, 1]} : vector<8x96xf32> to vector<8x32xf32>
    %409 = arith.addf %407, %408 : vector<8x32xf32>
    %410 = arith.negf %409 : vector<8x32xf32>
    %411 = math.exp %410 : vector<8x32xf32>
    %cst_209 = arith.constant 1.000000e+00 : f32
    %412 = vector.broadcast %cst_209 : f32 to vector<8x32xf32>
    %413 = arith.addf %412, %411 : vector<8x32xf32>
    %414 = arith.divf %412, %413 : vector<8x32xf32>
    %415 = vector.extract_strided_slice %403 {offsets = [0, 32], sizes = [8, 32], strides = [1, 1]} : vector<8x96xf32> to vector<8x32xf32>
    %416 = vector.extract_strided_slice %406 {offsets = [0, 32], sizes = [8, 32], strides = [1, 1]} : vector<8x96xf32> to vector<8x32xf32>
    %417 = arith.addf %415, %416 : vector<8x32xf32>
    %418 = arith.negf %417 : vector<8x32xf32>
    %419 = math.exp %418 : vector<8x32xf32>
    %cst_210 = arith.constant 1.000000e+00 : f32
    %420 = vector.broadcast %cst_210 : f32 to vector<8x32xf32>
    %421 = arith.addf %420, %419 : vector<8x32xf32>
    %422 = arith.divf %420, %421 : vector<8x32xf32>
    %423 = vector.extract_strided_slice %403 {offsets = [0, 64], sizes = [8, 32], strides = [1, 1]} : vector<8x96xf32> to vector<8x32xf32>
    %424 = vector.extract_strided_slice %406 {offsets = [0, 64], sizes = [8, 32], strides = [1, 1]} : vector<8x96xf32> to vector<8x32xf32>
    %425 = arith.mulf %414, %424 : vector<8x32xf32>
    %426 = arith.addf %423, %425 : vector<8x32xf32>
    %427 = math.tanh %426 : vector<8x32xf32>
    %cst_211 = arith.constant 1.000000e+00 : f32
    %428 = vector.broadcast %cst_211 : f32 to vector<8x32xf32>
    %429 = arith.subf %428, %422 : vector<8x32xf32>
    %430 = arith.mulf %429, %427 : vector<8x32xf32>
    %431 = arith.mulf %422, %398 : vector<8x32xf32>
    %432 = arith.addf %430, %431 : vector<8x32xf32>
    %433 = arith.truncf %432 : vector<8x32xf32> to vector<8x32xbf16>
    %cst_212 = arith.constant dense<0.000000e+00> : vector<8x4xf32>
    %434 = tpu.matmul %433, %14, %cst_212 {dimension_numbers = #tpu.dot_dimension_numbers<[1], [0], [0], [1], [0, 0, 1, 1], [], []>} : vector<8x32xbf16>, vector<32x4xbf16>, vector<8x4xf32> -> vector<8x4xf32>
    %435 = arith.addf %434, %11 : vector<8x4xf32>
    %c3_213 = arith.constant 3 : index
    %c0_214 = arith.constant 0 : index
    %c0_215 = arith.constant 0 : index
    %436 = vector.load %arg14[%c3_213, %c0_214, %c0_215] : memref<6x8x4xf32, #tpu.memory_space<vmem>>, vector<1x8x4xf32>
    %437 = vector.shape_cast %436 : vector<1x8x4xf32> to vector<8x4xf32>
    %438 = vector.shape_cast %435 : vector<8x4xf32> to vector<1x8x4xf32>
    tpu.vector_store %arg14[%c3_213, %c0_214, %c0_215], %438 {strides = array<i32>} : memref<6x8x4xf32, #tpu.memory_space<vmem>>, vector<1x8x4xf32>,
    %c0_216 = arith.constant 0 : index
    %c0_217 = arith.constant 0 : index
    %c0_218 = arith.constant 0 : index
    %439 = vector.load %arg7[%c0_216, %c0_217, %c0_218] : memref<2x32x64xbf16, #tpu.memory_space<vmem>>, vector<1x32x64xbf16>
    %440 = vector.shape_cast %439 : vector<1x32x64xbf16> to vector<32x64xbf16>
    %441 = arith.truncf %432 : vector<8x32xf32> to vector<8x32xbf16>
    %cst_219 = arith.constant dense<0.000000e+00> : vector<8x64xf32>
    %442 = tpu.matmul %441, %440, %cst_219 {dimension_numbers = #tpu.dot_dimension_numbers<[1], [0], [0], [1], [0, 0, 1, 1], [], []>} : vector<8x32xbf16>, vector<32x64xbf16>, vector<8x64xf32> -> vector<8x64xf32>
    %c8 = arith.constant 8 : index
    %c0_220 = arith.constant 0 : index
    %c0_221 = arith.constant 0 : index
    %443 = vector.load %arg2[%c8, %c0_220, %c0_221] : memref<12x8x64xf32, #tpu.memory_space<vmem>>, vector<1x8x64xf32>
    %444 = vector.shape_cast %443 : vector<1x8x64xf32> to vector<8x64xf32>
    %445 = arith.addf %442, %444 : vector<8x64xf32>
    %446 = arith.negf %445 : vector<8x64xf32>
    %447 = math.exp %446 : vector<8x64xf32>
    %cst_222 = arith.constant 1.000000e+00 : f32
    %448 = vector.broadcast %cst_222 : f32 to vector<8x64xf32>
    %449 = arith.addf %448, %447 : vector<8x64xf32>
    %450 = arith.divf %448, %449 : vector<8x64xf32>
    %451 = vector.extract_strided_slice %450 {offsets = [0, 0], sizes = [8, 32], strides = [1, 1]} : vector<8x64xf32> to vector<8x32xf32>
    %cst_223 = arith.constant 8.000000e-01 : f32
    %452 = vector.broadcast %cst_223 : f32 to vector<8x32xf32>
    %453 = arith.mulf %452, %451 : vector<8x32xf32>
    %454 = vector.extract_strided_slice %450 {offsets = [0, 32], sizes = [8, 32], strides = [1, 1]} : vector<8x64xf32> to vector<8x32xf32>
    %cst_224 = arith.constant 4.000000e-01 : f32
    %455 = vector.broadcast %cst_224 : f32 to vector<8x32xf32>
    %456 = arith.mulf %455, %454 : vector<8x32xf32>
    %457 = arith.mulf %453, %432 : vector<8x32xf32>
    %c0_225 = arith.constant 0 : index
    %c0_226 = arith.constant 0 : index
    %c0_227 = arith.constant 0 : index
    %458 = vector.load %arg8[%c0_225, %c0_226, %c0_227] : memref<2x32x32xbf16, #tpu.memory_space<vmem>>, vector<1x32x32xbf16>
    %459 = vector.shape_cast %458 : vector<1x32x32xbf16> to vector<32x32xbf16>
    %460 = arith.truncf %457 : vector<8x32xf32> to vector<8x32xbf16>
    %cst_228 = arith.constant dense<0.000000e+00> : vector<8x32xf32>
    %461 = tpu.matmul %460, %459, %cst_228 {dimension_numbers = #tpu.dot_dimension_numbers<[1], [0], [0], [1], [0, 0, 1, 1], [], []>} : vector<8x32xbf16>, vector<32x32xbf16>, vector<8x32xf32> -> vector<8x32xf32>
    %c8_229 = arith.constant 8 : index
    %c0_230 = arith.constant 0 : index
    %c0_231 = arith.constant 0 : index
    %462 = vector.load %arg3[%c8_229, %c0_230, %c0_231] : memref<12x8x32xf32, #tpu.memory_space<vmem>>, vector<1x8x32xf32>
    %463 = vector.shape_cast %462 : vector<1x8x32xf32> to vector<8x32xf32>
    %464 = arith.addf %461, %463 : vector<8x32xf32>
    %465 = math.tanh %464 : vector<8x32xf32>
    %c8_232 = arith.constant 8 : index
    %c0_233 = arith.constant 0 : index
    %c0_234 = arith.constant 0 : index
    %466 = vector.load %arg4[%c8_232, %c0_233, %c0_234] : memref<12x8x32xf32, #tpu.memory_space<vmem>>, vector<1x8x32xf32>
    %467 = vector.shape_cast %466 : vector<1x8x32xf32> to vector<8x32xf32>
    %468 = arith.subf %465, %432 : vector<8x32xf32>
    %469 = arith.mulf %456, %468 : vector<8x32xf32>
    %470 = arith.mulf %467, %469 : vector<8x32xf32>
    %471 = arith.addf %432, %470 : vector<8x32xf32>
    %c1_235 = arith.constant 1 : index
    %c0_236 = arith.constant 0 : index
    %c0_237 = arith.constant 0 : index
    %472 = vector.load %arg7[%c1_235, %c0_236, %c0_237] : memref<2x32x64xbf16, #tpu.memory_space<vmem>>, vector<1x32x64xbf16>
    %473 = vector.shape_cast %472 : vector<1x32x64xbf16> to vector<32x64xbf16>
    %474 = arith.truncf %471 : vector<8x32xf32> to vector<8x32xbf16>
    %cst_238 = arith.constant dense<0.000000e+00> : vector<8x64xf32>
    %475 = tpu.matmul %474, %473, %cst_238 {dimension_numbers = #tpu.dot_dimension_numbers<[1], [0], [0], [1], [0, 0, 1, 1], [], []>} : vector<8x32xbf16>, vector<32x64xbf16>, vector<8x64xf32> -> vector<8x64xf32>
    %c9 = arith.constant 9 : index
    %c0_239 = arith.constant 0 : index
    %c0_240 = arith.constant 0 : index
    %476 = vector.load %arg2[%c9, %c0_239, %c0_240] : memref<12x8x64xf32, #tpu.memory_space<vmem>>, vector<1x8x64xf32>
    %477 = vector.shape_cast %476 : vector<1x8x64xf32> to vector<8x64xf32>
    %478 = arith.addf %475, %477 : vector<8x64xf32>
    %479 = arith.negf %478 : vector<8x64xf32>
    %480 = math.exp %479 : vector<8x64xf32>
    %cst_241 = arith.constant 1.000000e+00 : f32
    %481 = vector.broadcast %cst_241 : f32 to vector<8x64xf32>
    %482 = arith.addf %481, %480 : vector<8x64xf32>
    %483 = arith.divf %481, %482 : vector<8x64xf32>
    %484 = vector.extract_strided_slice %483 {offsets = [0, 0], sizes = [8, 32], strides = [1, 1]} : vector<8x64xf32> to vector<8x32xf32>
    %cst_242 = arith.constant 8.000000e-01 : f32
    %485 = vector.broadcast %cst_242 : f32 to vector<8x32xf32>
    %486 = arith.mulf %485, %484 : vector<8x32xf32>
    %487 = vector.extract_strided_slice %483 {offsets = [0, 32], sizes = [8, 32], strides = [1, 1]} : vector<8x64xf32> to vector<8x32xf32>
    %cst_243 = arith.constant 4.000000e-01 : f32
    %488 = vector.broadcast %cst_243 : f32 to vector<8x32xf32>
    %489 = arith.mulf %488, %487 : vector<8x32xf32>
    %490 = arith.mulf %486, %471 : vector<8x32xf32>
    %c1_244 = arith.constant 1 : index
    %c0_245 = arith.constant 0 : index
    %c0_246 = arith.constant 0 : index
    %491 = vector.load %arg8[%c1_244, %c0_245, %c0_246] : memref<2x32x32xbf16, #tpu.memory_space<vmem>>, vector<1x32x32xbf16>
    %492 = vector.shape_cast %491 : vector<1x32x32xbf16> to vector<32x32xbf16>
    %493 = arith.truncf %490 : vector<8x32xf32> to vector<8x32xbf16>
    %cst_247 = arith.constant dense<0.000000e+00> : vector<8x32xf32>
    %494 = tpu.matmul %493, %492, %cst_247 {dimension_numbers = #tpu.dot_dimension_numbers<[1], [0], [0], [1], [0, 0, 1, 1], [], []>} : vector<8x32xbf16>, vector<32x32xbf16>, vector<8x32xf32> -> vector<8x32xf32>
    %c9_248 = arith.constant 9 : index
    %c0_249 = arith.constant 0 : index
    %c0_250 = arith.constant 0 : index
    %495 = vector.load %arg3[%c9_248, %c0_249, %c0_250] : memref<12x8x32xf32, #tpu.memory_space<vmem>>, vector<1x8x32xf32>
    %496 = vector.shape_cast %495 : vector<1x8x32xf32> to vector<8x32xf32>
    %497 = arith.addf %494, %496 : vector<8x32xf32>
    %498 = math.tanh %497 : vector<8x32xf32>
    %c9_251 = arith.constant 9 : index
    %c0_252 = arith.constant 0 : index
    %c0_253 = arith.constant 0 : index
    %499 = vector.load %arg4[%c9_251, %c0_252, %c0_253] : memref<12x8x32xf32, #tpu.memory_space<vmem>>, vector<1x8x32xf32>
    %500 = vector.shape_cast %499 : vector<1x8x32xf32> to vector<8x32xf32>
    %501 = arith.subf %498, %471 : vector<8x32xf32>
    %502 = arith.mulf %489, %501 : vector<8x32xf32>
    %503 = arith.mulf %500, %502 : vector<8x32xf32>
    %504 = arith.addf %471, %503 : vector<8x32xf32>
    %505 = arith.truncf %435 : vector<8x4xf32> to vector<8x4xbf16>
    %cst_254 = arith.constant dense<0.000000e+00> : vector<8x96xf32>
    %506 = tpu.matmul %505, %12, %cst_254 {dimension_numbers = #tpu.dot_dimension_numbers<[1], [0], [0], [1], [0, 0, 1, 1], [], []>} : vector<8x4xbf16>, vector<4x96xbf16>, vector<8x96xf32> -> vector<8x96xf32>
    %c4_255 = arith.constant 4 : index
    %c0_256 = arith.constant 0 : index
    %c0_257 = arith.constant 0 : index
    %507 = vector.load %arg1[%c4_255, %c0_256, %c0_257] : memref<6x8x96xf32, #tpu.memory_space<vmem>>, vector<1x8x96xf32>
    %508 = vector.shape_cast %507 : vector<1x8x96xf32> to vector<8x96xf32>
    %509 = arith.addf %506, %508 : vector<8x96xf32>
    %510 = arith.truncf %504 : vector<8x32xf32> to vector<8x32xbf16>
    %cst_258 = arith.constant dense<0.000000e+00> : vector<8x96xf32>
    %511 = tpu.matmul %510, %13, %cst_258 {dimension_numbers = #tpu.dot_dimension_numbers<[1], [0], [0], [1], [0, 0, 1, 1], [], []>} : vector<8x32xbf16>, vector<32x96xbf16>, vector<8x96xf32> -> vector<8x96xf32>
    %512 = arith.addf %511, %8 : vector<8x96xf32>
    %513 = vector.extract_strided_slice %509 {offsets = [0, 0], sizes = [8, 32], strides = [1, 1]} : vector<8x96xf32> to vector<8x32xf32>
    %514 = vector.extract_strided_slice %512 {offsets = [0, 0], sizes = [8, 32], strides = [1, 1]} : vector<8x96xf32> to vector<8x32xf32>
    %515 = arith.addf %513, %514 : vector<8x32xf32>
    %516 = arith.negf %515 : vector<8x32xf32>
    %517 = math.exp %516 : vector<8x32xf32>
    %cst_259 = arith.constant 1.000000e+00 : f32
    %518 = vector.broadcast %cst_259 : f32 to vector<8x32xf32>
    %519 = arith.addf %518, %517 : vector<8x32xf32>
    %520 = arith.divf %518, %519 : vector<8x32xf32>
    %521 = vector.extract_strided_slice %509 {offsets = [0, 32], sizes = [8, 32], strides = [1, 1]} : vector<8x96xf32> to vector<8x32xf32>
    %522 = vector.extract_strided_slice %512 {offsets = [0, 32], sizes = [8, 32], strides = [1, 1]} : vector<8x96xf32> to vector<8x32xf32>
    %523 = arith.addf %521, %522 : vector<8x32xf32>
    %524 = arith.negf %523 : vector<8x32xf32>
    %525 = math.exp %524 : vector<8x32xf32>
    %cst_260 = arith.constant 1.000000e+00 : f32
    %526 = vector.broadcast %cst_260 : f32 to vector<8x32xf32>
    %527 = arith.addf %526, %525 : vector<8x32xf32>
    %528 = arith.divf %526, %527 : vector<8x32xf32>
    %529 = vector.extract_strided_slice %509 {offsets = [0, 64], sizes = [8, 32], strides = [1, 1]} : vector<8x96xf32> to vector<8x32xf32>
    %530 = vector.extract_strided_slice %512 {offsets = [0, 64], sizes = [8, 32], strides = [1, 1]} : vector<8x96xf32> to vector<8x32xf32>
    %531 = arith.mulf %520, %530 : vector<8x32xf32>
    %532 = arith.addf %529, %531 : vector<8x32xf32>
    %533 = math.tanh %532 : vector<8x32xf32>
    %cst_261 = arith.constant 1.000000e+00 : f32
    %534 = vector.broadcast %cst_261 : f32 to vector<8x32xf32>
    %535 = arith.subf %534, %528 : vector<8x32xf32>
    %536 = arith.mulf %535, %533 : vector<8x32xf32>
    %537 = arith.mulf %528, %504 : vector<8x32xf32>
    %538 = arith.addf %536, %537 : vector<8x32xf32>
    %539 = arith.truncf %538 : vector<8x32xf32> to vector<8x32xbf16>
    %cst_262 = arith.constant dense<0.000000e+00> : vector<8x4xf32>
    %540 = tpu.matmul %539, %14, %cst_262 {dimension_numbers = #tpu.dot_dimension_numbers<[1], [0], [0], [1], [0, 0, 1, 1], [], []>} : vector<8x32xbf16>, vector<32x4xbf16>, vector<8x4xf32> -> vector<8x4xf32>
    %541 = arith.addf %540, %11 : vector<8x4xf32>
    %c4_263 = arith.constant 4 : index
    %c0_264 = arith.constant 0 : index
    %c0_265 = arith.constant 0 : index
    %542 = vector.load %arg14[%c4_263, %c0_264, %c0_265] : memref<6x8x4xf32, #tpu.memory_space<vmem>>, vector<1x8x4xf32>
    %543 = vector.shape_cast %542 : vector<1x8x4xf32> to vector<8x4xf32>
    %544 = vector.shape_cast %541 : vector<8x4xf32> to vector<1x8x4xf32>
    tpu.vector_store %arg14[%c4_263, %c0_264, %c0_265], %544 {strides = array<i32>} : memref<6x8x4xf32, #tpu.memory_space<vmem>>, vector<1x8x4xf32>,
    %c0_266 = arith.constant 0 : index
    %c0_267 = arith.constant 0 : index
    %c0_268 = arith.constant 0 : index
    %545 = vector.load %arg7[%c0_266, %c0_267, %c0_268] : memref<2x32x64xbf16, #tpu.memory_space<vmem>>, vector<1x32x64xbf16>
    %546 = vector.shape_cast %545 : vector<1x32x64xbf16> to vector<32x64xbf16>
    %547 = arith.truncf %538 : vector<8x32xf32> to vector<8x32xbf16>
    %cst_269 = arith.constant dense<0.000000e+00> : vector<8x64xf32>
    %548 = tpu.matmul %547, %546, %cst_269 {dimension_numbers = #tpu.dot_dimension_numbers<[1], [0], [0], [1], [0, 0, 1, 1], [], []>} : vector<8x32xbf16>, vector<32x64xbf16>, vector<8x64xf32> -> vector<8x64xf32>
    %c10 = arith.constant 10 : index
    %c0_270 = arith.constant 0 : index
    %c0_271 = arith.constant 0 : index
    %549 = vector.load %arg2[%c10, %c0_270, %c0_271] : memref<12x8x64xf32, #tpu.memory_space<vmem>>, vector<1x8x64xf32>
    %550 = vector.shape_cast %549 : vector<1x8x64xf32> to vector<8x64xf32>
    %551 = arith.addf %548, %550 : vector<8x64xf32>
    %552 = arith.negf %551 : vector<8x64xf32>
    %553 = math.exp %552 : vector<8x64xf32>
    %cst_272 = arith.constant 1.000000e+00 : f32
    %554 = vector.broadcast %cst_272 : f32 to vector<8x64xf32>
    %555 = arith.addf %554, %553 : vector<8x64xf32>
    %556 = arith.divf %554, %555 : vector<8x64xf32>
    %557 = vector.extract_strided_slice %556 {offsets = [0, 0], sizes = [8, 32], strides = [1, 1]} : vector<8x64xf32> to vector<8x32xf32>
    %cst_273 = arith.constant 8.000000e-01 : f32
    %558 = vector.broadcast %cst_273 : f32 to vector<8x32xf32>
    %559 = arith.mulf %558, %557 : vector<8x32xf32>
    %560 = vector.extract_strided_slice %556 {offsets = [0, 32], sizes = [8, 32], strides = [1, 1]} : vector<8x64xf32> to vector<8x32xf32>
    %cst_274 = arith.constant 4.000000e-01 : f32
    %561 = vector.broadcast %cst_274 : f32 to vector<8x32xf32>
    %562 = arith.mulf %561, %560 : vector<8x32xf32>
    %563 = arith.mulf %559, %538 : vector<8x32xf32>
    %c0_275 = arith.constant 0 : index
    %c0_276 = arith.constant 0 : index
    %c0_277 = arith.constant 0 : index
    %564 = vector.load %arg8[%c0_275, %c0_276, %c0_277] : memref<2x32x32xbf16, #tpu.memory_space<vmem>>, vector<1x32x32xbf16>
    %565 = vector.shape_cast %564 : vector<1x32x32xbf16> to vector<32x32xbf16>
    %566 = arith.truncf %563 : vector<8x32xf32> to vector<8x32xbf16>
    %cst_278 = arith.constant dense<0.000000e+00> : vector<8x32xf32>
    %567 = tpu.matmul %566, %565, %cst_278 {dimension_numbers = #tpu.dot_dimension_numbers<[1], [0], [0], [1], [0, 0, 1, 1], [], []>} : vector<8x32xbf16>, vector<32x32xbf16>, vector<8x32xf32> -> vector<8x32xf32>
    %c10_279 = arith.constant 10 : index
    %c0_280 = arith.constant 0 : index
    %c0_281 = arith.constant 0 : index
    %568 = vector.load %arg3[%c10_279, %c0_280, %c0_281] : memref<12x8x32xf32, #tpu.memory_space<vmem>>, vector<1x8x32xf32>
    %569 = vector.shape_cast %568 : vector<1x8x32xf32> to vector<8x32xf32>
    %570 = arith.addf %567, %569 : vector<8x32xf32>
    %571 = math.tanh %570 : vector<8x32xf32>
    %c10_282 = arith.constant 10 : index
    %c0_283 = arith.constant 0 : index
    %c0_284 = arith.constant 0 : index
    %572 = vector.load %arg4[%c10_282, %c0_283, %c0_284] : memref<12x8x32xf32, #tpu.memory_space<vmem>>, vector<1x8x32xf32>
    %573 = vector.shape_cast %572 : vector<1x8x32xf32> to vector<8x32xf32>
    %574 = arith.subf %571, %538 : vector<8x32xf32>
    %575 = arith.mulf %562, %574 : vector<8x32xf32>
    %576 = arith.mulf %573, %575 : vector<8x32xf32>
    %577 = arith.addf %538, %576 : vector<8x32xf32>
    %c1_285 = arith.constant 1 : index
    %c0_286 = arith.constant 0 : index
    %c0_287 = arith.constant 0 : index
    %578 = vector.load %arg7[%c1_285, %c0_286, %c0_287] : memref<2x32x64xbf16, #tpu.memory_space<vmem>>, vector<1x32x64xbf16>
    %579 = vector.shape_cast %578 : vector<1x32x64xbf16> to vector<32x64xbf16>
    %580 = arith.truncf %577 : vector<8x32xf32> to vector<8x32xbf16>
    %cst_288 = arith.constant dense<0.000000e+00> : vector<8x64xf32>
    %581 = tpu.matmul %580, %579, %cst_288 {dimension_numbers = #tpu.dot_dimension_numbers<[1], [0], [0], [1], [0, 0, 1, 1], [], []>} : vector<8x32xbf16>, vector<32x64xbf16>, vector<8x64xf32> -> vector<8x64xf32>
    %c11 = arith.constant 11 : index
    %c0_289 = arith.constant 0 : index
    %c0_290 = arith.constant 0 : index
    %582 = vector.load %arg2[%c11, %c0_289, %c0_290] : memref<12x8x64xf32, #tpu.memory_space<vmem>>, vector<1x8x64xf32>
    %583 = vector.shape_cast %582 : vector<1x8x64xf32> to vector<8x64xf32>
    %584 = arith.addf %581, %583 : vector<8x64xf32>
    %585 = arith.negf %584 : vector<8x64xf32>
    %586 = math.exp %585 : vector<8x64xf32>
    %cst_291 = arith.constant 1.000000e+00 : f32
    %587 = vector.broadcast %cst_291 : f32 to vector<8x64xf32>
    %588 = arith.addf %587, %586 : vector<8x64xf32>
    %589 = arith.divf %587, %588 : vector<8x64xf32>
    %590 = vector.extract_strided_slice %589 {offsets = [0, 0], sizes = [8, 32], strides = [1, 1]} : vector<8x64xf32> to vector<8x32xf32>
    %cst_292 = arith.constant 8.000000e-01 : f32
    %591 = vector.broadcast %cst_292 : f32 to vector<8x32xf32>
    %592 = arith.mulf %591, %590 : vector<8x32xf32>
    %593 = vector.extract_strided_slice %589 {offsets = [0, 32], sizes = [8, 32], strides = [1, 1]} : vector<8x64xf32> to vector<8x32xf32>
    %cst_293 = arith.constant 4.000000e-01 : f32
    %594 = vector.broadcast %cst_293 : f32 to vector<8x32xf32>
    %595 = arith.mulf %594, %593 : vector<8x32xf32>
    %596 = arith.mulf %592, %577 : vector<8x32xf32>
    %c1_294 = arith.constant 1 : index
    %c0_295 = arith.constant 0 : index
    %c0_296 = arith.constant 0 : index
    %597 = vector.load %arg8[%c1_294, %c0_295, %c0_296] : memref<2x32x32xbf16, #tpu.memory_space<vmem>>, vector<1x32x32xbf16>
    %598 = vector.shape_cast %597 : vector<1x32x32xbf16> to vector<32x32xbf16>
    %599 = arith.truncf %596 : vector<8x32xf32> to vector<8x32xbf16>
    %cst_297 = arith.constant dense<0.000000e+00> : vector<8x32xf32>
    %600 = tpu.matmul %599, %598, %cst_297 {dimension_numbers = #tpu.dot_dimension_numbers<[1], [0], [0], [1], [0, 0, 1, 1], [], []>} : vector<8x32xbf16>, vector<32x32xbf16>, vector<8x32xf32> -> vector<8x32xf32>
    %c11_298 = arith.constant 11 : index
    %c0_299 = arith.constant 0 : index
    %c0_300 = arith.constant 0 : index
    %601 = vector.load %arg3[%c11_298, %c0_299, %c0_300] : memref<12x8x32xf32, #tpu.memory_space<vmem>>, vector<1x8x32xf32>
    %602 = vector.shape_cast %601 : vector<1x8x32xf32> to vector<8x32xf32>
    %603 = arith.addf %600, %602 : vector<8x32xf32>
    %604 = math.tanh %603 : vector<8x32xf32>
    %c11_301 = arith.constant 11 : index
    %c0_302 = arith.constant 0 : index
    %c0_303 = arith.constant 0 : index
    %605 = vector.load %arg4[%c11_301, %c0_302, %c0_303] : memref<12x8x32xf32, #tpu.memory_space<vmem>>, vector<1x8x32xf32>
    %606 = vector.shape_cast %605 : vector<1x8x32xf32> to vector<8x32xf32>
    %607 = arith.subf %604, %577 : vector<8x32xf32>
    %608 = arith.mulf %595, %607 : vector<8x32xf32>
    %609 = arith.mulf %606, %608 : vector<8x32xf32>
    %610 = arith.addf %577, %609 : vector<8x32xf32>
    %611 = arith.truncf %541 : vector<8x4xf32> to vector<8x4xbf16>
    %cst_304 = arith.constant dense<0.000000e+00> : vector<8x96xf32>
    %612 = tpu.matmul %611, %12, %cst_304 {dimension_numbers = #tpu.dot_dimension_numbers<[1], [0], [0], [1], [0, 0, 1, 1], [], []>} : vector<8x4xbf16>, vector<4x96xbf16>, vector<8x96xf32> -> vector<8x96xf32>
    %c5_305 = arith.constant 5 : index
    %c0_306 = arith.constant 0 : index
    %c0_307 = arith.constant 0 : index
    %613 = vector.load %arg1[%c5_305, %c0_306, %c0_307] : memref<6x8x96xf32, #tpu.memory_space<vmem>>, vector<1x8x96xf32>
    %614 = vector.shape_cast %613 : vector<1x8x96xf32> to vector<8x96xf32>
    %615 = arith.addf %612, %614 : vector<8x96xf32>
    %616 = arith.truncf %610 : vector<8x32xf32> to vector<8x32xbf16>
    %cst_308 = arith.constant dense<0.000000e+00> : vector<8x96xf32>
    %617 = tpu.matmul %616, %13, %cst_308 {dimension_numbers = #tpu.dot_dimension_numbers<[1], [0], [0], [1], [0, 0, 1, 1], [], []>} : vector<8x32xbf16>, vector<32x96xbf16>, vector<8x96xf32> -> vector<8x96xf32>
    %618 = arith.addf %617, %8 : vector<8x96xf32>
    %619 = vector.extract_strided_slice %615 {offsets = [0, 0], sizes = [8, 32], strides = [1, 1]} : vector<8x96xf32> to vector<8x32xf32>
    %620 = vector.extract_strided_slice %618 {offsets = [0, 0], sizes = [8, 32], strides = [1, 1]} : vector<8x96xf32> to vector<8x32xf32>
    %621 = arith.addf %619, %620 : vector<8x32xf32>
    %622 = arith.negf %621 : vector<8x32xf32>
    %623 = math.exp %622 : vector<8x32xf32>
    %cst_309 = arith.constant 1.000000e+00 : f32
    %624 = vector.broadcast %cst_309 : f32 to vector<8x32xf32>
    %625 = arith.addf %624, %623 : vector<8x32xf32>
    %626 = arith.divf %624, %625 : vector<8x32xf32>
    %627 = vector.extract_strided_slice %615 {offsets = [0, 32], sizes = [8, 32], strides = [1, 1]} : vector<8x96xf32> to vector<8x32xf32>
    %628 = vector.extract_strided_slice %618 {offsets = [0, 32], sizes = [8, 32], strides = [1, 1]} : vector<8x96xf32> to vector<8x32xf32>
    %629 = arith.addf %627, %628 : vector<8x32xf32>
    %630 = arith.negf %629 : vector<8x32xf32>
    %631 = math.exp %630 : vector<8x32xf32>
    %cst_310 = arith.constant 1.000000e+00 : f32
    %632 = vector.broadcast %cst_310 : f32 to vector<8x32xf32>
    %633 = arith.addf %632, %631 : vector<8x32xf32>
    %634 = arith.divf %632, %633 : vector<8x32xf32>
    %635 = vector.extract_strided_slice %615 {offsets = [0, 64], sizes = [8, 32], strides = [1, 1]} : vector<8x96xf32> to vector<8x32xf32>
    %636 = vector.extract_strided_slice %618 {offsets = [0, 64], sizes = [8, 32], strides = [1, 1]} : vector<8x96xf32> to vector<8x32xf32>
    %637 = arith.mulf %626, %636 : vector<8x32xf32>
    %638 = arith.addf %635, %637 : vector<8x32xf32>
    %639 = math.tanh %638 : vector<8x32xf32>
    %cst_311 = arith.constant 1.000000e+00 : f32
    %640 = vector.broadcast %cst_311 : f32 to vector<8x32xf32>
    %641 = arith.subf %640, %634 : vector<8x32xf32>
    %642 = arith.mulf %641, %639 : vector<8x32xf32>
    %643 = arith.mulf %634, %610 : vector<8x32xf32>
    %644 = arith.addf %642, %643 : vector<8x32xf32>
    %645 = arith.truncf %644 : vector<8x32xf32> to vector<8x32xbf16>
    %cst_312 = arith.constant dense<0.000000e+00> : vector<8x4xf32>
    %646 = tpu.matmul %645, %14, %cst_312 {dimension_numbers = #tpu.dot_dimension_numbers<[1], [0], [0], [1], [0, 0, 1, 1], [], []>} : vector<8x32xbf16>, vector<32x4xbf16>, vector<8x4xf32> -> vector<8x4xf32>
    %647 = arith.addf %646, %11 : vector<8x4xf32>
    %c5_313 = arith.constant 5 : index
    %c0_314 = arith.constant 0 : index
    %c0_315 = arith.constant 0 : index
    %648 = vector.load %arg14[%c5_313, %c0_314, %c0_315] : memref<6x8x4xf32, #tpu.memory_space<vmem>>, vector<1x8x4xf32>
    %649 = vector.shape_cast %648 : vector<1x8x4xf32> to vector<8x4xf32>
    %650 = vector.shape_cast %647 : vector<8x4xf32> to vector<1x8x4xf32>
    tpu.vector_store %arg14[%c5_313, %c0_314, %c0_315], %650 {strides = array<i32>} : memref<6x8x4xf32, #tpu.memory_space<vmem>>, vector<1x8x4xf32>,
    return
  }
}

</mosaic_0001>

<bundles_post_ra>
// kernel: flow_model_forward.1
= control target key start
LH: loop header
LB: loop body
LE: loop exit
PB: predicated region body
PF: predicated region fallthrough
CT: control target
= control target key end

     0   :  { %vm61_vm0 = vcmask 1043456   ;;  %vm57_vm1 = vcmask 31744   ;;  %v3878_v0 = vmov 0.0   ;;  %vm3879_vm2 = vmmov 0   ;;  %s3880_s30 = smov 32   ;;  %s3881_s17 = smov 96   ;;  %s4720_s5 = inlined_call_operand.vmem [shape: f32[4,32], index: 5, kind: input, shape index: {}]   ;;  %s4721_s0 = inlined_call_operand.vmem [shape: f32[8,4], index: 0, kind: input, shape index: {}]   ;;  %s4722_s7 = inlined_call_operand.vmem [shape: bf16[2,32,64], index: 7, kind: input, shape index: {}]   ;;  %s4723_s6 = inlined_call_operand.vmem [shape: f32[1,32], index: 6, kind: input, shape index: {}]   ;;  %s4724_s8 = inlined_call_operand.vmem [shape: bf16[2,32,32], index: 8, kind: input, shape index: {}]   ;;  %s4725_s2 = inlined_call_operand.vmem [shape: f32[12,8,64], index: 2, kind: input, shape index: {}]   ;;  %s4726_s3 = inlined_call_operand.vmem [shape: f32[12,8,32], index: 3, kind: input, shape index: {}]   ;;  %s4727_s4 = inlined_call_operand.vmem [shape: f32[12,8,32], index: 4, kind: input, shape index: {}]   ;;  %s4728_s10 = inlined_call_operand.vmem [shape: bf16[32,96], index: 10, kind: input, shape index: {}]   ;;  %s4729_s9 = inlined_call_operand.vmem [shape: bf16[4,96], index: 9, kind: input, shape index: {}]   ;;  %s4730_s11 = inlined_call_operand.vmem [shape: f32[1,96], index: 11, kind: input, shape index: {}]   ;;  %s4731_s1 = inlined_call_operand.vmem [shape: f32[6,8,96], index: 1, kind: input, shape index: {}]   ;;  %s4732_s12 = inlined_call_operand.vmem [shape: bf16[32,4], index: 12, kind: input, shape index: {}]   ;;  %s4733_s13 = inlined_call_operand.vmem [shape: f32[1,4], index: 13, kind: input, shape index: {}]   ;;  %s4734_s14 = inlined_call_operand.vmem [shape: f32[6,8,4], index: 14, kind: output, shape index: {}]  }
   0x1   :  { %3378 = vmatprep.subr.mxu0 %v3878_v0  ;;  %v49_v1 = vld [vmem:[%s4720_s5] sm:$0xf]  ;;  %3380 = vmatprep.mubr.msk.f32.mxu0 %vm3879_vm2, %v3878_v0  ;;  %v3712_v3 = vld [vmem:[%s4722_s7 + $0x8] sm:$0xff]   ;;  %vm176_vm3 = vcmask 261120   ;;  %v3716_v31 = vld [vmem:[%s4722_s7 + $0x18] sm:$0xff]   ;;  %vm459_vm4 = vcmask 1041408  }
   0x2   :  { %v3967_v2 = vld [vmem:[%s4721_s0] sm:$0xff]  ;;  %3379 = vmatpush3.msk.msra.mxu0 %vm61_vm0, %v49_v1  ;;  %3383 = vmatprep.subr.bf16.mxu1 %v3878_v0  ;;  %v3714_v10 = vld [vmem:[%s4724_s8 + $0x8] sm:$0xff]   ;;  %v3717_v34 = vld [vmem:[%s4722_s7 + $0x10] sm:$0xff]   ;;  %s3882_s5 = smov 64  }
   0x3   :  { %3381 = vmatmul.mubr.msk.f32.vlgmr.msra.gmra.mxu0 %vm57_vm1, %v3967_v2  ;;  %3387 = vmatprep.mubr.msk.bf16.mxu1 %vm3879_vm2, %v3878_v0  ;;  %v3713_v4 = vld [vmem:[%s4722_s7] sm:$0xff]   ;;  %v3718_v43 = vld [vmem:[%s4724_s8 + $0x18] sm:$0xff]   ;;  %v3719_v44 = vld [vmem:[%s4724_s8 + $0x10] sm:$0xff]  }
   0x4   :  { %3384 = vmatpush3.bf16.msra.mxu1 %v3712_v3  ;;  %3391 = vmatprep.subr.bf16.mxu0 %v3878_v0  ;;  %v3048_v5 = vld [vmem:[%s4723_s6] ss:$0 sm:$0xff]  ;;  %v3064_v45 = vld [vmem:[%s4725_s2 + $0x8] sm:$0xff] }
   0x5   :  { %3385 = vmatprep.subr.bf16.mxu1 %v3878_v0  ;;  %3395 = vmatprep.mubr.msk.bf16.mxu0 %vm3879_vm2, %v3878_v0  ;;  %v3715_v11 = vld [vmem:[%s4724_s8] sm:$0xff]   ;;  %v3073_v58 = vld [vmem:[%s4726_s3 + $0x8] sm:$0xff] }
   0x6   :  { %3392 = vmatpush3.bf16.msra.mxu0 %v3714_v10  ;;  %v163_v12 = vld [vmem:[%s4725_s2] sm:$0xff]  ;;  %v4044_v1 = vld [vmem:[%s4728_s10 + $0x8] sm:$0xff]  }
   0x7   :  { %3393 = vmatprep.subr.bf16.mxu0 %v3878_v0  ;;  %v234_v25 = vld [vmem:[%s4726_s3] sm:$0xff] }
   0x8   :  { %3386 = vmatpush3.bf16.msra.mxu1 %v3713_v4  ;;  %v291_v38 = vld [vmem:[%s4727_s4] sm:$0xff] }
   0x9   :  { %3399 = vmatprep.subr.bf16.mxu1 %v3878_v0 }
   0xa   :  { %3394 = vmatpush3.bf16.msra.mxu0 %v3715_v11 }
   0xb   :  { %3407 = vmatprep.subr.bf16.mxu0 %v3878_v0 }
  0xc3   :  { %v131_v6 = vpop.f32.mrf.mxu0 }
  0xc4   :  { %v132_v7 = vadd.f32 %v3048_v5, %v131_v6  ;;  %v4052_v5 = vld [vmem:[%s4728_s10] sm:$0xff]  }
  0xc5   :  { %v3382_v8 = vpop.f32.mrf.mxu0  ;;  %v149_v6 = vld [vmem:[%s4729_s9] sm:$0x3] }
  0xc6   :  { %v162_v9 = vpack.c.bf16 %v132_v7, %v132_v7  ;;  %v4059_v8 = vsel %vm459_vm4, %v149_v6, 0 }
  0xc8   :  { %3388 = vmatmul.mubr.msk.bf16.vlgmr.msra.gmra.mxu1 %vm176_vm3, %v162_v9 }
  0xc9   :  { %3403 = vmatprep.mubr.msk.bf16.mxu1 %vm3879_vm2, %v3878_v0  ;;  %3400 = vmatpush3.bf16.msra.mxu1 %v3716_v31 }
  0xca   :  { %3401 = vmatprep.subr.bf16.mxu1 %v3878_v0 }
  0xcd   :  { %3402 = vmatpush3.bf16.msra.mxu1 %v3717_v34 }
  0xce   :  { %3415 = vmatprep.subr.bf16.mxu1 %v3878_v0 }
 0x188   :  { %v214_v13 = vpop.f32.mrf.mxu1 }
 0x189   :  { %v215_v14 = vadd.f32 %v214_v13, %v163_v12 }
 0x18a   :  { %v3389_v15 = vpop.f32.mrf.mxu1 }
 0x18b   :  { %v3056_v16 = vmul.f32 -1.442695, %v215_v14 }
 0x18c   :  { %v217_v17 = vpop.f32.mrf.mxu1 }
 0x18d   :  { %3764 = vpow2.f32 %v3056_v16 }
 0x18e   :  { %v3390_v18 = vpop.f32.mrf.mxu1 }
 0x19a   :  { %v3765_v19 = vpop.eup %3764 }
 0x19b   :  { %v223_v20 = vadd.f32 1.0, %v3765_v19 }
 0x19d   :  { %3766 = vrcp.f32 %v223_v20  ;;  %v4078_v20 = vld [vmem:[%s4730_s11] ss:$0 sm:$0xff] }
 0x1aa   :  { %v3767_v21 = vpop.eup %3766 }
 0x1ab   :  { %v226_v22 = vmul.f32 0.8, %v3767_v21  ;;  %v227_v35 = vmul.f32 0.4, %v3767_v21 }
 0x1ad   :  { %v228_v23 = vmul.f32 %v226_v22, %v132_v7 }
 0x1af   :  { %v233_v24 = vpack.c.bf16 %v228_v23, %v228_v23 }
 0x1b1   :  { %3396 = vmatmul.mubr.msk.bf16.vlgmr.msra.gmra.mxu0 %vm176_vm3, %v233_v24 }
 0x1b2   :  { %3411 = vmatprep.mubr.msk.bf16.mxu0 %vm3879_vm2, %v3878_v0  ;;  %3408 = vmatpush3.bf16.msra.mxu0 %v3718_v43 }
 0x1b3   :  { %3409 = vmatprep.subr.bf16.mxu0 %v3878_v0 }
 0x1b6   :  { %3410 = vmatpush3.bf16.msra.mxu0 %v3719_v44 }
 0x1b7   :  { %3421 = vmatprep.subr.bf16.mxu0 %v3878_v0 }
 0x271   :  { %v284_v26 = vpop.f32.mrf.mxu0 }
 0x272   :  { %v285_v27 = vadd.f32 %v284_v26, %v234_v25  ;;  %v455_v26 = vld [vmem:[%s4731_s1] sm:$0xff] }
 0x273   :  { %v3397_v28 = vpop.f32.mrf.mxu0 }
 0x274   :  { %3768 = vtanh.f32 %v285_v27 }
 0x275   :  { %v287_v29 = vpop.f32.mrf.mxu0 }
 0x277   :  { %v3398_v30 = vpop.f32.mrf.mxu0 }
 0x281   :  { %v3769_v32 = vpop.eup %3768 }
 0x282   :  { %v292_v33 = vsub.f32 %v3769_v32, %v132_v7 }
 0x284   :  { %294 = vrot.lane.b32.xlu0 %v292_v33, %s3880_s30 }
 0x2f6   :  { %v295_v36 = vpop.permute.xlu0 %294 }
 0x2f7   :  { %v297_v37 = vmul.f32 %v295_v36, %v227_v35 }
 0x2f9   :  { %299 = vrot.lane.b32.xlu0 %v297_v37, %s3881_s17  ;;  %v3722_v37 = vld [vmem:[%s4722_s7 + $0x8] sm:$0xff]  }
 0x36b   :  { %v300_v39 = vpop.permute.xlu0 %299 }
 0x36c   :  { %v302_v40 = vmul.f32 %v300_v39, %v291_v38  ;;  %v4093_v38 = vld [vmem:[%s4732_s12 + $0x8] sm:$0xff]   ;;  %v3724_v39 = vld [vmem:[%s4722_s7] sm:$0xff]  }
 0x36e   :  { %v303_v41 = vadd.f32 %v302_v40, %v132_v7  ;;  %v454_v7 = vpack.c.bf16 %v3967_v2, %v3967_v2  ;;  %v3077_v2 = vld [vmem:[%s4727_s4 + $0x8] sm:$0xff]  ;;  %v4103_v40 = vld [vmem:[%s4732_s12] sm:$0xff]  }
 0x370   :  { %v309_v42 = vpack.c.bf16 %v303_v41, %v303_v41 }
 0x372   :  { %3404 = vmatmul.mubr.msk.bf16.vlgmr.msra.gmra.mxu1 %vm176_vm3, %v309_v42 }
 0x373   :  { %3417 = vmatprep.mubr.msk.bf16.mxu1 %vm3879_vm2, %v3878_v0  ;;  %3416 = vmatpush3.bf16.msra.mxu1 %v4059_v8 }
 0x374   :  { %3429 = vmatprep.subr.bf16.mxu1 %v3878_v0 }
 0x37a   :  { %3418 = vmatmul.mubr.msk.bf16.vlgmr.msra.gmra.mxu1 %vm57_vm1, %v454_v7 }
 0x37b   :  { %3433 = vmatprep.mubr.msk.bf16.mxu1 %vm3879_vm2, %v3878_v0  ;;  %3430 = vmatpush3.bf16.msra.mxu1 %v4093_v38 }
 0x37c   :  { %3431 = vmatprep.subr.bf16.mxu1 %v3878_v0 }
 0x37f   :  { %3432 = vmatpush3.bf16.msra.mxu1 %v4103_v40 }
 0x380   :  { %3445 = vmatprep.subr.bf16.mxu1 %v3878_v0 }
 0x432   :  { %v361_v46 = vpop.f32.mrf.mxu1 }
 0x433   :  { %v362_v47 = vadd.f32 %v3064_v45, %v361_v46 }
 0x434   :  { %v3405_v48 = vpop.f32.mrf.mxu1 }
 0x435   :  { %v3068_v49 = vmul.f32 -1.442695, %v362_v47 }
 0x436   :  { %v364_v50 = vpop.f32.mrf.mxu1 }
 0x437   :  { %3770 = vpow2.f32 %v3068_v49  ;;  %v3726_v50 = vld [vmem:[%s4724_s8 + $0x8] sm:$0xff]  }
 0x438   :  { %v3406_v51 = vpop.f32.mrf.mxu1 }
 0x439   :  { %v3727_v51 = vld [vmem:[%s4724_s8] sm:$0xff]  }
 0x43a   :  { %v497_v16 = vpop.f32.mrf.mxu1 }
 0x43b   :  { %v498_v27 = vadd.f32 %v497_v16, %v455_v26  ;;  %v3095_v26 = vld [vmem:[%s4727_s4 + $0x10] sm:$0xff] }
 0x43c   :  { %v3419_v17 = vpop.f32.mrf.mxu1 }
 0x43e   :  { %v500_v18 = vpop.f32.mrf.mxu1 }
 0x440   :  { %v3420_v19 = vpop.f32.mrf.mxu1 }
 0x444   :  { %v3771_v52 = vpop.eup %3770 }
 0x445   :  { %v370_v53 = vadd.f32 1.0, %v3771_v52  ;;  %v4134_v52 = vld [vmem:[%s4733_s13] ss:$0 sm:$0xff] }
 0x447   :  { %3772 = vrcp.f32 %v370_v53  ;;  %v3086_v53 = vld [vmem:[%s4725_s2 + $0x10] sm:$0xff] }
 0x454   :  { %v3773_v54 = vpop.eup %3772 }
 0x455   :  { %v373_v55 = vmul.f32 0.8, %v3773_v54  ;;  %v374_v9 = vmul.f32 0.4, %v3773_v54 }
 0x457   :  { %v375_v56 = vmul.f32 %v373_v55, %v303_v41 }
 0x459   :  { %v381_v57 = vpack.c.bf16 %v375_v56, %v375_v56 }
 0x45b   :  { %3412 = vmatmul.mubr.msk.bf16.vlgmr.msra.gmra.mxu0 %vm176_vm3, %v381_v57 }
 0x45c   :  { %3425 = vmatprep.mubr.msk.bf16.mxu0 %vm3879_vm2, %v3878_v0  ;;  %3422 = vmatpush3.bf16.msra.mxu0 %v4044_v1 }
 0x45d   :  { %3423 = vmatprep.subr.bf16.mxu0 %v3878_v0 }
 0x460   :  { %3424 = vmatpush3.bf16.msra.mxu0 %v4052_v5 }
 0x461   :  { %3437 = vmatprep.subr.bf16.mxu0 %v3878_v0 }
 0x51b   :  { %v433_v59 = vpop.f32.mrf.mxu0 }
 0x51c   :  { %v434_v60 = vadd.f32 %v3073_v58, %v433_v59 }
 0x51d   :  { %v3413_v61 = vpop.f32.mrf.mxu0 }
 0x51e   :  { %3774 = vtanh.f32 %v434_v60 }
 0x51f   :  { %v436_v62 = vpop.f32.mrf.mxu0 }
 0x521   :  { %v3414_v63 = vpop.f32.mrf.mxu0 }
 0x52b   :  { %v3775_v3 = vpop.eup %3774 }
 0x52c   :  { %v442_v4 = vsub.f32 %v3775_v3, %v303_v41 }
 0x52e   :  { %444 = vrot.lane.b32.xlu1 %v442_v4, %s3880_s30 }
 0x5a0   :  { %v445_v10 = vpop.permute.xlu1 %444 }
 0x5a1   :  { %v447_v11 = vmul.f32 %v445_v10, %v374_v9 }
 0x5a3   :  { %449 = vrot.lane.b32.xlu1 %v447_v11, %s3881_s17 }
 0x615   :  { %v450_v12 = vpop.permute.xlu1 %449 }
 0x616   :  { %v452_v13 = vmul.f32 %v3077_v2, %v450_v12  ;;  %v3091_v12 = vld [vmem:[%s4726_s3 + $0x10] sm:$0xff] }
 0x618   :  { %v453_v14 = vadd.f32 %v452_v13, %v303_v41 }
 0x61a   :  { %v503_v15 = vpack.c.bf16 %v453_v14, %v453_v14 }
 0x61c   :  { %3426 = vmatmul.mubr.msk.bf16.vlgmr.msra.gmra.mxu0 %vm176_vm3, %v503_v15 }
 0x61d   :  { %3441 = vmatprep.mubr.msk.bf16.mxu0 %vm3879_vm2, %v3878_v0  ;;  %3438 = vmatpush3.bf16.msra.mxu0 %v3722_v37 }
 0x61e   :  { %3439 = vmatprep.subr.bf16.mxu0 %v3878_v0 }
 0x621   :  { %3440 = vmatpush3.bf16.msra.mxu0 %v3724_v39 }
 0x622   :  { %3453 = vmatprep.subr.bf16.mxu0 %v3878_v0 }
 0x6dc   :  { %v553_v21 = vpop.f32.mrf.mxu0 }
 0x6dd   :  { %v554_v22 = vadd.f32 %v4078_v20, %v553_v21 }
 0x6de   :  { %v3427_v23 = vpop.f32.mrf.mxu0 }
 0x6df   :  { %567 = vrot.lane.b32.xlu0 %v554_v22, %s3882_s5  ;;  %v559_v28 = vadd.f32 %v554_v22, %v498_v27 }
 0x6e0   :  { %v556_v24 = vpop.f32.mrf.mxu0 }
 0x6e1   :  { %v3082_v29 = vmul.f32 -1.442695, %v559_v28  ;;  %v3728_v24 = vld [vmem:[%s4722_s7 + $0x18] sm:$0xff]  }
 0x6e2   :  { %v3428_v25 = vpop.f32.mrf.mxu0 }
 0x6e3   :  { %3776 = vpow2.f32 %v3082_v29  ;;  %v3729_v25 = vld [vmem:[%s4722_s7 + $0x10] sm:$0xff]  }
 0x6f0   :  { %v3777_v30 = vpop.eup %3776 }
 0x6f1   :  { %v563_v31 = vadd.f32 1.0, %v3777_v30 }
 0x6f3   :  { %3778 = vrcp.f32 %v563_v31 }
 0x700   :  { %v3779_v32 = vpop.eup %3778 }
 0x701   :  { %v577_v43 = vsub.f32 1.0, %v3779_v32 }
 0x751   :  { %v568_v33 = vpop.permute.xlu0 %567 }
 0x752   :  { %v570_v34 = vmul.f32 %v3779_v32, %v568_v33 }
 0x754   :  { %572 = vrot.lane.b32.xlu1 %v570_v34, %s3882_s5  ;;  %v3730_v34 = vld [vmem:[%s4724_s8 + $0x18] sm:$0xff]  }
 0x758   :  { %584 = vrot.lane.b32.xlu1 %v453_v14, %s3880_s30 }
 0x7c6   :  { %v573_v35 = vpop.permute.xlu1 %572 }
 0x7c7   :  { %v575_v36 = vadd.f32 %v573_v35, %v498_v27  ;;  %v3731_v35 = vld [vmem:[%s4724_s8 + $0x10] sm:$0xff]  }
 0x7c9   :  { %3780 = vtanh.f32 %v575_v36  ;;  %v3100_v36 = vld [vmem:[%s4725_s2 + $0x18] sm:$0xff] }
 0x7ca   :  { %v585_v42 = vpop.permute.xlu1 %584 }
 0x7cb   :  { %v587_v45 = vmul.f32 %v3779_v32, %v585_v42 }
 0x7d6   :  { %v3781_v41 = vpop.eup %3780 }
 0x7d7   :  { %579 = vrot.lane.b32.xlu0 %v3781_v41, %s3881_s17 }
 0x849   :  { %v580_v44 = vpop.permute.xlu0 %579 }
 0x84a   :  { %v582_v46 = vmul.f32 %v580_v44, %v577_v43 }
 0x84c   :  { %v4110_v47 = vadd.f32 %v587_v45, %v582_v46 }
 0x84e   :  { %716 = vrot.lane.b32.xlu1 %v4110_v47, %s3881_s17  ;;  %v589_v48 = vpack.c.bf16 %v4110_v47, %v4110_v47 }
 0x850   :  { %591 = vrot.lane.b32.xlu0 %v589_v48, %s3881_s17 }
 0x8c0   :  { %v717_v10 = vpop.permute.xlu1 %716 }
 0x8c2   :  { %v592_v49 = vpop.permute.xlu0 %591 }
 0x8c3   :  { %3434 = vmatmul.mubr.msk.bf16.vlgmr.msra.gmra.mxu1 %vm176_vm3, %v592_v49  ;;  %3442 = vmatmul.mubr.msk.bf16.vlgmr.msra.gmra.mxu0 %vm176_vm3, %v592_v49 }
 0x8c4   :  { %3449 = vmatprep.mubr.msk.bf16.mxu1 %vm3879_vm2, %v3878_v0  ;;  %3457 = vmatprep.mubr.msk.bf16.mxu0 %vm3879_vm2, %v3878_v0 }
 0x8c5   :  { %3446 = vmatpush3.bf16.msra.mxu1 %v3726_v50  ;;  %3454 = vmatpush3.bf16.msra.mxu0 %v3728_v24 }
 0x8c6   :  { %3447 = vmatprep.subr.bf16.mxu1 %v3878_v0  ;;  %3455 = vmatprep.subr.bf16.mxu0 %v3878_v0 }
 0x8c9   :  { %3448 = vmatpush3.bf16.msra.mxu1 %v3727_v51  ;;  %3456 = vmatpush3.bf16.msra.mxu0 %v3729_v25 }
 0x8ca   :  { %3461 = vmatprep.subr.bf16.mxu1 %v3878_v0  ;;  %3469 = vmatprep.subr.bf16.mxu0 %v3878_v0 }
 0x983   :  { %v642_v54 = vpop.f32.mrf.mxu1  ;;  %v701_v55 = vpop.f32.mrf.mxu0 }
 0x984   :  { %v643_v56 = vadd.f32 %v4134_v52, %v642_v54  ;;  %v702_v57 = vadd.f32 %v3086_v53, %v701_v55 }
 0x985   :  { %v3435_v58 = vpop.f32.mrf.mxu1  ;;  %v3443_v59 = vpop.f32.mrf.mxu0 }
 0x986   :  { %648 = vst.msk [vmem:[%s4734_s14] sm:$0xff] %vm57_vm1, %v643_v56  ;;  %v3090_v60 = vmul.f32 -1.442695, %v702_v57  ;;  %v960_v33 = vpack.c.bf16 %v643_v56, %v643_v56  ;;  %v3109_v57 = vld [vmem:[%s4726_s3 + $0x18] sm:$0xff] }
 0x987   :  { %v645_v61 = vpop.f32.mrf.mxu1  ;;  %v704_v62 = vpop.f32.mrf.mxu0 }
 0x988   :  { %3782 = vpow2.f32 %v3090_v60 }
 0x989   :  { %v3436_v63 = vpop.f32.mrf.mxu1  ;;  %v3444_v3 = vpop.f32.mrf.mxu0 }
 0x995   :  { %v3783_v4 = vpop.eup %3782 }
 0x996   :  { %v710_v6 = vadd.f32 1.0, %v3783_v4 }
 0x998   :  { %3784 = vrcp.f32 %v710_v6 }
 0x9a5   :  { %v3785_v7 = vpop.eup %3784 }
 0x9a6   :  { %v713_v9 = vmul.f32 0.8, %v3785_v7  ;;  %v714_v21 = vmul.f32 0.4, %v3785_v7 }
 0x9a8   :  { %v719_v11 = vmul.f32 %v717_v10, %v713_v9  ;;  %v3113_v9 = vld [vmem:[%s4727_s4 + $0x18] sm:$0xff] }
 0x9aa   :  { %v724_v2 = vpack.c.bf16 %v719_v11, %v719_v11 }
 0x9ac   :  { %3450 = vmatmul.mubr.msk.bf16.vlgmr.msra.gmra.mxu1 %vm176_vm3, %v724_v2 }
 0x9ad   :  { %3465 = vmatprep.mubr.msk.bf16.mxu1 %vm3879_vm2, %v3878_v0  ;;  %3462 = vmatpush3.bf16.msra.mxu1 %v3730_v34 }
 0x9ae   :  { %3463 = vmatprep.subr.bf16.mxu1 %v3878_v0 }
 0x9b1   :  { %3464 = vmatpush3.bf16.msra.mxu1 %v3731_v35 }
 0x9b2   :  { %3475 = vmatprep.subr.bf16.mxu1 %v3878_v0 }
 0xa6c   :  { %v776_v13 = vpop.f32.mrf.mxu1 }
 0xa6d   :  { %v777_v14 = vadd.f32 %v3091_v12, %v776_v13 }
 0xa6e   :  { %v3451_v15 = vpop.f32.mrf.mxu1 }
 0xa6f   :  { %3786 = vtanh.f32 %v777_v14 }
 0xa70   :  { %v779_v16 = vpop.f32.mrf.mxu1 }
 0xa72   :  { %v3452_v17 = vpop.f32.mrf.mxu1 }
 0xa7c   :  { %v3787_v18 = vpop.eup %3786 }
 0xa7d   :  { %v785_v19 = vsub.f32 %v3787_v18, %v717_v10 }
 0xa7f   :  { %787 = vrot.lane.b32.xlu0 %v785_v19, %s3880_s30 }
 0xaf1   :  { %v788_v22 = vpop.permute.xlu0 %787 }
 0xaf2   :  { %v790_v23 = vmul.f32 %v788_v22, %v714_v21  ;;  %v3114_v21 = vld [vmem:[%s4731_s1 + $0x8] sm:$0xff] }
 0xaf4   :  { %792 = vrot.lane.b32.xlu1 %v790_v23, %s3881_s17 }
 0xb66   :  { %v793_v27 = vpop.permute.xlu1 %792 }
 0xb67   :  { %v795_v28 = vmul.f32 %v3095_v26, %v793_v27 }
 0xb69   :  { %797 = vrot.lane.b32.xlu0 %v795_v28, %s3880_s30 }
 0xbdb   :  { %v798_v29 = vpop.permute.xlu0 %797 }
 0xbdc   :  { %v4165_v30 = vadd.f32 %v798_v29, %v4110_v47 }
 0xbde   :  { %875 = vrot.lane.b32.xlu0 %v4165_v30, %s3881_s17  ;;  %v805_v31 = vpack.c.bf16 %v4165_v30, %v4165_v30 }
 0xbe0   :  { %809 = vrot.lane.b32.xlu1 %v805_v31, %s3881_s17 }
 0xc50   :  { %v876_v54 = vpop.permute.xlu0 %875 }
 0xc52   :  { %v810_v32 = vpop.permute.xlu1 %809 }
 0xc53   :  { %3458 = vmatmul.mubr.msk.bf16.vlgmr.msra.gmra.mxu0 %vm176_vm3, %v810_v32  ;;  %v3732_v32 = vld [vmem:[%s4722_s7 + $0x8] sm:$0xff]  }
 0xc54   :  { %3470 = vmatpush3.bf16.msra.mxu0 %v4059_v8  ;;  %3471 = vmatprep.mubr.msk.bf16.mxu0 %vm3879_vm2, %v3878_v0 }
 0xc55   :  { %3483 = vmatprep.subr.bf16.mxu0 %v3878_v0 }
 0xc5b   :  { %3472 = vmatmul.mubr.msk.bf16.vlgmr.msra.gmra.mxu0 %vm57_vm1, %v960_v33  ;;  %v3733_v33 = vld [vmem:[%s4722_s7] sm:$0xff]  }
 0xc5c   :  { %3484 = vmatpush3.bf16.msra.mxu0 %v4093_v38  ;;  %3487 = vmatprep.mubr.msk.bf16.mxu0 %vm3879_vm2, %v3878_v0 }
 0xc5d   :  { %3485 = vmatprep.subr.bf16.mxu0 %v3878_v0 }
 0xc60   :  { %3486 = vmatpush3.bf16.msra.mxu0 %v4103_v40 }
 0xc61   :  { %3499 = vmatprep.subr.bf16.mxu0 %v3878_v0 }
 0xd13   :  { %v860_v37 = vpop.f32.mrf.mxu0 }
 0xd14   :  { %v861_v39 = vadd.f32 %v3100_v36, %v860_v37 }
 0xd15   :  { %v3459_v41 = vpop.f32.mrf.mxu0 }
 0xd16   :  { %v3104_v42 = vmul.f32 -1.442695, %v861_v39 }
 0xd17   :  { %v863_v43 = vpop.f32.mrf.mxu0 }
 0xd18   :  { %3788 = vpow2.f32 %v3104_v42 }
 0xd19   :  { %v3460_v44 = vpop.f32.mrf.mxu0 }
 0xd1a   :  { %v3734_v44 = vld [vmem:[%s4724_s8 + $0x8] sm:$0xff]  }
 0xd1b   :  { %v1000_v45 = vpop.f32.mrf.mxu0 }
 0xd1c   :  { %v1001_v22 = vadd.f32 %v3114_v21, %v1000_v45  ;;  %v3735_v45 = vld [vmem:[%s4724_s8] sm:$0xff]  }
 0xd1d   :  { %v3473_v46 = vpop.f32.mrf.mxu0 }
 0xd1e   :  { %v3120_v46 = vld [vmem:[%s4725_s2 + $0x20] sm:$0xff] }
 0xd1f   :  { %v1003_v47 = vpop.f32.mrf.mxu0 }
 0xd21   :  { %v3474_v48 = vpop.f32.mrf.mxu0 }
 0xd25   :  { %v3789_v49 = vpop.eup %3788 }
 0xd26   :  { %v869_v50 = vadd.f32 1.0, %v3789_v49 }
 0xd28   :  { %3790 = vrcp.f32 %v869_v50 }
 0xd35   :  { %v3791_v51 = vpop.eup %3790 }
 0xd36   :  { %v872_v53 = vmul.f32 0.8, %v3791_v51  ;;  %v873_v4 = vmul.f32 0.4, %v3791_v51 }
 0xd38   :  { %v878_v55 = vmul.f32 %v876_v54, %v872_v53 }
 0xd3a   :  { %v883_v56 = vpack.c.bf16 %v878_v55, %v878_v55 }
 0xd3c   :  { %3466 = vmatmul.mubr.msk.bf16.vlgmr.msra.gmra.mxu1 %vm176_vm3, %v883_v56 }
 0xd3d   :  { %3476 = vmatpush3.bf16.msra.mxu1 %v4044_v1  ;;  %3479 = vmatprep.mubr.msk.bf16.mxu1 %vm3879_vm2, %v3878_v0 }
 0xd3e   :  { %3477 = vmatprep.subr.bf16.mxu1 %v3878_v0 }
 0xd41   :  { %3478 = vmatpush3.bf16.msra.mxu1 %v4052_v5 }
 0xd42   :  { %3491 = vmatprep.subr.bf16.mxu1 %v3878_v0 }
 0xdfc   :  { %v935_v58 = vpop.f32.mrf.mxu1 }
 0xdfd   :  { %v936_v59 = vadd.f32 %v3109_v57, %v935_v58 }
 0xdfe   :  { %v3467_v60 = vpop.f32.mrf.mxu1 }
 0xdff   :  { %3792 = vtanh.f32 %v936_v59 }
 0xe00   :  { %v938_v61 = vpop.f32.mrf.mxu1 }
 0xe02   :  { %v3468_v62 = vpop.f32.mrf.mxu1 }
 0xe0c   :  { %v3793_v63 = vpop.eup %3792 }
 0xe0d   :  { %v944_v3 = vsub.f32 %v3793_v63, %v876_v54 }
 0xe0f   :  { %946 = vrot.lane.b32.xlu1 %v944_v3, %s3880_s30 }
 0xe81   :  { %v947_v6 = vpop.permute.xlu1 %946 }
 0xe82   :  { %v949_v7 = vmul.f32 %v947_v6, %v873_v4  ;;  %v3125_v6 = vld [vmem:[%s4726_s3 + $0x20] sm:$0xff] }
 0xe84   :  { %951 = vrot.lane.b32.xlu0 %v949_v7, %s3881_s17 }
 0xef6   :  { %v952_v10 = vpop.permute.xlu0 %951 }
 0xef7   :  { %v954_v11 = vmul.f32 %v3113_v9, %v952_v10 }
 0xef9   :  { %956 = vrot.lane.b32.xlu1 %v954_v11, %s3880_s30 }
 0xf6b   :  { %v957_v2 = vpop.permute.xlu1 %956 }
 0xf6c   :  { %v959_v12 = vadd.f32 %v957_v2, %v4165_v30 }
 0xf6e   :  { %v1006_v13 = vpack.c.bf16 %v959_v12, %v959_v12 }
 0xf70   :  { %1008 = vrot.lane.b32.xlu0 %v1006_v13, %s3881_s17 }
 0xfe2   :  { %v1009_v14 = vpop.permute.xlu0 %1008 }
 0xfe3   :  { %3480 = vmatmul.mubr.msk.bf16.vlgmr.msra.gmra.mxu1 %vm176_vm3, %v1009_v14 }
 0xfe4   :  { %3495 = vmatprep.mubr.msk.bf16.mxu1 %vm3879_vm2, %v3878_v0  ;;  %3492 = vmatpush3.bf16.msra.mxu1 %v3732_v32 }
 0xfe5   :  { %3493 = vmatprep.subr.bf16.mxu1 %v3878_v0 }
 0xfe8   :  { %3494 = vmatpush3.bf16.msra.mxu1 %v3733_v33 }
 0xfe9   :  { %3507 = vmatprep.subr.bf16.mxu1 %v3878_v0 }
0x10a3   :  { %v1047_v15 = vpop.f32.mrf.mxu1 }
0x10a4   :  { %v1048_v16 = vadd.f32 %v4078_v20, %v1047_v15 }
0x10a5   :  { %v3481_v17 = vpop.f32.mrf.mxu1 }
0x10a6   :  { %1061 = vrot.lane.b32.xlu1 %v1048_v16, %s3882_s5  ;;  %v1053_v23 = vadd.f32 %v1048_v16, %v1001_v22  ;;  %v3736_v17 = vld [vmem:[%s4722_s7 + $0x18] sm:$0xff]  }
0x10a7   :  { %v1050_v18 = vpop.f32.mrf.mxu1 }
0x10a8   :  { %v3117_v24 = vmul.f32 -1.442695, %v1053_v23  ;;  %v3737_v18 = vld [vmem:[%s4722_s7 + $0x10] sm:$0xff]  }
0x10a9   :  { %v3482_v19 = vpop.f32.mrf.mxu1 }
0x10aa   :  { %3794 = vpow2.f32 %v3117_v24  ;;  %v3129_v19 = vld [vmem:[%s4727_s4 + $0x20] sm:$0xff] }
0x10b7   :  { %v3795_v25 = vpop.eup %3794 }
0x10b8   :  { %v1057_v26 = vadd.f32 1.0, %v3795_v25 }
0x10ba   :  { %3796 = vrcp.f32 %v1057_v26 }
0x10c7   :  { %v3797_v27 = vpop.eup %3796 }
0x10c8   :  { %v1071_v35 = vsub.f32 1.0, %v3797_v27  ;;  %v1077_v37 = vmul.f32 %v3797_v27, %v959_v12 }
0x1118   :  { %v1062_v28 = vpop.permute.xlu1 %1061 }
0x1119   :  { %v1064_v29 = vmul.f32 %v3797_v27, %v1062_v28  ;;  %v3738_v28 = vld [vmem:[%s4724_s8 + $0x18] sm:$0xff]  }
0x111b   :  { %1066 = vrot.lane.b32.xlu0 %v1064_v29, %s3882_s5  ;;  %v3739_v29 = vld [vmem:[%s4724_s8 + $0x10] sm:$0xff]  }
0x118d   :  { %v1067_v30 = vpop.permute.xlu0 %1066 }
0x118e   :  { %v1069_v31 = vadd.f32 %v1067_v30, %v1001_v22  ;;  %v3134_v30 = vld [vmem:[%s4725_s2 + $0x28] sm:$0xff] }
0x1190   :  { %3798 = vtanh.f32 %v1069_v31 }
0x119d   :  { %v3799_v34 = vpop.eup %3798 }
0x119e   :  { %1073 = vrot.lane.b32.xlu1 %v3799_v34, %s3881_s17 }
0x1210   :  { %v1074_v36 = vpop.permute.xlu1 %1073 }
0x1211   :  { %v1076_v39 = vmul.f32 %v1074_v36, %v1071_v35 }
0x1213   :  { %v4231_v41 = vadd.f32 %v1077_v37, %v1076_v39 }
0x1215   :  { %1195 = vrot.lane.b32.xlu1 %v4231_v41, %s3881_s17  ;;  %v1079_v42 = vpack.c.bf16 %v4231_v41, %v4231_v41 }
0x1217   :  { %1081 = vrot.lane.b32.xlu0 %v1079_v42, %s3881_s17 }
0x1287   :  { %v1196_v63 = vpop.permute.xlu1 %1195 }
0x1289   :  { %v1082_v43 = vpop.permute.xlu0 %1081 }
0x128a   :  { %3488 = vmatmul.mubr.msk.bf16.vlgmr.msra.gmra.mxu0 %vm176_vm3, %v1082_v43  ;;  %3496 = vmatmul.mubr.msk.bf16.vlgmr.msra.gmra.mxu1 %vm176_vm3, %v1082_v43 }
0x128b   :  { %3503 = vmatprep.mubr.msk.bf16.mxu0 %vm3879_vm2, %v3878_v0  ;;  %3511 = vmatprep.mubr.msk.bf16.mxu1 %vm3879_vm2, %v3878_v0 }
0x128c   :  { %3500 = vmatpush3.bf16.msra.mxu0 %v3734_v44  ;;  %3508 = vmatpush3.bf16.msra.mxu1 %v3736_v17 }
0x128d   :  { %3501 = vmatprep.subr.bf16.mxu0 %v3878_v0  ;;  %3509 = vmatprep.subr.bf16.mxu1 %v3878_v0 }
0x1290   :  { %3502 = vmatpush3.bf16.msra.mxu0 %v3735_v45  ;;  %3510 = vmatpush3.bf16.msra.mxu1 %v3737_v18 }
0x1291   :  { %3515 = vmatprep.subr.bf16.mxu0 %v3878_v0  ;;  %3523 = vmatprep.subr.bf16.mxu1 %v3878_v0 }
0x134a   :  { %v1120_v47 = vpop.f32.mrf.mxu0  ;;  %v1180_v48 = vpop.f32.mrf.mxu1 }
0x134b   :  { %v1121_v49 = vadd.f32 %v4134_v52, %v1120_v47  ;;  %v1181_v50 = vadd.f32 %v3120_v46, %v1180_v48 }
0x134c   :  { %v3489_v51 = vpop.f32.mrf.mxu0  ;;  %v3497_v53 = vpop.f32.mrf.mxu1 }
0x134d   :  { %3119 = vst.msk [vmem:[%s4734_s14 + $0x8] sm:$0xff] %vm57_vm1, %v1121_v49  ;;  %v3124_v54 = vmul.f32 -1.442695, %v1181_v50  ;;  %v1439_v27 = vpack.c.bf16 %v1121_v49, %v1121_v49  ;;  %v3143_v50 = vld [vmem:[%s4726_s3 + $0x28] sm:$0xff] }
0x134e   :  { %v1123_v55 = vpop.f32.mrf.mxu0  ;;  %v1183_v56 = vpop.f32.mrf.mxu1 }
0x134f   :  { %3800 = vpow2.f32 %v3124_v54 }
0x1350   :  { %v3490_v57 = vpop.f32.mrf.mxu0  ;;  %v3498_v58 = vpop.f32.mrf.mxu1 }
0x135c   :  { %v3801_v59 = vpop.eup %3800 }
0x135d   :  { %v1189_v60 = vadd.f32 1.0, %v3801_v59 }
0x135f   :  { %3802 = vrcp.f32 %v1189_v60 }
0x136c   :  { %v3803_v61 = vpop.eup %3802 }
0x136d   :  { %v1192_v62 = vmul.f32 0.8, %v3803_v61  ;;  %v1193_v14 = vmul.f32 0.4, %v3803_v61 }
0x136f   :  { %v1198_v3 = vmul.f32 %v1196_v63, %v1192_v62 }
0x1371   :  { %v1203_v4 = vpack.c.bf16 %v1198_v3, %v1198_v3 }
0x1373   :  { %3504 = vmatmul.mubr.msk.bf16.vlgmr.msra.gmra.mxu0 %vm176_vm3, %v1203_v4 }
0x1374   :  { %3519 = vmatprep.mubr.msk.bf16.mxu0 %vm3879_vm2, %v3878_v0  ;;  %3516 = vmatpush3.bf16.msra.mxu0 %v3738_v28 }
0x1375   :  { %3517 = vmatprep.subr.bf16.mxu0 %v3878_v0 }
0x1378   :  { %3518 = vmatpush3.bf16.msra.mxu0 %v3739_v29 }
0x1379   :  { %3529 = vmatprep.subr.bf16.mxu0 %v3878_v0 }
0x1433   :  { %v1255_v7 = vpop.f32.mrf.mxu0 }
0x1434   :  { %v1256_v9 = vadd.f32 %v3125_v6, %v1255_v7 }
0x1435   :  { %v3505_v10 = vpop.f32.mrf.mxu0 }
0x1436   :  { %3804 = vtanh.f32 %v1256_v9 }
0x1437   :  { %v1258_v11 = vpop.f32.mrf.mxu0 }
0x1439   :  { %v3506_v2 = vpop.f32.mrf.mxu0 }
0x1443   :  { %v3805_v12 = vpop.eup %3804 }
0x1444   :  { %v1264_v13 = vsub.f32 %v3805_v12, %v1196_v63  ;;  %v3148_v12 = vld [vmem:[%s4731_s1 + $0x10] sm:$0xff] }
0x1446   :  { %1266 = vrot.lane.b32.xlu0 %v1264_v13, %s3880_s30 }
0x14b8   :  { %v1267_v15 = vpop.permute.xlu0 %1266 }
0x14b9   :  { %v1269_v16 = vmul.f32 %v1267_v15, %v1193_v14 }
0x14bb   :  { %1271 = vrot.lane.b32.xlu1 %v1269_v16, %s3881_s17 }
0x152d   :  { %v1272_v21 = vpop.permute.xlu1 %1271 }
0x152e   :  { %v1274_v22 = vmul.f32 %v3129_v19, %v1272_v21 }
0x1530   :  { %1276 = vrot.lane.b32.xlu0 %v1274_v22, %s3880_s30 }
0x15a2   :  { %v1277_v23 = vpop.permute.xlu0 %1276 }
0x15a3   :  { %v4281_v24 = vadd.f32 %v1277_v23, %v4231_v41  ;;  %v3740_v23 = vld [vmem:[%s4722_s7 + $0x8] sm:$0xff]  }
0x15a5   :  { %1354 = vrot.lane.b32.xlu0 %v4281_v24, %s3881_s17  ;;  %v1284_v25 = vpack.c.bf16 %v4281_v24, %v4281_v24 }
0x15a7   :  { %1288 = vrot.lane.b32.xlu1 %v1284_v25, %s3881_s17 }
0x1617   :  { %v1355_v47 = vpop.permute.xlu0 %1354 }
0x1619   :  { %v1289_v26 = vpop.permute.xlu1 %1288 }
0x161a   :  { %3512 = vmatmul.mubr.msk.bf16.vlgmr.msra.gmra.mxu1 %vm176_vm3, %v1289_v26 }
0x161b   :  { %3524 = vmatpush3.bf16.msra.mxu1 %v4059_v8  ;;  %3525 = vmatprep.mubr.msk.bf16.mxu1 %vm3879_vm2, %v3878_v0 }
0x161c   :  { %3537 = vmatprep.subr.bf16.mxu1 %v3878_v0 }
0x1622   :  { %3526 = vmatmul.mubr.msk.bf16.vlgmr.msra.gmra.mxu1 %vm57_vm1, %v1439_v27 }
0x1623   :  { %3538 = vmatpush3.bf16.msra.mxu1 %v4093_v38  ;;  %3541 = vmatprep.mubr.msk.bf16.mxu1 %vm3879_vm2, %v3878_v0 }
0x1624   :  { %3539 = vmatprep.subr.bf16.mxu1 %v3878_v0 }
0x1627   :  { %3540 = vmatpush3.bf16.msra.mxu1 %v4103_v40 }
0x1628   :  { %3553 = vmatprep.subr.bf16.mxu1 %v3878_v0 }
0x16da   :  { %v1339_v31 = vpop.f32.mrf.mxu1 }
0x16db   :  { %v1340_v32 = vadd.f32 %v3134_v30, %v1339_v31 }
0x16dc   :  { %v3513_v33 = vpop.f32.mrf.mxu1 }
0x16dd   :  { %v3138_v34 = vmul.f32 -1.442695, %v1340_v32  ;;  %v3742_v33 = vld [vmem:[%s4724_s8 + $0x8] sm:$0xff]  }
0x16de   :  { %v1342_v35 = vpop.f32.mrf.mxu1 }
0x16df   :  { %3806 = vpow2.f32 %v3138_v34  ;;  %v3743_v34 = vld [vmem:[%s4724_s8] sm:$0xff]   ;;  %v3154_v35 = vld [vmem:[%s4725_s2 + $0x30] sm:$0xff] }
0x16e0   :  { %v3514_v36 = vpop.f32.mrf.mxu1 }
0x16e2   :  { %v1479_v37 = vpop.f32.mrf.mxu1 }
0x16e3   :  { %v1480_v13 = vadd.f32 %v3148_v12, %v1479_v37 }
0x16e4   :  { %v3527_v39 = vpop.f32.mrf.mxu1 }
0x16e6   :  { %v1482_v41 = vpop.f32.mrf.mxu1 }
0x16e8   :  { %v3528_v42 = vpop.f32.mrf.mxu1 }
0x16ec   :  { %v3807_v43 = vpop.eup %3806 }
0x16ed   :  { %v1348_v44 = vadd.f32 1.0, %v3807_v43 }
0x16ef   :  { %3808 = vrcp.f32 %v1348_v44 }
0x16fc   :  { %v3809_v45 = vpop.eup %3808 }
0x16fd   :  { %v1351_v46 = vmul.f32 0.8, %v3809_v45  ;;  %v1352_v58 = vmul.f32 0.4, %v3809_v45 }
0x16ff   :  { %v1357_v48 = vmul.f32 %v1355_v47, %v1351_v46 }
0x1701   :  { %v1362_v49 = vpack.c.bf16 %v1357_v48, %v1357_v48 }
0x1703   :  { %3520 = vmatmul.mubr.msk.bf16.vlgmr.msra.gmra.mxu0 %vm176_vm3, %v1362_v49 }
0x1704   :  { %3530 = vmatpush3.bf16.msra.mxu0 %v4044_v1  ;;  %3533 = vmatprep.mubr.msk.bf16.mxu0 %vm3879_vm2, %v3878_v0 }
0x1705   :  { %3531 = vmatprep.subr.bf16.mxu0 %v3878_v0 }
0x1708   :  { %3532 = vmatpush3.bf16.msra.mxu0 %v4052_v5  ;;  %v3147_v5 = vld [vmem:[%s4727_s4 + $0x28] sm:$0xff] }
0x1709   :  { %3545 = vmatprep.subr.bf16.mxu0 %v3878_v0 }
0x17c3   :  { %v1414_v51 = vpop.f32.mrf.mxu0 }
0x17c4   :  { %v1415_v53 = vadd.f32 %v3143_v50, %v1414_v51 }
0x17c5   :  { %v3521_v54 = vpop.f32.mrf.mxu0 }
0x17c6   :  { %3810 = vtanh.f32 %v1415_v53 }
0x17c7   :  { %v1417_v55 = vpop.f32.mrf.mxu0 }
0x17c9   :  { %v3522_v56 = vpop.f32.mrf.mxu0 }
0x17ca   :  { %v3159_v56 = vld [vmem:[%s4726_s3 + $0x30] sm:$0xff] }
0x17d3   :  { %v3811_v1 = vpop.eup %3810 }
0x17d4   :  { %v1423_v57 = vsub.f32 %v3811_v1, %v1355_v47 }
0x17d6   :  { %1425 = vrot.lane.b32.xlu1 %v1423_v57, %s3880_s30 }
0x1848   :  { %v1426_v59 = vpop.permute.xlu1 %1425 }
0x1849   :  { %v1428_v60 = vmul.f32 %v1426_v59, %v1352_v58 }
0x184b   :  { %1430 = vrot.lane.b32.xlu0 %v1428_v60, %s3881_s17 }
0x18bd   :  { %v1431_v61 = vpop.permute.xlu0 %1430 }
0x18be   :  { %v1433_v62 = vmul.f32 %v3147_v5, %v1431_v61 }
0x18c0   :  { %1435 = vrot.lane.b32.xlu1 %v1433_v62, %s3880_s30 }
0x1932   :  { %v1436_v63 = vpop.permute.xlu1 %1435 }
0x1933   :  { %v1438_v3 = vadd.f32 %v1436_v63, %v4281_v24  ;;  %v3741_v24 = vld [vmem:[%s4722_s7] sm:$0xff]  }
0x1935   :  { %v1485_v4 = vpack.c.bf16 %v1438_v3, %v1438_v3 }
0x1937   :  { %1487 = vrot.lane.b32.xlu0 %v1485_v4, %s3881_s17  ;;  %v3744_v4 = vld [vmem:[%s4722_s7 + $0x18] sm:$0xff]  }
0x19a9   :  { %v1488_v6 = vpop.permute.xlu0 %1487 }
0x19aa   :  { %3534 = vmatmul.mubr.msk.bf16.vlgmr.msra.gmra.mxu0 %vm176_vm3, %v1488_v6  ;;  %v3745_v6 = vld [vmem:[%s4722_s7 + $0x10] sm:$0xff]  }
0x19ab   :  { %3549 = vmatprep.mubr.msk.bf16.mxu0 %vm3879_vm2, %v3878_v0  ;;  %3546 = vmatpush3.bf16.msra.mxu0 %v3740_v23 }
0x19ac   :  { %3547 = vmatprep.subr.bf16.mxu0 %v3878_v0 }
0x19af   :  { %3548 = vmatpush3.bf16.msra.mxu0 %v3741_v24 }
0x19b0   :  { %3561 = vmatprep.subr.bf16.mxu0 %v3878_v0 }
0x1a6a   :  { %v1526_v7 = vpop.f32.mrf.mxu0 }
0x1a6b   :  { %v1527_v9 = vadd.f32 %v4078_v20, %v1526_v7  ;;  %v3163_v7 = vld [vmem:[%s4727_s4 + $0x30] sm:$0xff] }
0x1a6c   :  { %v3535_v10 = vpop.f32.mrf.mxu0 }
0x1a6d   :  { %1540 = vrot.lane.b32.xlu1 %v1527_v9, %s3882_s5  ;;  %v1532_v14 = vadd.f32 %v1527_v9, %v1480_v13 }
0x1a6e   :  { %v1529_v11 = vpop.f32.mrf.mxu0 }
0x1a6f   :  { %v3151_v15 = vmul.f32 -1.442695, %v1532_v14 }
0x1a70   :  { %v3536_v2 = vpop.f32.mrf.mxu0 }
0x1a71   :  { %3812 = vpow2.f32 %v3151_v15  ;;  %v3746_v15 = vld [vmem:[%s4724_s8 + $0x18] sm:$0xff]  }
0x1a7e   :  { %v3813_v16 = vpop.eup %3812 }
0x1a7f   :  { %v1536_v17 = vadd.f32 1.0, %v3813_v16  ;;  %v3747_v16 = vld [vmem:[%s4724_s8 + $0x10] sm:$0xff]  }
0x1a81   :  { %3814 = vrcp.f32 %v1536_v17 }
0x1a8e   :  { %v3815_v18 = vpop.eup %3814 }
0x1a8f   :  { %v1550_v26 = vsub.f32 1.0, %v3815_v18  ;;  %v1556_v28 = vmul.f32 %v3815_v18, %v1438_v3 }
0x1adf   :  { %v1541_v19 = vpop.permute.xlu1 %1540 }
0x1ae0   :  { %v1543_v21 = vmul.f32 %v3815_v18, %v1541_v19 }
0x1ae2   :  { %1545 = vrot.lane.b32.xlu0 %v1543_v21, %s3882_s5 }
0x1b54   :  { %v1546_v20 = vpop.permute.xlu0 %1545 }
0x1b55   :  { %v1548_v22 = vadd.f32 %v1546_v20, %v1480_v13 }
0x1b57   :  { %3816 = vtanh.f32 %v1548_v22 }
0x1b64   :  { %v3817_v25 = vpop.eup %3816 }
0x1b65   :  { %1552 = vrot.lane.b32.xlu1 %v3817_v25, %s3881_s17 }
0x1bd7   :  { %v1553_v27 = vpop.permute.xlu1 %1552 }
0x1bd8   :  { %v1555_v29 = vmul.f32 %v1553_v27, %v1550_v26 }
0x1bda   :  { %v4347_v30 = vadd.f32 %v1556_v28, %v1555_v29 }
0x1bdc   :  { %1674 = vrot.lane.b32.xlu1 %v4347_v30, %s3881_s17  ;;  %v1558_v31 = vpack.c.bf16 %v4347_v30, %v4347_v30 }
0x1bde   :  { %1560 = vrot.lane.b32.xlu0 %v1558_v31, %s3881_s17 }
0x1c50   :  { %v1561_v32 = vpop.permute.xlu0 %1560 }
0x1c51   :  { %3542 = vmatmul.mubr.msk.bf16.vlgmr.msra.gmra.mxu1 %vm176_vm3, %v1561_v32  ;;  %3550 = vmatmul.mubr.msk.bf16.vlgmr.msra.gmra.mxu0 %vm176_vm3, %v1561_v32 }
0x1c52   :  { %3557 = vmatprep.mubr.msk.bf16.mxu1 %vm3879_vm2, %v3878_v0  ;;  %3565 = vmatprep.mubr.msk.bf16.mxu0 %vm3879_vm2, %v3878_v0 }
0x1c53   :  { %3554 = vmatpush3.bf16.msra.mxu1 %v3742_v33  ;;  %3562 = vmatpush3.bf16.msra.mxu0 %v3744_v4  ;;  %v4431_v33 = vld [vmem:[%s4728_s10 + $0x8] sm:$0xff]  }
0x1c54   :  { %3555 = vmatprep.subr.bf16.mxu1 %v3878_v0  ;;  %3563 = vmatprep.subr.bf16.mxu0 %v3878_v0 }
0x1c57   :  { %3556 = vmatpush3.bf16.msra.mxu1 %v3743_v34  ;;  %3564 = vmatpush3.bf16.msra.mxu0 %v3745_v6  ;;  %v4440_v34 = vld [vmem:[%s4728_s10] sm:$0xff]  }
0x1c58   :  { %3569 = vmatprep.subr.bf16.mxu1 %v3878_v0  ;;  %3577 = vmatprep.subr.bf16.mxu0 %v3878_v0 }
0x1d11   :  { %v1599_v36 = vpop.f32.mrf.mxu1  ;;  %v1659_v37 = vpop.f32.mrf.mxu0 }
0x1d12   :  { %v1600_v39 = vadd.f32 %v4134_v52, %v1599_v36  ;;  %v1660_v41 = vadd.f32 %v3154_v35, %v1659_v37  ;;  %v1675_v52 = vpop.permute.xlu1 %1674  ;;  %v3177_v35 = vld [vmem:[%s4726_s3 + $0x38] sm:$0xff] }
0x1d13   :  { %v3543_v42 = vpop.f32.mrf.mxu1  ;;  %v3551_v43 = vpop.f32.mrf.mxu0 }
0x1d14   :  { %3153 = vst.msk [vmem:[%s4734_s14 + $0x10] sm:$0xff] %vm57_vm1, %v1600_v39  ;;  %v3158_v44 = vmul.f32 -1.442695, %v1660_v41  ;;  %v1918_v14 = vpack.c.bf16 %v1600_v39, %v1600_v39 }
0x1d15   :  { %v1602_v45 = vpop.f32.mrf.mxu1  ;;  %v1662_v46 = vpop.f32.mrf.mxu0 }
0x1d16   :  { %3818 = vpow2.f32 %v3158_v44 }
0x1d17   :  { %v3544_v47 = vpop.f32.mrf.mxu1  ;;  %v3552_v48 = vpop.f32.mrf.mxu0 }
0x1d18   :  { %v3181_v48 = vld [vmem:[%s4727_s4 + $0x38] sm:$0xff] }
0x1d23   :  { %v3819_v49 = vpop.eup %3818 }
0x1d24   :  { %v1668_v50 = vadd.f32 1.0, %v3819_v49 }
0x1d26   :  { %3820 = vrcp.f32 %v1668_v50 }
0x1d33   :  { %v3821_v51 = vpop.eup %3820 }
0x1d34   :  { %v1671_v53 = vmul.f32 0.8, %v3821_v51  ;;  %v1672_v62 = vmul.f32 0.4, %v3821_v51 }
0x1d36   :  { %v1677_v54 = vmul.f32 %v1675_v52, %v1671_v53 }
0x1d38   :  { %v1682_v55 = vpack.c.bf16 %v1677_v54, %v1677_v54 }
0x1d3a   :  { %3558 = vmatmul.mubr.msk.bf16.vlgmr.msra.gmra.mxu1 %vm176_vm3, %v1682_v55 }
0x1d3b   :  { %3573 = vmatprep.mubr.msk.bf16.mxu1 %vm3879_vm2, %v3878_v0  ;;  %3570 = vmatpush3.bf16.msra.mxu1 %v3746_v15 }
0x1d3c   :  { %3571 = vmatprep.subr.bf16.mxu1 %v3878_v0 }
0x1d3f   :  { %3572 = vmatpush3.bf16.msra.mxu1 %v3747_v16 }
0x1d40   :  { %3583 = vmatprep.subr.bf16.mxu1 %v3878_v0 }
0x1dfa   :  { %v1734_v1 = vpop.f32.mrf.mxu1 }
0x1dfb   :  { %v1735_v57 = vadd.f32 %v3159_v56, %v1734_v1  ;;  %v4461_v56 = vld [vmem:[%s4730_s11] ss:$0 sm:$0xff] }
0x1dfc   :  { %v3559_v58 = vpop.f32.mrf.mxu1 }
0x1dfd   :  { %3822 = vtanh.f32 %v1735_v57 }
0x1dfe   :  { %v1737_v59 = vpop.f32.mrf.mxu1 }
0x1e00   :  { %v3560_v60 = vpop.f32.mrf.mxu1 }
0x1e01   :  { %v3182_v60 = vld [vmem:[%s4731_s1 + $0x18] sm:$0xff] }
0x1e0a   :  { %v3823_v5 = vpop.eup %3822 }
0x1e0b   :  { %v1743_v61 = vsub.f32 %v3823_v5, %v1675_v52 }
0x1e0d   :  { %1745 = vrot.lane.b32.xlu0 %v1743_v61, %s3880_s30 }
0x1e7f   :  { %v1746_v63 = vpop.permute.xlu0 %1745 }
0x1e80   :  { %v1748_v3 = vmul.f32 %v1746_v63, %v1672_v62 }
0x1e82   :  { %1750 = vrot.lane.b32.xlu1 %v1748_v3, %s3881_s17 }
0x1ef4   :  { %v1751_v9 = vpop.permute.xlu1 %1750 }
0x1ef5   :  { %v1753_v10 = vmul.f32 %v3163_v7, %v1751_v9 }
0x1ef7   :  { %1755 = vrot.lane.b32.xlu0 %v1753_v10, %s3880_s30 }
0x1f69   :  { %v1756_v11 = vpop.permute.xlu0 %1755 }
0x1f6a   :  { %v4397_v2 = vadd.f32 %v1756_v11, %v4347_v30  ;;  %v3748_v11 = vld [vmem:[%s4722_s7 + $0x8] sm:$0xff]  }
0x1f6c   :  { %1833 = vrot.lane.b32.xlu0 %v4397_v2, %s3881_s17  ;;  %v1763_v12 = vpack.c.bf16 %v4397_v2, %v4397_v2 }
0x1f6e   :  { %1767 = vrot.lane.b32.xlu1 %v1763_v12, %s3881_s17 }
0x1fde   :  { %v1834_v30 = vpop.permute.xlu0 %1833 }
0x1fe0   :  { %v1768_v13 = vpop.permute.xlu1 %1767 }
0x1fe1   :  { %3566 = vmatmul.mubr.msk.bf16.vlgmr.msra.gmra.mxu0 %vm176_vm3, %v1768_v13 }
0x1fe2   :  { %3578 = vmatpush3.bf16.msra.mxu0 %v4059_v8  ;;  %3579 = vmatprep.mubr.msk.bf16.mxu0 %vm3879_vm2, %v3878_v0 }
0x1fe3   :  { %3591 = vmatprep.subr.bf16.mxu0 %v3878_v0 }
0x1fe9   :  { %3580 = vmatmul.mubr.msk.bf16.vlgmr.msra.gmra.mxu0 %vm57_vm1, %v1918_v14 }
0x1fea   :  { %3592 = vmatpush3.bf16.msra.mxu0 %v4093_v38  ;;  %3595 = vmatprep.mubr.msk.bf16.mxu0 %vm3879_vm2, %v3878_v0  ;;  %v3168_v38 = vld [vmem:[%s4725_s2 + $0x38] sm:$0xff] }
0x1feb   :  { %3593 = vmatprep.subr.bf16.mxu0 %v3878_v0 }
0x1fee   :  { %3594 = vmatpush3.bf16.msra.mxu0 %v4103_v40 }
0x1fef   :  { %3607 = vmatprep.subr.bf16.mxu0 %v3878_v0 }
0x20a1   :  { %v1818_v40 = vpop.f32.mrf.mxu0 }
0x20a2   :  { %v1819_v17 = vadd.f32 %v3168_v38, %v1818_v40 }
0x20a3   :  { %v3567_v18 = vpop.f32.mrf.mxu0 }
0x20a4   :  { %v3172_v19 = vmul.f32 -1.442695, %v1819_v17  ;;  %v3750_v18 = vld [vmem:[%s4724_s8 + $0x8] sm:$0xff]  }
0x20a5   :  { %v1821_v21 = vpop.f32.mrf.mxu0 }
0x20a6   :  { %3824 = vpow2.f32 %v3172_v19  ;;  %v3751_v19 = vld [vmem:[%s4724_s8] sm:$0xff]  }
0x20a7   :  { %v3568_v20 = vpop.f32.mrf.mxu0  ;;  %v3188_v21 = vld [vmem:[%s4725_s2 + $0x40] sm:$0xff] }
0x20a9   :  { %v1958_v22 = vpop.f32.mrf.mxu0 }
0x20aa   :  { %v1959_v5 = vadd.f32 %v3182_v60, %v1958_v22 }
0x20ab   :  { %v3581_v23 = vpop.f32.mrf.mxu0 }
0x20ac   :  { %v4505_v23 = vld [vmem:[%s4733_s13] ss:$0 sm:$0xff] }
0x20ad   :  { %v1961_v24 = vpop.f32.mrf.mxu0 }
0x20af   :  { %v3582_v25 = vpop.f32.mrf.mxu0 }
0x20b3   :  { %v3825_v26 = vpop.eup %3824 }
0x20b4   :  { %v1827_v27 = vadd.f32 1.0, %v3825_v26 }
0x20b6   :  { %3826 = vrcp.f32 %v1827_v27 }
0x20c3   :  { %v3827_v28 = vpop.eup %3826 }
0x20c4   :  { %v1830_v29 = vmul.f32 0.8, %v3827_v28  ;;  %v1831_v45 = vmul.f32 0.4, %v3827_v28 }
0x20c6   :  { %v1836_v31 = vmul.f32 %v1834_v30, %v1830_v29 }
0x20c8   :  { %v1841_v32 = vpack.c.bf16 %v1836_v31, %v1836_v31 }
0x20ca   :  { %3574 = vmatmul.mubr.msk.bf16.vlgmr.msra.gmra.mxu1 %vm176_vm3, %v1841_v32 }
0x20cb   :  { %3584 = vmatpush3.bf16.msra.mxu1 %v4431_v33  ;;  %3587 = vmatprep.mubr.msk.bf16.mxu1 %vm3879_vm2, %v3878_v0 }
0x20cc   :  { %3585 = vmatprep.subr.bf16.mxu1 %v3878_v0 }
0x20cf   :  { %3586 = vmatpush3.bf16.msra.mxu1 %v4440_v34 }
0x20d0   :  { %3599 = vmatprep.subr.bf16.mxu1 %v3878_v0 }
0x218a   :  { %v1893_v36 = vpop.f32.mrf.mxu1 }
0x218b   :  { %v1894_v37 = vadd.f32 %v3177_v35, %v1893_v36 }
0x218c   :  { %v3575_v39 = vpop.f32.mrf.mxu1 }
0x218d   :  { %3828 = vtanh.f32 %v1894_v37 }
0x218e   :  { %v1896_v41 = vpop.f32.mrf.mxu1 }
0x2190   :  { %v3576_v42 = vpop.f32.mrf.mxu1 }
0x219a   :  { %v3829_v43 = vpop.eup %3828 }
0x219b   :  { %v1902_v44 = vsub.f32 %v3829_v43, %v1834_v30 }
0x219d   :  { %1904 = vrot.lane.b32.xlu1 %v1902_v44, %s3880_s30  ;;  %v3193_v44 = vld [vmem:[%s4726_s3 + $0x40] sm:$0xff] }
0x220f   :  { %v1905_v46 = vpop.permute.xlu1 %1904 }
0x2210   :  { %v1907_v47 = vmul.f32 %v1905_v46, %v1831_v45 }
0x2212   :  { %1909 = vrot.lane.b32.xlu0 %v1907_v47, %s3881_s17 }
0x2284   :  { %v1910_v49 = vpop.permute.xlu0 %1909 }
0x2285   :  { %v1912_v50 = vmul.f32 %v3181_v48, %v1910_v49 }
0x2287   :  { %1914 = vrot.lane.b32.xlu1 %v1912_v50, %s3880_s30 }
0x22f9   :  { %v1915_v51 = vpop.permute.xlu1 %1914 }
0x22fa   :  { %v1917_v53 = vadd.f32 %v1915_v51, %v4397_v2  ;;  %v3749_v2 = vld [vmem:[%s4722_s7] sm:$0xff]  }
0x22fc   :  { %v1964_v52 = vpack.c.bf16 %v1917_v53, %v1917_v53 }
0x22fe   :  { %1966 = vrot.lane.b32.xlu0 %v1964_v52, %s3881_s17 }
0x2370   :  { %v1967_v54 = vpop.permute.xlu0 %1966 }
0x2371   :  { %3588 = vmatmul.mubr.msk.bf16.vlgmr.msra.gmra.mxu1 %vm176_vm3, %v1967_v54 }
0x2372   :  { %3603 = vmatprep.mubr.msk.bf16.mxu1 %vm3879_vm2, %v3878_v0  ;;  %3600 = vmatpush3.bf16.msra.mxu1 %v3748_v11 }
0x2373   :  { %3601 = vmatprep.subr.bf16.mxu1 %v3878_v0 }
0x2376   :  { %3602 = vmatpush3.bf16.msra.mxu1 %v3749_v2 }
0x2377   :  { %3615 = vmatprep.subr.bf16.mxu1 %v3878_v0 }
0x2431   :  { %v2005_v55 = vpop.f32.mrf.mxu1 }
0x2432   :  { %v2006_v1 = vadd.f32 %v4461_v56, %v2005_v55  ;;  %v3752_v55 = vld [vmem:[%s4722_s7 + $0x18] sm:$0xff]  }
0x2433   :  { %v3589_v57 = vpop.f32.mrf.mxu1 }
0x2434   :  { %2019 = vrot.lane.b32.xlu1 %v2006_v1, %s3882_s5  ;;  %v2011_v61 = vadd.f32 %v2006_v1, %v1959_v5  ;;  %v3753_v1 = vld [vmem:[%s4722_s7 + $0x10] sm:$0xff]   ;;  %v3197_v57 = vld [vmem:[%s4727_s4 + $0x40] sm:$0xff] }
0x2435   :  { %v2008_v58 = vpop.f32.mrf.mxu1 }
0x2436   :  { %v3185_v62 = vmul.f32 -1.442695, %v2011_v61 }
0x2437   :  { %v3590_v59 = vpop.f32.mrf.mxu1 }
0x2438   :  { %3830 = vpow2.f32 %v3185_v62 }
0x2445   :  { %v3831_v63 = vpop.eup %3830 }
0x2446   :  { %v2015_v3 = vadd.f32 1.0, %v3831_v63 }
0x2448   :  { %3832 = vrcp.f32 %v2015_v3  ;;  %v4549_v3 = vld [vmem:[%s4732_s12 + $0x8] sm:$0xff]  }
0x2455   :  { %v3833_v4 = vpop.eup %3832 }
0x2456   :  { %v2029_v13 = vsub.f32 1.0, %v3833_v4  ;;  %v2035_v15 = vmul.f32 %v3833_v4, %v1917_v53 }
0x24a6   :  { %v2020_v6 = vpop.permute.xlu1 %2019 }
0x24a7   :  { %v2022_v7 = vmul.f32 %v3833_v4, %v2020_v6  ;;  %v4558_v4 = vld [vmem:[%s4732_s12] sm:$0xff]   ;;  %v3754_v6 = vld [vmem:[%s4724_s8 + $0x18] sm:$0xff]  }
0x24a9   :  { %2024 = vrot.lane.b32.xlu0 %v2022_v7, %s3882_s5  ;;  %v3755_v7 = vld [vmem:[%s4724_s8 + $0x10] sm:$0xff]  }
0x251b   :  { %v2025_v9 = vpop.permute.xlu0 %2024 }
0x251c   :  { %v2027_v10 = vadd.f32 %v2025_v9, %v1959_v5  ;;  %v3202_v9 = vld [vmem:[%s4725_s2 + $0x48] sm:$0xff] }
0x251e   :  { %3834 = vtanh.f32 %v2027_v10 }
0x252b   :  { %v3835_v12 = vpop.eup %3834 }
0x252c   :  { %2031 = vrot.lane.b32.xlu1 %v3835_v12, %s3881_s17 }
0x259e   :  { %v2032_v14 = vpop.permute.xlu1 %2031 }
0x259f   :  { %v2034_v16 = vmul.f32 %v2032_v14, %v2029_v13 }
0x25a1   :  { %v4478_v38 = vadd.f32 %v2035_v15, %v2034_v16 }
0x25a3   :  { %2153 = vrot.lane.b32.xlu1 %v4478_v38, %s3881_s17  ;;  %v2037_v40 = vpack.c.bf16 %v4478_v38, %v4478_v38 }
0x25a5   :  { %2039 = vrot.lane.b32.xlu0 %v2037_v40, %s3881_s17 }
0x2615   :  { %v2154_v41 = vpop.permute.xlu1 %2153 }
0x2617   :  { %v2040_v17 = vpop.permute.xlu0 %2039 }
0x2618   :  { %3596 = vmatmul.mubr.msk.bf16.vlgmr.msra.gmra.mxu0 %vm176_vm3, %v2040_v17  ;;  %3604 = vmatmul.mubr.msk.bf16.vlgmr.msra.gmra.mxu1 %vm176_vm3, %v2040_v17 }
0x2619   :  { %3611 = vmatprep.mubr.msk.bf16.mxu0 %vm3879_vm2, %v3878_v0  ;;  %3619 = vmatprep.mubr.msk.bf16.mxu1 %vm3879_vm2, %v3878_v0 }
0x261a   :  { %3608 = vmatpush3.bf16.msra.mxu0 %v3750_v18  ;;  %3616 = vmatpush3.bf16.msra.mxu1 %v3752_v55 }
0x261b   :  { %3609 = vmatprep.subr.bf16.mxu0 %v3878_v0  ;;  %3617 = vmatprep.subr.bf16.mxu1 %v3878_v0 }
0x261e   :  { %3610 = vmatpush3.bf16.msra.mxu0 %v3751_v19  ;;  %3618 = vmatpush3.bf16.msra.mxu1 %v3753_v1 }
0x261f   :  { %3623 = vmatprep.subr.bf16.mxu0 %v3878_v0  ;;  %3631 = vmatprep.subr.bf16.mxu1 %v3878_v0 }
0x26d8   :  { %v2078_v20 = vpop.f32.mrf.mxu0  ;;  %v2138_v22 = vpop.f32.mrf.mxu1 }
0x26d9   :  { %v2079_v24 = vadd.f32 %v4505_v23, %v2078_v20  ;;  %v2139_v25 = vadd.f32 %v3188_v21, %v2138_v22 }
0x26da   :  { %v3597_v26 = vpop.f32.mrf.mxu0  ;;  %v3605_v27 = vpop.f32.mrf.mxu1 }
0x26db   :  { %3187 = vst.msk [vmem:[%s4734_s14 + $0x18] sm:$0xff] %vm57_vm1, %v2079_v24  ;;  %v3192_v28 = vmul.f32 -1.442695, %v2139_v25  ;;  %v2397_v63 = vpack.c.bf16 %v2079_v24, %v2079_v24  ;;  %v3211_v25 = vld [vmem:[%s4726_s3 + $0x48] sm:$0xff] }
0x26dc   :  { %v2081_v29 = vpop.f32.mrf.mxu0  ;;  %v2141_v30 = vpop.f32.mrf.mxu1 }
0x26dd   :  { %3836 = vpow2.f32 %v3192_v28 }
0x26de   :  { %v3598_v31 = vpop.f32.mrf.mxu0  ;;  %v3606_v32 = vpop.f32.mrf.mxu1 }
0x26ea   :  { %v3837_v35 = vpop.eup %3836 }
0x26eb   :  { %v2147_v36 = vadd.f32 1.0, %v3837_v35 }
0x26ed   :  { %3838 = vrcp.f32 %v2147_v36 }
0x26fa   :  { %v3839_v37 = vpop.eup %3838 }
0x26fb   :  { %v2150_v39 = vmul.f32 0.8, %v3839_v37  ;;  %v2151_v53 = vmul.f32 0.4, %v3839_v37 }
0x26fd   :  { %v2156_v42 = vmul.f32 %v2154_v41, %v2150_v39  ;;  %v3215_v39 = vld [vmem:[%s4727_s4 + $0x48] sm:$0xff] }
0x26ff   :  { %v2161_v43 = vpack.c.bf16 %v2156_v42, %v2156_v42 }
0x2701   :  { %3612 = vmatmul.mubr.msk.bf16.vlgmr.msra.gmra.mxu0 %vm176_vm3, %v2161_v43 }
0x2702   :  { %3627 = vmatprep.mubr.msk.bf16.mxu0 %vm3879_vm2, %v3878_v0  ;;  %3624 = vmatpush3.bf16.msra.mxu0 %v3754_v6 }
0x2703   :  { %3625 = vmatprep.subr.bf16.mxu0 %v3878_v0 }
0x2706   :  { %3626 = vmatpush3.bf16.msra.mxu0 %v3755_v7 }
0x2707   :  { %3637 = vmatprep.subr.bf16.mxu0 %v3878_v0 }
0x27c1   :  { %v2213_v45 = vpop.f32.mrf.mxu0 }
0x27c2   :  { %v2214_v46 = vadd.f32 %v3193_v44, %v2213_v45 }
0x27c3   :  { %v3613_v47 = vpop.f32.mrf.mxu0 }
0x27c4   :  { %3840 = vtanh.f32 %v2214_v46 }
0x27c5   :  { %v2216_v48 = vpop.f32.mrf.mxu0 }
0x27c7   :  { %v3614_v49 = vpop.f32.mrf.mxu0 }
0x27d1   :  { %v3841_v50 = vpop.eup %3840 }
0x27d2   :  { %v2222_v51 = vsub.f32 %v3841_v50, %v2154_v41 }
0x27d4   :  { %2224 = vrot.lane.b32.xlu0 %v2222_v51, %s3880_s30 }
0x2846   :  { %v2225_v52 = vpop.permute.xlu0 %2224 }
0x2847   :  { %v2227_v54 = vmul.f32 %v2225_v52, %v2151_v53  ;;  %v3216_v53 = vld [vmem:[%s4731_s1 + $0x20] sm:$0xff] }
0x2849   :  { %2229 = vrot.lane.b32.xlu1 %v2227_v54, %s3881_s17 }
0x28bb   :  { %v2230_v58 = vpop.permute.xlu1 %2229 }
0x28bc   :  { %v2232_v59 = vmul.f32 %v3197_v57, %v2230_v58 }
0x28be   :  { %2234 = vrot.lane.b32.xlu0 %v2232_v59, %s3880_s30 }
0x2930   :  { %v2235_v60 = vpop.permute.xlu0 %2234 }
0x2931   :  { %v4533_v5 = vadd.f32 %v2235_v60, %v4478_v38 }
0x2933   :  { %2312 = vrot.lane.b32.xlu0 %v4533_v5, %s3881_s17  ;;  %v2242_v61 = vpack.c.bf16 %v4533_v5, %v4533_v5 }
0x2935   :  { %2246 = vrot.lane.b32.xlu1 %v2242_v61, %s3881_s17 }
0x29a5   :  { %v2313_v20 = vpop.permute.xlu0 %2312 }
0x29a7   :  { %v2247_v62 = vpop.permute.xlu1 %2246 }
0x29a8   :  { %3620 = vmatmul.mubr.msk.bf16.vlgmr.msra.gmra.mxu1 %vm176_vm3, %v2247_v62  ;;  %v3756_v62 = vld [vmem:[%s4722_s7 + $0x8] sm:$0xff]  }
0x29a9   :  { %3632 = vmatpush3.bf16.msra.mxu1 %v4059_v8  ;;  %3633 = vmatprep.mubr.msk.bf16.mxu1 %vm3879_vm2, %v3878_v0 }
0x29aa   :  { %3645 = vmatprep.subr.bf16.mxu1 %v3878_v0 }
0x29b0   :  { %3634 = vmatmul.mubr.msk.bf16.vlgmr.msra.gmra.mxu1 %vm57_vm1, %v2397_v63  ;;  %v3757_v63 = vld [vmem:[%s4722_s7] sm:$0xff]  }
0x29b1   :  { %3646 = vmatpush3.bf16.msra.mxu1 %v4549_v3  ;;  %3649 = vmatprep.mubr.msk.bf16.mxu1 %vm3879_vm2, %v3878_v0 }
0x29b2   :  { %3647 = vmatprep.subr.bf16.mxu1 %v3878_v0 }
0x29b5   :  { %3648 = vmatpush3.bf16.msra.mxu1 %v4558_v4 }
0x29b6   :  { %3661 = vmatprep.subr.bf16.mxu1 %v3878_v0 }
0x2a68   :  { %v2297_v10 = vpop.f32.mrf.mxu1 }
0x2a69   :  { %v2298_v11 = vadd.f32 %v3202_v9, %v2297_v10 }
0x2a6a   :  { %v3621_v2 = vpop.f32.mrf.mxu1 }
0x2a6b   :  { %v3206_v12 = vmul.f32 -1.442695, %v2298_v11 }
0x2a6c   :  { %v2300_v13 = vpop.f32.mrf.mxu1 }
0x2a6d   :  { %3842 = vpow2.f32 %v3206_v12 }
0x2a6e   :  { %v3622_v14 = vpop.f32.mrf.mxu1 }
0x2a6f   :  { %v3758_v14 = vld [vmem:[%s4724_s8 + $0x8] sm:$0xff]  }
0x2a70   :  { %v2437_v15 = vpop.f32.mrf.mxu1 }
0x2a71   :  { %v2438_v52 = vadd.f32 %v3216_v53, %v2437_v15  ;;  %v3759_v15 = vld [vmem:[%s4724_s8] sm:$0xff]  }
0x2a72   :  { %v3635_v16 = vpop.f32.mrf.mxu1 }
0x2a73   :  { %v3222_v16 = vld [vmem:[%s4725_s2 + $0x50] sm:$0xff] }
0x2a74   :  { %v2440_v38 = vpop.f32.mrf.mxu1 }
0x2a76   :  { %v3636_v40 = vpop.f32.mrf.mxu1 }
0x2a7a   :  { %v3843_v17 = vpop.eup %3842 }
0x2a7b   :  { %v2306_v18 = vadd.f32 1.0, %v3843_v17 }
0x2a7d   :  { %3844 = vrcp.f32 %v2306_v18 }
0x2a8a   :  { %v3845_v19 = vpop.eup %3844 }
0x2a8b   :  { %v2309_v21 = vmul.f32 0.8, %v3845_v19  ;;  %v2310_v35 = vmul.f32 0.4, %v3845_v19 }
0x2a8d   :  { %v2315_v22 = vmul.f32 %v2313_v20, %v2309_v21 }
0x2a8f   :  { %v2320_v24 = vpack.c.bf16 %v2315_v22, %v2315_v22 }
0x2a91   :  { %3628 = vmatmul.mubr.msk.bf16.vlgmr.msra.gmra.mxu0 %vm176_vm3, %v2320_v24 }
0x2a92   :  { %3638 = vmatpush3.bf16.msra.mxu0 %v4431_v33  ;;  %3641 = vmatprep.mubr.msk.bf16.mxu0 %vm3879_vm2, %v3878_v0 }
0x2a93   :  { %3639 = vmatprep.subr.bf16.mxu0 %v3878_v0 }
0x2a96   :  { %3640 = vmatpush3.bf16.msra.mxu0 %v4440_v34 }
0x2a97   :  { %3653 = vmatprep.subr.bf16.mxu0 %v3878_v0 }
0x2b51   :  { %v2372_v26 = vpop.f32.mrf.mxu0 }
0x2b52   :  { %v2373_v27 = vadd.f32 %v3211_v25, %v2372_v26 }
0x2b53   :  { %v3629_v28 = vpop.f32.mrf.mxu0 }
0x2b54   :  { %3846 = vtanh.f32 %v2373_v27 }
0x2b55   :  { %v2375_v29 = vpop.f32.mrf.mxu0 }
0x2b57   :  { %v3630_v30 = vpop.f32.mrf.mxu0 }
0x2b61   :  { %v3847_v31 = vpop.eup %3846 }
0x2b62   :  { %v2381_v32 = vsub.f32 %v3847_v31, %v2313_v20 }
0x2b64   :  { %2383 = vrot.lane.b32.xlu1 %v2381_v32, %s3880_s30 }
0x2bd6   :  { %v2384_v36 = vpop.permute.xlu1 %2383 }
0x2bd7   :  { %v2386_v37 = vmul.f32 %v2384_v36, %v2310_v35  ;;  %v3227_v36 = vld [vmem:[%s4726_s3 + $0x50] sm:$0xff] }
0x2bd9   :  { %2388 = vrot.lane.b32.xlu0 %v2386_v37, %s3881_s17 }
0x2c4b   :  { %v2389_v41 = vpop.permute.xlu0 %2388 }
0x2c4c   :  { %v2391_v42 = vmul.f32 %v3215_v39, %v2389_v41 }
0x2c4e   :  { %2393 = vrot.lane.b32.xlu1 %v2391_v42, %s3880_s30 }
0x2cc0   :  { %v2394_v43 = vpop.permute.xlu1 %2393 }
0x2cc1   :  { %v2396_v44 = vadd.f32 %v2394_v43, %v4533_v5 }
0x2cc3   :  { %v2443_v45 = vpack.c.bf16 %v2396_v44, %v2396_v44 }
0x2cc5   :  { %2445 = vrot.lane.b32.xlu0 %v2443_v45, %s3881_s17 }
0x2d37   :  { %v2446_v46 = vpop.permute.xlu0 %2445 }
0x2d38   :  { %3642 = vmatmul.mubr.msk.bf16.vlgmr.msra.gmra.mxu0 %vm176_vm3, %v2446_v46 }
0x2d39   :  { %3657 = vmatprep.mubr.msk.bf16.mxu0 %vm3879_vm2, %v3878_v0  ;;  %3654 = vmatpush3.bf16.msra.mxu0 %v3756_v62 }
0x2d3a   :  { %3655 = vmatprep.subr.bf16.mxu0 %v3878_v0 }
0x2d3d   :  { %3656 = vmatpush3.bf16.msra.mxu0 %v3757_v63 }
0x2d3e   :  { %3669 = vmatprep.subr.bf16.mxu0 %v3878_v0 }
0x2df8   :  { %v2484_v47 = vpop.f32.mrf.mxu0 }
0x2df9   :  { %v2485_v48 = vadd.f32 %v4461_v56, %v2484_v47 }
0x2dfa   :  { %v3643_v49 = vpop.f32.mrf.mxu0 }
0x2dfb   :  { %2498 = vrot.lane.b32.xlu1 %v2485_v48, %s3882_s5  ;;  %v2490_v54 = vadd.f32 %v2485_v48, %v2438_v52  ;;  %v3760_v49 = vld [vmem:[%s4722_s7 + $0x18] sm:$0xff]  }
0x2dfc   :  { %v2487_v50 = vpop.f32.mrf.mxu0 }
0x2dfd   :  { %v3219_v55 = vmul.f32 -1.442695, %v2490_v54  ;;  %v3761_v50 = vld [vmem:[%s4722_s7 + $0x10] sm:$0xff]  }
0x2dfe   :  { %v3644_v51 = vpop.f32.mrf.mxu0 }
0x2dff   :  { %3848 = vpow2.f32 %v3219_v55  ;;  %v3231_v51 = vld [vmem:[%s4727_s4 + $0x50] sm:$0xff] }
0x2e0c   :  { %v3849_v1 = vpop.eup %3848 }
0x2e0d   :  { %v2494_v57 = vadd.f32 1.0, %v3849_v1 }
0x2e0f   :  { %3850 = vrcp.f32 %v2494_v57 }
0x2e1c   :  { %v3851_v58 = vpop.eup %3850 }
0x2e1d   :  { %v2508_v7 = vsub.f32 1.0, %v3851_v58  ;;  %v2514_v10 = vmul.f32 %v3851_v58, %v2396_v44 }
0x2e6d   :  { %v2499_v59 = vpop.permute.xlu1 %2498 }
0x2e6e   :  { %v2501_v60 = vmul.f32 %v3851_v58, %v2499_v59  ;;  %v3763_v59 = vld [vmem:[%s4724_s8 + $0x10] sm:$0xff]  }
0x2e70   :  { %2503 = vrot.lane.b32.xlu0 %v2501_v60, %s3882_s5 }
0x2ee2   :  { %v2504_v5 = vpop.permute.xlu0 %2503 }
0x2ee3   :  { %v2506_v61 = vadd.f32 %v2504_v5, %v2438_v52 }
0x2ee5   :  { %3852 = vtanh.f32 %v2506_v61 }
0x2ef2   :  { %v3853_v6 = vpop.eup %3852 }
0x2ef3   :  { %2510 = vrot.lane.b32.xlu1 %v3853_v6, %s3881_s17 }
0x2f65   :  { %v2511_v9 = vpop.permute.xlu1 %2510 }
0x2f66   :  { %v2513_v11 = vmul.f32 %v2511_v9, %v2508_v7 }
0x2f68   :  { %v4609_v2 = vadd.f32 %v2514_v10, %v2513_v11 }
0x2f6a   :  { %2632 = vrot.lane.b32.xlu1 %v4609_v2, %s3881_s17  ;;  %v2516_v12 = vpack.c.bf16 %v4609_v2, %v4609_v2 }
0x2f6c   :  { %2518 = vrot.lane.b32.xlu0 %v2516_v12, %s3881_s17 }
0x2fdc   :  { %v2633_v31 = vpop.permute.xlu1 %2632 }
0x2fde   :  { %v2519_v13 = vpop.permute.xlu0 %2518 }
0x2fdf   :  { %3650 = vmatmul.mubr.msk.bf16.vlgmr.msra.gmra.mxu1 %vm176_vm3, %v2519_v13  ;;  %3658 = vmatmul.mubr.msk.bf16.vlgmr.msra.gmra.mxu0 %vm176_vm3, %v2519_v13 }
0x2fe0   :  { %3665 = vmatprep.mubr.msk.bf16.mxu1 %vm3879_vm2, %v3878_v0  ;;  %3673 = vmatprep.mubr.msk.bf16.mxu0 %vm3879_vm2, %v3878_v0 }
0x2fe1   :  { %3662 = vmatpush3.bf16.msra.mxu1 %v3758_v14  ;;  %3670 = vmatpush3.bf16.msra.mxu0 %v3760_v49 }
0x2fe2   :  { %3663 = vmatprep.subr.bf16.mxu1 %v3878_v0  ;;  %3671 = vmatprep.subr.bf16.mxu0 %v3878_v0 }
0x2fe5   :  { %3664 = vmatpush3.bf16.msra.mxu1 %v3759_v15  ;;  %3672 = vmatpush3.bf16.msra.mxu0 %v3761_v50 }
0x2fe6   :  { %3677 = vmatprep.subr.bf16.mxu1 %v3878_v0  ;;  %3685 = vmatprep.subr.bf16.mxu0 %v3878_v0 }
0x309f   :  { %v2557_v38 = vpop.f32.mrf.mxu1  ;;  %v2617_v40 = vpop.f32.mrf.mxu0 }
0x30a0   :  { %v2558_v17 = vadd.f32 %v4505_v23, %v2557_v38  ;;  %v2618_v18 = vadd.f32 %v3222_v16, %v2617_v40  ;;  %v3245_v38 = vld [vmem:[%s4726_s3 + $0x58] sm:$0xff] }
0x30a1   :  { %v3651_v19 = vpop.f32.mrf.mxu1  ;;  %v3659_v21 = vpop.f32.mrf.mxu0 }
0x30a2   :  { %3221 = vst.msk [vmem:[%s4734_s14 + $0x20] sm:$0xff] %vm57_vm1, %v2558_v17  ;;  %v3226_v20 = vmul.f32 -1.442695, %v2618_v18  ;;  %v2876_v58 = vpack.c.bf16 %v2558_v17, %v2558_v17 }
0x30a3   :  { %v2560_v22 = vpop.f32.mrf.mxu1  ;;  %v2620_v24 = vpop.f32.mrf.mxu0 }
0x30a4   :  { %3854 = vpow2.f32 %v3226_v20 }
0x30a5   :  { %v3652_v25 = vpop.f32.mrf.mxu1  ;;  %v3660_v26 = vpop.f32.mrf.mxu0 }
0x30b1   :  { %v3855_v27 = vpop.eup %3854 }
0x30b2   :  { %v2626_v28 = vadd.f32 1.0, %v3855_v27 }
0x30b4   :  { %3856 = vrcp.f32 %v2626_v28 }
0x30c1   :  { %v3857_v29 = vpop.eup %3856 }
0x30c2   :  { %v2629_v30 = vmul.f32 0.8, %v3857_v29  ;;  %v2630_v46 = vmul.f32 0.4, %v3857_v29 }
0x30c4   :  { %v2635_v32 = vmul.f32 %v2633_v31, %v2629_v30 }
0x30c6   :  { %v2640_v35 = vpack.c.bf16 %v2635_v32, %v2635_v32 }
0x30c8   :  { %3666 = vmatmul.mubr.msk.bf16.vlgmr.msra.gmra.mxu1 %vm176_vm3, %v2640_v35 }
0x30c9   :  { %3681 = vmatprep.mubr.msk.bf16.mxu1 %vm3879_vm2, %v3878_v0 }
0x3188   :  { %v2692_v37 = vpop.f32.mrf.mxu1 }
0x3189   :  { %v2693_v39 = vadd.f32 %v3227_v36, %v2692_v37 }
0x318a   :  { %v3667_v41 = vpop.f32.mrf.mxu1 }
0x318b   :  { %3858 = vtanh.f32 %v2693_v39  ;;  %v3250_v39 = vld [vmem:[%s4731_s1 + $0x28] sm:$0xff] }
0x318c   :  { %v2695_v42 = vpop.f32.mrf.mxu1 }
0x318e   :  { %v3668_v43 = vpop.f32.mrf.mxu1 }
0x3198   :  { %v3859_v44 = vpop.eup %3858 }
0x3199   :  { %v2701_v45 = vsub.f32 %v3859_v44, %v2633_v31 }
0x319b   :  { %2703 = vrot.lane.b32.xlu0 %v2701_v45, %s3880_s30 }
0x320d   :  { %v2704_v47 = vpop.permute.xlu0 %2703 }
0x320e   :  { %v2706_v48 = vmul.f32 %v2704_v47, %v2630_v46 }
0x3210   :  { %2708 = vrot.lane.b32.xlu1 %v2706_v48, %s3881_s17 }
0x3282   :  { %v2709_v53 = vpop.permute.xlu1 %2708 }
0x3283   :  { %v2711_v52 = vmul.f32 %v3231_v51, %v2709_v53 }
0x3285   :  { %2713 = vrot.lane.b32.xlu0 %v2711_v52, %s3880_s30 }
0x32f7   :  { %v2714_v54 = vpop.permute.xlu0 %2713 }
0x32f8   :  { %v4659_v55 = vadd.f32 %v2714_v54, %v4609_v2 }
0x32fa   :  { %2791 = vrot.lane.b32.xlu0 %v4659_v55, %s3881_s17  ;;  %v2721_v1 = vpack.c.bf16 %v4659_v55, %v4659_v55 }
0x32fc   :  { %2725 = vrot.lane.b32.xlu1 %v2721_v1, %s3881_s17 }
0x336c   :  { %v2792_v14 = vpop.permute.xlu0 %2791 }
0x336e   :  { %v2726_v57 = vpop.permute.xlu1 %2725 }
0x336f   :  { %3674 = vmatmul.mubr.msk.bf16.vlgmr.msra.gmra.mxu0 %vm176_vm3, %v2726_v57 }
0x3370   :  { %3686 = vmatpush3.bf16.msra.mxu0 %v4059_v8  ;;  %3687 = vmatprep.mubr.msk.bf16.mxu0 %vm3879_vm2, %v3878_v0  ;;  %v3762_v8 = vld [vmem:[%s4724_s8 + $0x18] sm:$0xff]  }
0x3371   :  { %3699 = vmatprep.subr.bf16.mxu0 %v3878_v0  ;;  %3678 = vmatpush3.bf16.msra.mxu1 %v3762_v8 }
0x3372   :  { %3679 = vmatprep.subr.bf16.mxu1 %v3878_v0 }
0x3375   :  { %3680 = vmatpush3.bf16.msra.mxu1 %v3763_v59 }
0x3376   :  { %3691 = vmatprep.subr.bf16.mxu1 %v3878_v0 }
0x3377   :  { %3688 = vmatmul.mubr.msk.bf16.vlgmr.msra.gmra.mxu0 %vm57_vm1, %v2876_v58 }
0x3378   :  { %3700 = vmatpush3.bf16.msra.mxu0 %v4549_v3  ;;  %3703 = vmatprep.mubr.msk.bf16.mxu0 %vm3879_vm2, %v3878_v0  ;;  %v3236_v3 = vld [vmem:[%s4725_s2 + $0x58] sm:$0xff] }
0x3379   :  { %3701 = vmatprep.subr.bf16.mxu0 %v3878_v0 }
0x337c   :  { %3702 = vmatpush3.bf16.msra.mxu0 %v4558_v4 }
0x342f   :  { %v2776_v60 = vpop.f32.mrf.mxu0 }
0x3430   :  { %v2777_v4 = vadd.f32 %v3236_v3, %v2776_v60 }
0x3431   :  { %v3675_v5 = vpop.f32.mrf.mxu0 }
0x3432   :  { %v3240_v61 = vmul.f32 -1.442695, %v2777_v4 }
0x3433   :  { %v2779_v62 = vpop.f32.mrf.mxu0 }
0x3434   :  { %3860 = vpow2.f32 %v3240_v61 }
0x3435   :  { %v3676_v63 = vpop.f32.mrf.mxu0 }
0x3437   :  { %v2916_v6 = vpop.f32.mrf.mxu0 }
0x3438   :  { %v2917_v41 = vadd.f32 %v3250_v39, %v2916_v6 }
0x3439   :  { %v3689_v7 = vpop.f32.mrf.mxu0 }
0x343b   :  { %v2919_v9 = vpop.f32.mrf.mxu0 }
0x343d   :  { %v3690_v10 = vpop.f32.mrf.mxu0 }
0x3441   :  { %v3861_v11 = vpop.eup %3860 }
0x3442   :  { %v2785_v2 = vadd.f32 1.0, %v3861_v11 }
0x3444   :  { %3862 = vrcp.f32 %v2785_v2 }
0x3451   :  { %v3863_v12 = vpop.eup %3862 }
0x3452   :  { %v2788_v13 = vmul.f32 0.8, %v3863_v12 }
0x3454   :  { %v2794_v15 = vmul.f32 %v2792_v14, %v2788_v13 }
0x3456   :  { %v2799_v16 = vpack.c.bf16 %v2794_v15, %v2794_v15 }
0x3458   :  { %3682 = vmatmul.mubr.msk.bf16.vlgmr.msra.gmra.mxu1 %vm176_vm3, %v2799_v16 }
0x3459   :  { %3692 = vmatpush3.bf16.msra.mxu1 %v4431_v33  ;;  %3695 = vmatprep.mubr.msk.bf16.mxu1 %vm3879_vm2, %v3878_v0  ;;  %v2789_v33 = vmul.f32 0.4, %v3863_v12 }
0x345a   :  { %3693 = vmatprep.subr.bf16.mxu1 %v3878_v0  ;;  %v3249_v0 = vld [vmem:[%s4727_s4 + $0x58] sm:$0xff] }
0x345d   :  { %3694 = vmatpush3.bf16.msra.mxu1 %v4440_v34 }
0x3518   :  { %v2851_v40 = vpop.f32.mrf.mxu1 }
0x3519   :  { %v2852_v17 = vadd.f32 %v3245_v38, %v2851_v40 }
0x351a   :  { %v3683_v18 = vpop.f32.mrf.mxu1 }
0x351b   :  { %3864 = vtanh.f32 %v2852_v17 }
0x351c   :  { %v2854_v19 = vpop.f32.mrf.mxu1 }
0x351e   :  { %v3684_v21 = vpop.f32.mrf.mxu1 }
0x3528   :  { %v3865_v20 = vpop.eup %3864 }
0x3529   :  { %v2860_v22 = vsub.f32 %v3865_v20, %v2792_v14 }
0x352b   :  { %2862 = vrot.lane.b32.xlu1 %v2860_v22, %s3880_s30 }
0x359d   :  { %v2863_v24 = vpop.permute.xlu1 %2862 }
0x359e   :  { %v2865_v25 = vmul.f32 %v2863_v24, %v2789_v33 }
0x35a0   :  { %2867 = vrot.lane.b32.xlu0 %v2865_v25, %s3881_s17 }
0x3612   :  { %v2868_v34 = vpop.permute.xlu0 %2867 }
0x3613   :  { %v2870_v26 = vmul.f32 %v3249_v0, %v2868_v34 }
0x3615   :  { %2872 = vrot.lane.b32.xlu1 %v2870_v26, %s3880_s30 }
0x3687   :  { %v2873_v27 = vpop.permute.xlu1 %2872 }
0x3688   :  { %v2875_v28 = vadd.f32 %v2873_v27, %v4659_v55 }
0x368a   :  { %v2922_v29 = vpack.c.bf16 %v2875_v28, %v2875_v28 }
0x368c   :  { %2924 = vrot.lane.b32.xlu0 %v2922_v29, %s3881_s17 }
0x36fe   :  { %v2925_v30 = vpop.permute.xlu0 %2924 }
0x36ff   :  { %3696 = vmatmul.mubr.msk.bf16.vlgmr.msra.gmra.mxu1 %vm176_vm3, %v2925_v30 }
0x37bf   :  { %v2963_v31 = vpop.f32.mrf.mxu1 }
0x37c0   :  { %v2964_v32 = vadd.f32 %v4461_v56, %v2963_v31 }
0x37c1   :  { %v3697_v35 = vpop.f32.mrf.mxu1 }
0x37c2   :  { %2977 = vrot.lane.b32.xlu1 %v2964_v32, %s3882_s5  ;;  %v2969_v42 = vadd.f32 %v2964_v32, %v2917_v41 }
0x37c3   :  { %v2966_v36 = vpop.f32.mrf.mxu1 }
0x37c4   :  { %v3253_v43 = vmul.f32 -1.442695, %v2969_v42 }
0x37c5   :  { %v3698_v37 = vpop.f32.mrf.mxu1 }
0x37c6   :  { %3866 = vpow2.f32 %v3253_v43 }
0x37d3   :  { %v3867_v44 = vpop.eup %3866 }
0x37d4   :  { %v2973_v45 = vadd.f32 1.0, %v3867_v44 }
0x37d6   :  { %3868 = vrcp.f32 %v2973_v45 }
0x37e3   :  { %v3869_v46 = vpop.eup %3868 }
0x37e4   :  { %v2987_v51 = vsub.f32 1.0, %v3869_v46  ;;  %v2993_v52 = vmul.f32 %v3869_v46, %v2875_v28 }
0x3834   :  { %v2978_v47 = vpop.permute.xlu1 %2977 }
0x3835   :  { %v2980_v48 = vmul.f32 %v3869_v46, %v2978_v47 }
0x3837   :  { %2982 = vrot.lane.b32.xlu0 %v2980_v48, %s3882_s5 }
0x38a9   :  { %v2983_v56 = vpop.permute.xlu0 %2982 }
0x38aa   :  { %v2985_v49 = vadd.f32 %v2983_v56, %v2917_v41 }
0x38ac   :  { %3870 = vtanh.f32 %v2985_v49 }
0x38b9   :  { %v3871_v50 = vpop.eup %3870 }
0x38ba   :  { %2989 = vrot.lane.b32.xlu1 %v3871_v50, %s3881_s17 }
0x392c   :  { %v2990_v53 = vpop.permute.xlu1 %2989 }
0x392d   :  { %v2992_v54 = vmul.f32 %v2990_v53, %v2987_v51 }
0x392f   :  { %v2994_v55 = vadd.f32 %v2993_v52, %v2992_v54 }
0x3931   :  { %v2995_v1 = vpack.c.bf16 %v2994_v55, %v2994_v55 }
0x3933   :  { %2997 = vrot.lane.b32.xlu0 %v2995_v1, %s3881_s17 }
0x39a5   :  { %v2998_v57 = vpop.permute.xlu0 %2997 }
0x39a6   :  { %3704 = vmatmul.mubr.msk.bf16.vlgmr.msra.gmra.mxu0 %vm176_vm3, %v2998_v57 }
0x3a66   :  { %v3036_v58 = vpop.f32.mrf.mxu0 }
0x3a67   :  { %v3037_v8 = vadd.f32 %v4505_v23, %v3036_v58 }
0x3a68   :  { %v3705_v59 = vpop.f32.mrf.mxu0 }
0x3a69   :  { %3255 = vst.msk [vmem:[%s4734_s14 + $0x28] sm:$0xff] %vm57_vm1, %v3037_v8 }
0x3a6a   :  { %v3039_v3 = vpop.f32.mrf.mxu0 }
0x3a6c   :  { %v3706_v60 = vpop.f32.mrf.mxu0 }

</bundles_post_ra>
